<compile_context>
chip_gen: v7x
topology: tpu7x:2x2x1
jax: 0.10.0
libtpu: 0.0.40
codegen_flags: <defaults>
</compile_context>

<pallas_src>
import functools

import jax
import jax.numpy as jnp
from jax.experimental import pallas as pl
from jax.experimental.pallas import tpu as pltpu

_BN_EPS = 1e-5
_LANE = 128
_ROW_TILE_CAP = 512      # max flattened output rows per stride-1 conv tile


def _round_up(x, m):
    return (x + m - 1) // m * m


# ----------------------------------------------------------------------------
# Fused conv (+ BN batch-stats + residual + ReLU) Pallas kernel
# ----------------------------------------------------------------------------
def _conv_bn_kernel(x_ref, w_ref, g_ref, b_ref, *rest, tap_offsets, rows,
                    relu, inv_count, eps, has_residual, wp, w_valid):
    """grid = (2, n_tiles); pass axis outer, both axes sequential.

    Pass 0: shift-and-matmul over the taps (bf16 x bf16 -> f32 on the MXU),
            mask width-padding columns (stats only), stash the tile as bf16 in
            VMEM scratch and stream per-channel sum / sum-of-squares.
    Pass 1: finalize mean/var, fold gamma/beta into one scale/shift, apply a
            single FMA (+ residual + ReLU) and store a lane-dense bf16 tile.
    """
    if has_residual:
        res_ref, o_ref, y_scr, sum_scr, ssq_scr = rest
    else:
        res_ref = None
        o_ref, y_scr, sum_scr, ssq_scr = rest

    p = pl.program_id(0)      # 0: conv + moments, 1: normalize + store
    t = pl.program_id(1)      # tile index

    @pl.when(p == 0)
    def _conv_and_moments():
        @pl.when(t == 0)
        def _init():
            sum_scr[...] = jnp.zeros_like(sum_scr)
            ssq_scr[...] = jnp.zeros_like(ssq_scr)

        # Chained MXU accumulation over the taps (kept as one expression so
        # Mosaic can use the result-buffer accumulation path on v7x).
        # TODO(synk): pack tap pairs to K=256 to fill the 256-wide MXU on
        # v6e/v7x (keep K=128 on v5e).
        acc = jnp.dot(x_ref[0, pl.ds(tap_offsets[0], rows), :], w_ref[0],
                      preferred_element_type=jnp.float32)
        for k in range(1, len(tap_offsets)):
            acc = acc + jnp.dot(x_ref[0, pl.ds(tap_offsets[k], rows), :],
                                w_ref[k], preferred_element_type=jnp.float32)
        if wp is not None:
            # Zero the width-padding junk columns so they do not pollute the
            # BN batch statistics (they are sliced off in the wrapper).
            col = jax.lax.broadcasted_iota(jnp.int32, acc.shape, 0) % wp
            acc = jnp.where(col < w_valid, acc, 0.0)
        y_scr[t] = acc.astype(jnp.bfloat16)
        sum_scr[...] = sum_scr[...] + jnp.sum(acc, axis=0, keepdims=True)
        ssq_scr[...] = ssq_scr[...] + jnp.sum(acc * acc, axis=0, keepdims=True)

    @pl.when(p == 1)
    def _normalize_and_store():
        mean = sum_scr[...] * inv_count
        var = jnp.maximum(ssq_scr[...] * inv_count - mean * mean, 0.0)
        scale = g_ref[...] * jax.lax.rsqrt(var + eps)
        shift = b_ref[...] - mean * scale
        y = y_scr[t].astype(jnp.float32) * scale + shift
        if has_residual:
            y = y + res_ref[0].astype(jnp.float32)
        if relu:
            y = jnp.maximum(y, 0.0)
        o_ref[0] = y.astype(o_ref.dtype)


def _fused_conv_bn(x_tiles, w_taps, gamma, beta, *, tap_offsets, rows,
                   valid_count, relu, wp=None, w_valid=None,
                   residual_tiles=None):
    """One pallas_call: conv (shift-and-matmul or GEMM) + BN + [res] + [ReLU]."""
    n_tiles, x_rows, kin = x_tiles.shape
    n_taps, _, cout = w_taps.shape
    has_res = residual_tiles is not None

    kern = functools.partial(
        _conv_bn_kernel,
        tap_offsets=tuple(int(o) for o in tap_offsets), rows=rows, relu=relu,
        inv_count=1.0 / float(valid_count), eps=_BN_EPS, has_residual=has_res,
        wp=wp, w_valid=w_valid)

    # Pass-dependent index_maps: unused blocks collapse to block 0 so they are
    # not re-DMA'd, and no uninitialized output block is ever written back
    # (the output index stays 0 through pass 0 until pass 1 overwrites it).
    in_specs = [
        pl.BlockSpec((1, x_rows, kin), lambda p, t: (t * (1 - p), 0, 0)),    # x
        pl.BlockSpec((n_taps, kin, cout), lambda p, t: (0, 0, 0)),  # weights
        pl.BlockSpec((1, cout), lambda p, t: (0, 0)),               # gamma
        pl.BlockSpec((1, cout), lambda p, t: (0, 0)),               # beta
    ]
    args = [x_tiles, w_taps, gamma, beta]
    if has_res:
        in_specs.append(pl.BlockSpec((1, rows, cout),
                                     lambda p, t: (t * p, 0, 0)))
        args.append(residual_tiles)

    # Explicit VMEM budget: bf16 whole-output scratch + double-buffered blocks
    # + resident weights + headroom.
    scr_bytes = n_tiles * rows * cout * 2 + 2 * cout * 4
    blk_bytes = (2 * x_rows * kin * 2 + n_taps * kin * cout * 2
                 + 2 * rows * cout * 2
                 + (2 * rows * cout * 2 if has_res else 0))
    vmem_limit = int(max(32 << 20, min(scr_bytes + blk_bytes + (8 << 20),
                                       64 << 20)))
    # TODO(synk): when scr_bytes alone exceeds the budget, fall back to a
    # two-pallas_call scheme (bf16 conv tiles spilled to HBM + per-tile
    # partial moments reduced separately) instead of a whole-output scratch.

    flops = 2 * n_tiles * rows * kin * cout * n_taps + 8 * n_tiles * rows * cout
    bytes_accessed = (x_tiles.size * 2 + w_taps.size * 2
                      + n_tiles * rows * cout * 2 * (2 if has_res else 1)
                      + 4 * cout * 4)

    return pl.pallas_call(
        kern,
        out_shape=jax.ShapeDtypeStruct((n_tiles, rows, cout), jnp.bfloat16),
        grid=(2, n_tiles),
        in_specs=in_specs,
        out_specs=pl.BlockSpec((1, rows, cout), lambda p, t: (t * p, 0, 0)),
        scratch_shapes=[
            pltpu.VMEM((n_tiles, rows, cout), jnp.bfloat16),  # raw conv tiles
            pltpu.VMEM((1, cout), jnp.float32),               # sum
            pltpu.VMEM((1, cout), jnp.float32),               # sum of squares
        ],
        # BN batch statistics accumulate across tiles, so both grid axes are
        # sequential.  TODO(synk): emit per-tile partial moments + separate
        # reduce so the tile axis can go "parallel" on v7x's two TensorCores.
        compiler_params=pltpu.CompilerParams(
            dimension_semantics=("arbitrary", "arbitrary"),
            vmem_limit_bytes=vmem_limit),
        cost_estimate=pl.CostEstimate(
            flops=int(flops), transcendentals=0,
            bytes_accessed=int(bytes_accessed)),
    )(*args)


# ----------------------------------------------------------------------------
# Conv wrappers (layout plumbing only; all math happens in the kernel)
# ----------------------------------------------------------------------------
def _pick_tile_h(h, wp, cap=_ROW_TILE_CAP):
    """Largest divisor of h whose flattened tile (tile_h*wp rows) fits `cap`,
    preferring sublane-aligned (multiple-of-8) row counts."""
    for need_aligned in (True, False):
        for cand in range(h, 0, -1):
            if h % cand or cand * wp > cap:
                continue
            if need_aligned and (cand * wp) % 8:
                continue
            return cand
    return 1


def conv3x3_bn(x, weight, gamma, beta, *, relu=True, residual=None):
    """3x3 / stride-1 / pad-1 Conv2d(bias=False) + BN(batch stats)
    [+ residual] [+ ReLU] via in-kernel shift-and-matmul (no im2col),
    row-tiled with a 3-padded-row halo per tile."""
    b, h, w, cp = x.shape
    cout, cin, kh, kw = weight.shape
    assert (kh, kw) == (3, 3)
    cout_p = _round_up(cout, _LANE)
    wp = w + 2                          # width-padded row length
    tile_h = _pick_tile_h(h, wp)
    n_rt = h // tile_h
    rows = tile_h * wp                  # output rows per tile (2 junk cols/row)
    x_rows = (tile_h + 3) * wp          # input rows per tile (incl. halo)

    # One contiguous zero-padded bf16 copy: 1 top, 2 bottom, 1 left/right.
    xp = jnp.pad(x.astype(jnp.bfloat16), ((0, 0), (1, 2), (1, 1), (0, 0)))
    if n_rt == 1:
        x_tiles = xp.reshape(b, x_rows, cp)
    else:
        slabs = [xp[:, i * tile_h: i * tile_h + tile_h + 3]
                 for i in range(n_rt)]
        x_tiles = jnp.stack(slabs, axis=1).reshape(b * n_rt, x_rows, cp)

    wt = jnp.transpose(weight, (2, 3, 1, 0)).reshape(9, cin, cout)
    wt = jnp.pad(wt, ((0, 0), (0, cp - cin), (0, cout_p - cout)))
    wt = wt.astype(jnp.bfloat16)

    g = jnp.pad(gamma, (0, cout_p - cout)).reshape(1, cout_p).astype(jnp.float32)
    bt = jnp.pad(beta, (0, cout_p - cout)).reshape(1, cout_p).astype(jnp.float32)

    res_tiles = None
    if residual is not None:
        assert residual.shape == (b, h, w, cout_p)
        rp = jnp.pad(residual.astype(jnp.bfloat16),
                     ((0, 0), (0, 0), (0, 2), (0, 0)))
        res_tiles = rp.reshape(b * n_rt, rows, cout_p)

    taps = tuple(ki * wp + kj for ki in range(3) for kj in range(3))
    out = _fused_conv_bn(x_tiles, wt, g, bt, tap_offsets=taps, rows=rows,
                         valid_count=b * h * w, relu=relu, wp=wp, w_valid=w,
                         residual_tiles=res_tiles)
    out = out.reshape(b, n_rt, tile_h, wp, cout_p).reshape(b, h, wp, cout_p)
    return out[:, :, :w, :]


def _im2col(x, k, stride, pad):
    b, h, w, c = x.shape
    if pad:
        x = jnp.pad(x, ((0, 0), (pad, pad), (pad, pad), (0, 0)))
    ho = (h + 2 * pad - k) // stride + 1
    wo = (w + 2 * pad - k) // stride + 1
    cols = []
    for ki in range(k):
        for kj in range(k):
            cols.append(x[:, ki:ki + stride * ho:stride,
                          kj:kj + stride * wo:stride, :])
    patches = jnp.stack(cols, axis=3)                 # (b, ho, wo, k*k, c)
    return patches.reshape(b, ho * wo, k * k * c), ho, wo


def _pick_tile_m(m, cap=512):
    for t in range(min(m, cap), 0, -1):
        if m % t == 0 and t % 8 == 0:
            return t
    for t in range(min(m, cap), 0, -1):
        if m % t == 0:
            return t
    return m


def conv_gemm_bn(x, weight, gamma, beta, *, stride, pad, relu=True,
                 residual=None):
    """General Conv2d(bias=False) + BN via an im2col GEMM.  Used only for the
    strided convs (7x7/s2 conv1 with Cin=3, 3x3/s2, 1x1/s2) where the K
    expansion is small; all GEMM dims padded to MXU/lane-friendly sizes."""
    b, h, w, cp = x.shape
    cout, cin, kh, kw = weight.shape
    cout_p = _round_up(cout, _LANE)

    a, ho, wo = _im2col(x.astype(jnp.bfloat16), kh, stride, pad)
    k_dim = kh * kw * cp
    k_pad = _round_up(k_dim, _LANE)
    a = jnp.pad(a, ((0, 0), (0, 0), (0, k_pad - k_dim)))

    m_img = ho * wo
    tile_m = _pick_tile_m(m_img)
    n_tiles = (b * m_img) // tile_m
    a = a.reshape(n_tiles, tile_m, k_pad)

    wt = jnp.transpose(weight, (2, 3, 1, 0))                  # (kh,kw,cin,cout)
    wt = jnp.pad(wt, ((0, 0), (0, 0), (0, cp - cin), (0, 0)))
    wt = wt.reshape(kh * kw * cp, cout)
    wt = jnp.pad(wt, ((0, k_pad - k_dim), (0, cout_p - cout)))
    wt = wt.astype(jnp.bfloat16).reshape(1, k_pad, cout_p)

    g = jnp.pad(gamma, (0, cout_p - cout)).reshape(1, cout_p).astype(jnp.float32)
    bt = jnp.pad(beta, (0, cout_p - cout)).reshape(1, cout_p).astype(jnp.float32)

    res_tiles = None
    if residual is not None:
        res_tiles = residual.astype(jnp.bfloat16).reshape(n_tiles, tile_m, cout_p)

    out = _fused_conv_bn(a, wt, g, bt, tap_offsets=(0,), rows=tile_m,
                         valid_count=b * m_img, relu=relu,
                         residual_tiles=res_tiles)
    return out.reshape(b, ho, wo, cout_p)


def maxpool_3x3_s2_p1(x):
    # Plain XLA reduce_window (memory-bound op; a Pallas version would just
    # materialize a 9x patch tensor in HBM to do 8 vector maxes).
    return jax.lax.reduce_window(
        x, jnp.array(-jnp.inf, x.dtype), jax.lax.max,
        window_dimensions=(1, 3, 3, 1),
        window_strides=(1, 2, 2, 1),
        padding=((0, 0), (1, 1), (1, 1), (0, 0)))


# ----------------------------------------------------------------------------
# ResNet-18 prefix (children 0..6) parameters + forward
# ----------------------------------------------------------------------------
def _conv_w(key, cout, cin, k):
    scale = (cin * k * k) ** -0.5
    return jax.random.normal(key, (cout, cin, k, k), jnp.float32) * scale


def _bn_p(key, c):
    k1, k2 = jax.random.split(key)
    gamma = 1.0 + 0.1 * jax.random.normal(k1, (c,), jnp.float32)
    beta = 0.1 * jax.random.normal(k2, (c,), jnp.float32)
    return gamma, beta


def _make_basic_block(key, cin, cout, stride):
    ks = jax.random.split(key, 6)
    blk = {
        "conv1": _conv_w(ks[0], cout, cin, 3),
        "bn1": _bn_p(ks[1], cout),
        "conv2": _conv_w(ks[2], cout, cout, 3),
        "bn2": _bn_p(ks[3], cout),
    }
    if stride != 1 or cin != cout:
        blk["down_conv"] = _conv_w(ks[4], cout, cin, 1)
        blk["down_bn"] = _bn_p(ks[5], cout)
    return blk


def init_params(key):
    ks = iter(jax.random.split(key, 8))
    params = {
        "conv1": _conv_w(next(ks), 64, 3, 7),
        "bn1": _bn_p(next(ks), 64),
    }
    cin = 64
    for name, cout, stride in (("layer1", 64, 1),
                               ("layer2", 128, 2),
                               ("layer3", 256, 2)):
        params[name] = [
            _make_basic_block(next(ks), cin, cout, stride),
            _make_basic_block(next(ks), cout, cout, 1),
        ]
        cin = cout
    return params


def _basic_block_forward(x, blk):
    # In this ResNet-18 prefix a block has a downsample branch iff stride == 2.
    downsample = "down_conv" in blk
    stride = 2 if downsample else 1
    identity = x
    if stride == 1:
        out = conv3x3_bn(x, blk["conv1"], *blk["bn1"], relu=True)
    else:
        out = conv_gemm_bn(x, blk["conv1"], *blk["bn1"],
                           stride=stride, pad=1, relu=True)
    if downsample:
        identity = conv_gemm_bn(x, blk["down_conv"], *blk["down_bn"],
                                stride=stride, pad=0, relu=False)
    # relu(bn2(conv2(out)) + identity), fused in one pallas_call
    return conv3x3_bn(out, blk["conv2"], *blk["bn2"], relu=True,
                      residual=identity)


def early_resnet_forward(x_nchw, params):
    x = jnp.transpose(x_nchw, (0, 2, 3, 1)).astype(jnp.float32)   # NCHW -> NHWC
    # children 0,1,2: conv1 (7x7/s2/p3, Cin=3) + bn1 + relu
    x = conv_gemm_bn(x, params["conv1"], *params["bn1"],
                     stride=2, pad=3, relu=True)
    # child 3: maxpool 3x3/s2/p1
    x = maxpool_3x3_s2_p1(x)
    # children 4,5,6: layer1, layer2, layer3
    for name in ("layer1", "layer2", "layer3"):
        for blk in params[name]:
            x = _basic_block_forward(x, blk)
    cout = params["layer3"][0]["conv2"].shape[0]       # 256 real channels
    x = x[..., :cout].astype(jnp.float32)
    return jnp.transpose(x, (0, 3, 1, 2))              # NHWC -> NCHW


# ----------------------------------------------------------------------------
# Pure-JAX reference for a quick numeric self-check of the fused kernel
# ----------------------------------------------------------------------------
def _reference_conv3x3_bn(x, weight, gamma, beta, relu=True):
    y = jax.lax.conv_general_dilated(
        x, jnp.transpose(weight, (2, 3, 1, 0)),
        window_strides=(1, 1), padding="SAME",
        dimension_numbers=("NHWC", "HWIO", "NHWC"))
    mean = jnp.mean(y, axis=(0, 1, 2))
    var = jnp.mean((y - mean) ** 2, axis=(0, 1, 2))
    y = (y - mean) * jax.lax.rsqrt(var + _BN_EPS) * gamma + beta
    return jnp.maximum(y, 0.0) if relu else y


# ----------------------------------------------------------------------------
if __name__ == "__main__":
    key = jax.random.PRNGKey(0)
    pkey, xkey = jax.random.split(key)

    # --- numeric self-check of the row-tiled fused conv+BN+ReLU kernel ------
    # h=w=40 forces the multi-row-tile path (tile_h=8 -> 5 tiles per image).
    ck = jax.random.split(pkey, 3)
    cw = _conv_w(ck[0], 64, 64, 3)
    cg, cb = _bn_p(ck[1], 64)
    cx = jax.random.normal(ck[2], (1, 40, 40, 64), jnp.float32)
    cx_p = jnp.pad(cx, ((0, 0), (0, 0), (0, 0), (0, 64)))   # pad channels->128
    got = conv3x3_bn(cx_p, cw, cg, cb, relu=True)[..., :64].astype(jnp.float32)
    want = _reference_conv3x3_bn(cx, cw, cg, cb, relu=True)
    err = jnp.abs(jax.block_until_ready(got) - want)
    assert float(jnp.mean(err)) < 2e-2 and float(jnp.max(err)) < 0.25, (
        float(jnp.mean(err)), float(jnp.max(err)))

    # --- full EarlyResNet forward -------------------------------------------
    params = init_params(pkey)
    # Small ImageNet-style input: batch=2, 3 channels, 64x64 spatial.
    x = jax.random.normal(xkey, (2, 3, 64, 64), jnp.float32)

    fwd = jax.jit(early_resnet_forward)
    y = jax.block_until_ready(fwd(x, params))

    # 64 -> conv1/2 -> 32 -> maxpool/2 -> 16 -> layer2/2 -> 8 -> layer3/2 -> 4
    assert y.shape == (2, 256, 4, 4), y.shape
    assert bool(jnp.all(jnp.isfinite(y)))
    print("KERNEL_OK")
</pallas_src>

<mosaic_0001>
module attributes {stable_mosaic.version = 11 : i64} {
  func.func @_conv_bn_kernel(%arg0: i32, %arg1: i32, %arg2: memref<1x462x128xbf16, #tpu.memory_space<vmem>>, %arg3: memref<9x128x128xbf16, #tpu.memory_space<vmem>>, %arg4: memref<1x128xf32, #tpu.memory_space<vmem>>, %arg5: memref<1x128xf32, #tpu.memory_space<vmem>>, %arg6: memref<1x336x128xbf16, #tpu.memory_space<vmem>>, %arg7: memref<5x336x128xbf16, #tpu.memory_space<vmem>>, %arg8: memref<1x128xf32, #tpu.memory_space<vmem>>, %arg9: memref<1x128xf32, #tpu.memory_space<vmem>>) attributes {dimension_semantics = [#tpu.dimension_semantics<arbitrary>, #tpu.dimension_semantics<arbitrary>], iteration_bounds = array<i64: 2, 5>, scalar_prefetch = 0 : i64, scratch_operands = 3 : i64, tpu.core_type = #tpu.core_type<tc>, window_params = [{transform_indices = @transform_0, window_bounds = array<i64: 1, 462, 128>}, {pipeline_mode = #tpu.pipeline_mode<synchronous>, transform_indices = @transform_1, window_bounds = array<i64: 9, 128, 128>}, {pipeline_mode = #tpu.pipeline_mode<synchronous>, transform_indices = @transform_2, window_bounds = array<i64: 1, 128>}, {pipeline_mode = #tpu.pipeline_mode<synchronous>, transform_indices = @transform_3, window_bounds = array<i64: 1, 128>}, {transform_indices = @transform_4, window_bounds = array<i64: 1, 336, 128>}]} {
    %c0_i32 = arith.constant 0 : i32
    %0 = arith.cmpi eq, %arg0, %c0_i32 : i32
    %1 = arith.extui %0 : i1 to i32
    %c0_i32_0 = arith.constant 0 : i32
    %2 = arith.cmpi ne, %1, %c0_i32_0 : i32
    scf.if %2 {
      %c0_i32_2 = arith.constant 0 : i32
      %6 = arith.cmpi eq, %arg1, %c0_i32_2 : i32
      %7 = arith.extui %6 : i1 to i32
      %c0_i32_3 = arith.constant 0 : i32
      %8 = arith.cmpi ne, %7, %c0_i32_3 : i32
      scf.if %8 {
        %cst_69 = arith.constant 0.000000e+00 : f32
        %99 = vector.broadcast %cst_69 : f32 to vector<1x128xf32>
        %c0_70 = arith.constant 0 : index
        %c0_71 = arith.constant 0 : index
        %100 = vector.load %arg8[%c0_70, %c0_71] : memref<1x128xf32, #tpu.memory_space<vmem>>, vector<1x128xf32>
        tpu.vector_store %arg8[%c0_70, %c0_71], %99 {strides = array<i32>} : memref<1x128xf32, #tpu.memory_space<vmem>>, vector<1x128xf32>,
        %cst_72 = arith.constant 0.000000e+00 : f32
        %101 = vector.broadcast %cst_72 : f32 to vector<1x128xf32>
        %c0_73 = arith.constant 0 : index
        %c0_74 = arith.constant 0 : index
        %102 = vector.load %arg9[%c0_73, %c0_74] : memref<1x128xf32, #tpu.memory_space<vmem>>, vector<1x128xf32>
        tpu.vector_store %arg9[%c0_73, %c0_74], %101 {strides = array<i32>} : memref<1x128xf32, #tpu.memory_space<vmem>>, vector<1x128xf32>,
      } else {
      }
      %c0 = arith.constant 0 : index
      %c0_4 = arith.constant 0 : index
      %c0_5 = arith.constant 0 : index
      %9 = vector.load %arg2[%c0, %c0_4, %c0_5] : memref<1x462x128xbf16, #tpu.memory_space<vmem>>, vector<1x336x128xbf16>
      %10 = vector.shape_cast %9 : vector<1x336x128xbf16> to vector<336x128xbf16>
      %c0_6 = arith.constant 0 : index
      %c0_7 = arith.constant 0 : index
      %c0_8 = arith.constant 0 : index
      %11 = vector.load %arg3[%c0_6, %c0_7, %c0_8] : memref<9x128x128xbf16, #tpu.memory_space<vmem>>, vector<1x128x128xbf16>
      %12 = vector.shape_cast %11 : vector<1x128x128xbf16> to vector<128x128xbf16>
      %cst = arith.constant dense<0.000000e+00> : vector<336x128xf32>
      %13 = tpu.matmul %10, %12, %cst {dimension_numbers = #tpu.dot_dimension_numbers<[1], [0], [0], [1], [0, 0, 1, 1], [], []>} : vector<336x128xbf16>, vector<128x128xbf16>, vector<336x128xf32> -> vector<336x128xf32>
      %c0_9 = arith.constant 0 : index
      %c1 = arith.constant 1 : index
      %c0_10 = arith.constant 0 : index
      %14 = vector.load %arg2[%c0_9, %c1, %c0_10] : memref<1x462x128xbf16, #tpu.memory_space<vmem>>, vector<1x336x128xbf16>
      %15 = vector.shape_cast %14 : vector<1x336x128xbf16> to vector<336x128xbf16>
      %c1_11 = arith.constant 1 : index
      %c0_12 = arith.constant 0 : index
      %c0_13 = arith.constant 0 : index
      %16 = vector.load %arg3[%c1_11, %c0_12, %c0_13] : memref<9x128x128xbf16, #tpu.memory_space<vmem>>, vector<1x128x128xbf16>
      %17 = vector.shape_cast %16 : vector<1x128x128xbf16> to vector<128x128xbf16>
      %cst_14 = arith.constant dense<0.000000e+00> : vector<336x128xf32>
      %18 = tpu.matmul %15, %17, %cst_14 {dimension_numbers = #tpu.dot_dimension_numbers<[1], [0], [0], [1], [0, 0, 1, 1], [], []>} : vector<336x128xbf16>, vector<128x128xbf16>, vector<336x128xf32> -> vector<336x128xf32>
      %19 = arith.addf %13, %18 : vector<336x128xf32>
      %c0_15 = arith.constant 0 : index
      %c2 = arith.constant 2 : index
      %c0_16 = arith.constant 0 : index
      %20 = vector.load %arg2[%c0_15, %c2, %c0_16] : memref<1x462x128xbf16, #tpu.memory_space<vmem>>, vector<1x336x128xbf16>
      %21 = vector.shape_cast %20 : vector<1x336x128xbf16> to vector<336x128xbf16>
      %c2_17 = arith.constant 2 : index
      %c0_18 = arith.constant 0 : index
      %c0_19 = arith.constant 0 : index
      %22 = vector.load %arg3[%c2_17, %c0_18, %c0_19] : memref<9x128x128xbf16, #tpu.memory_space<vmem>>, vector<1x128x128xbf16>
      %23 = vector.shape_cast %22 : vector<1x128x128xbf16> to vector<128x128xbf16>
      %cst_20 = arith.constant dense<0.000000e+00> : vector<336x128xf32>
      %24 = tpu.matmul %21, %23, %cst_20 {dimension_numbers = #tpu.dot_dimension_numbers<[1], [0], [0], [1], [0, 0, 1, 1], [], []>} : vector<336x128xbf16>, vector<128x128xbf16>, vector<336x128xf32> -> vector<336x128xf32>
      %25 = arith.addf %19, %24 : vector<336x128xf32>
      %c0_21 = arith.constant 0 : index
      %c42 = arith.constant 42 : index
      %c0_22 = arith.constant 0 : index
      %26 = vector.load %arg2[%c0_21, %c42, %c0_22] : memref<1x462x128xbf16, #tpu.memory_space<vmem>>, vector<1x336x128xbf16>
      %27 = vector.shape_cast %26 : vector<1x336x128xbf16> to vector<336x128xbf16>
      %c3 = arith.constant 3 : index
      %c0_23 = arith.constant 0 : index
      %c0_24 = arith.constant 0 : index
      %28 = vector.load %arg3[%c3, %c0_23, %c0_24] : memref<9x128x128xbf16, #tpu.memory_space<vmem>>, vector<1x128x128xbf16>
      %29 = vector.shape_cast %28 : vector<1x128x128xbf16> to vector<128x128xbf16>
      %cst_25 = arith.constant dense<0.000000e+00> : vector<336x128xf32>
      %30 = tpu.matmul %27, %29, %cst_25 {dimension_numbers = #tpu.dot_dimension_numbers<[1], [0], [0], [1], [0, 0, 1, 1], [], []>} : vector<336x128xbf16>, vector<128x128xbf16>, vector<336x128xf32> -> vector<336x128xf32>
      %31 = arith.addf %25, %30 : vector<336x128xf32>
      %c0_26 = arith.constant 0 : index
      %c43 = arith.constant 43 : index
      %c0_27 = arith.constant 0 : index
      %32 = vector.load %arg2[%c0_26, %c43, %c0_27] : memref<1x462x128xbf16, #tpu.memory_space<vmem>>, vector<1x336x128xbf16>
      %33 = vector.shape_cast %32 : vector<1x336x128xbf16> to vector<336x128xbf16>
      %c4 = arith.constant 4 : index
      %c0_28 = arith.constant 0 : index
      %c0_29 = arith.constant 0 : index
      %34 = vector.load %arg3[%c4, %c0_28, %c0_29] : memref<9x128x128xbf16, #tpu.memory_space<vmem>>, vector<1x128x128xbf16>
      %35 = vector.shape_cast %34 : vector<1x128x128xbf16> to vector<128x128xbf16>
      %cst_30 = arith.constant dense<0.000000e+00> : vector<336x128xf32>
      %36 = tpu.matmul %33, %35, %cst_30 {dimension_numbers = #tpu.dot_dimension_numbers<[1], [0], [0], [1], [0, 0, 1, 1], [], []>} : vector<336x128xbf16>, vector<128x128xbf16>, vector<336x128xf32> -> vector<336x128xf32>
      %37 = arith.addf %31, %36 : vector<336x128xf32>
      %c0_31 = arith.constant 0 : index
      %c44 = arith.constant 44 : index
      %c0_32 = arith.constant 0 : index
      %38 = vector.load %arg2[%c0_31, %c44, %c0_32] : memref<1x462x128xbf16, #tpu.memory_space<vmem>>, vector<1x336x128xbf16>
      %39 = vector.shape_cast %38 : vector<1x336x128xbf16> to vector<336x128xbf16>
      %c5 = arith.constant 5 : index
      %c0_33 = arith.constant 0 : index
      %c0_34 = arith.constant 0 : index
      %40 = vector.load %arg3[%c5, %c0_33, %c0_34] : memref<9x128x128xbf16, #tpu.memory_space<vmem>>, vector<1x128x128xbf16>
      %41 = vector.shape_cast %40 : vector<1x128x128xbf16> to vector<128x128xbf16>
      %cst_35 = arith.constant dense<0.000000e+00> : vector<336x128xf32>
      %42 = tpu.matmul %39, %41, %cst_35 {dimension_numbers = #tpu.dot_dimension_numbers<[1], [0], [0], [1], [0, 0, 1, 1], [], []>} : vector<336x128xbf16>, vector<128x128xbf16>, vector<336x128xf32> -> vector<336x128xf32>
      %43 = arith.addf %37, %42 : vector<336x128xf32>
      %c0_36 = arith.constant 0 : index
      %c84 = arith.constant 84 : index
      %c0_37 = arith.constant 0 : index
      %44 = vector.load %arg2[%c0_36, %c84, %c0_37] : memref<1x462x128xbf16, #tpu.memory_space<vmem>>, vector<1x336x128xbf16>
      %45 = vector.shape_cast %44 : vector<1x336x128xbf16> to vector<336x128xbf16>
      %c6 = arith.constant 6 : index
      %c0_38 = arith.constant 0 : index
      %c0_39 = arith.constant 0 : index
      %46 = vector.load %arg3[%c6, %c0_38, %c0_39] : memref<9x128x128xbf16, #tpu.memory_space<vmem>>, vector<1x128x128xbf16>
      %47 = vector.shape_cast %46 : vector<1x128x128xbf16> to vector<128x128xbf16>
      %cst_40 = arith.constant dense<0.000000e+00> : vector<336x128xf32>
      %48 = tpu.matmul %45, %47, %cst_40 {dimension_numbers = #tpu.dot_dimension_numbers<[1], [0], [0], [1], [0, 0, 1, 1], [], []>} : vector<336x128xbf16>, vector<128x128xbf16>, vector<336x128xf32> -> vector<336x128xf32>
      %49 = arith.addf %43, %48 : vector<336x128xf32>
      %c0_41 = arith.constant 0 : index
      %c85 = arith.constant 85 : index
      %c0_42 = arith.constant 0 : index
      %50 = vector.load %arg2[%c0_41, %c85, %c0_42] : memref<1x462x128xbf16, #tpu.memory_space<vmem>>, vector<1x336x128xbf16>
      %51 = vector.shape_cast %50 : vector<1x336x128xbf16> to vector<336x128xbf16>
      %c7 = arith.constant 7 : index
      %c0_43 = arith.constant 0 : index
      %c0_44 = arith.constant 0 : index
      %52 = vector.load %arg3[%c7, %c0_43, %c0_44] : memref<9x128x128xbf16, #tpu.memory_space<vmem>>, vector<1x128x128xbf16>
      %53 = vector.shape_cast %52 : vector<1x128x128xbf16> to vector<128x128xbf16>
      %cst_45 = arith.constant dense<0.000000e+00> : vector<336x128xf32>
      %54 = tpu.matmul %51, %53, %cst_45 {dimension_numbers = #tpu.dot_dimension_numbers<[1], [0], [0], [1], [0, 0, 1, 1], [], []>} : vector<336x128xbf16>, vector<128x128xbf16>, vector<336x128xf32> -> vector<336x128xf32>
      %55 = arith.addf %49, %54 : vector<336x128xf32>
      %c0_46 = arith.constant 0 : index
      %c86 = arith.constant 86 : index
      %c0_47 = arith.constant 0 : index
      %56 = vector.load %arg2[%c0_46, %c86, %c0_47] : memref<1x462x128xbf16, #tpu.memory_space<vmem>>, vector<1x336x128xbf16>
      %57 = vector.shape_cast %56 : vector<1x336x128xbf16> to vector<336x128xbf16>
      %c8 = arith.constant 8 : index
      %c0_48 = arith.constant 0 : index
      %c0_49 = arith.constant 0 : index
      %58 = vector.load %arg3[%c8, %c0_48, %c0_49] : memref<9x128x128xbf16, #tpu.memory_space<vmem>>, vector<1x128x128xbf16>
      %59 = vector.shape_cast %58 : vector<1x128x128xbf16> to vector<128x128xbf16>
      %cst_50 = arith.constant dense<0.000000e+00> : vector<336x128xf32>
      %60 = tpu.matmul %57, %59, %cst_50 {dimension_numbers = #tpu.dot_dimension_numbers<[1], [0], [0], [1], [0, 0, 1, 1], [], []>} : vector<336x128xbf16>, vector<128x128xbf16>, vector<336x128xf32> -> vector<336x128xf32>
      %61 = arith.addf %55, %60 : vector<336x128xf32>
      %62 = tpu.iota {dimensions = array<i32: 0>} : vector<336x128xi32>
      %c42_i32 = arith.constant 42 : i32
      %c0_i32_51 = arith.constant 0 : i32
      %63 = arith.cmpi eq, %c42_i32, %c0_i32_51 : i32
      %c1_i32_52 = arith.constant 1 : i32
      %64 = arith.select %63, %c1_i32_52, %c42_i32 : i32
      %65 = vector.broadcast %64 : i32 to vector<336x128xi32>
      %66 = arith.remsi %62, %65 : vector<336x128xi32>
      %c0_i32_53 = arith.constant 0 : i32
      %67 = vector.broadcast %c0_i32_53 : i32 to vector<336x128xi32>
      %68 = arith.cmpi ne, %66, %67 : vector<336x128xi32>
      %c0_i32_54 = arith.constant 0 : i32
      %69 = vector.broadcast %c0_i32_54 : i32 to vector<336x128xi32>
      %70 = arith.cmpi slt, %66, %69 : vector<336x128xi32>
      %c0_i32_55 = arith.constant 0 : i32
      %71 = arith.cmpi slt, %64, %c0_i32_55 : i32
      %72 = vector.broadcast %71 : i1 to vector<336x128xi1>
      %73 = vector.broadcast %72 : vector<336x128xi1> to vector<336x128xi1>
      %74 = arith.xori %70, %73 : vector<336x128xi1>
      %75 = arith.andi %74, %68 : vector<336x128xi1>
      %76 = vector.broadcast %64 : i32 to vector<336x128xi32>
      %77 = arith.addi %66, %76 : vector<336x128xi32>
      %78 = arith.select %75, %77, %66 : vector<336x128xi1>, vector<336x128xi32>
      %c40_i32 = arith.constant 40 : i32
      %79 = vector.broadcast %c40_i32 : i32 to vector<336x128xi32>
      %80 = arith.cmpi slt, %78, %79 : vector<336x128xi32>
      %cst_56 = arith.constant 0.000000e+00 : f32
      %81 = vector.broadcast %cst_56 : f32 to vector<336x128xf32>
      %82 = arith.select %80, %61, %81 : vector<336x128xi1>, vector<336x128xf32>
      %83 = arith.truncf %82 : vector<336x128xf32> to vector<336x128xbf16>
      %84 = arith.index_cast %arg1 : i32 to index
      %c0_57 = arith.constant 0 : index
      %c0_58 = arith.constant 0 : index
      %85 = vector.load %arg7[%84, %c0_57, %c0_58] : memref<5x336x128xbf16, #tpu.memory_space<vmem>>, vector<1x336x128xbf16>
      %86 = vector.shape_cast %85 : vector<1x336x128xbf16> to vector<336x128xbf16>
      %87 = vector.shape_cast %83 : vector<336x128xbf16> to vector<1x336x128xbf16>
      tpu.vector_store %arg7[%84, %c0_57, %c0_58], %87 {strides = array<i32>} : memref<5x336x128xbf16, #tpu.memory_space<vmem>>, vector<1x336x128xbf16>,
      %c0_59 = arith.constant 0 : index
      %c0_60 = arith.constant 0 : index
      %88 = vector.load %arg8[%c0_59, %c0_60] : memref<1x128xf32, #tpu.memory_space<vmem>>, vector<1x128xf32>
      %cst_61 = arith.constant dense<0.000000e+00> : vector<128xf32>
      %89 = vector.multi_reduction <add>, %82, %cst_61 [0] : vector<336x128xf32> to vector<128xf32>
      %90 = vector.shape_cast %89 : vector<128xf32> to vector<1x128xf32>
      %91 = arith.addf %88, %90 : vector<1x128xf32>
      %c0_62 = arith.constant 0 : index
      %c0_63 = arith.constant 0 : index
      %92 = vector.load %arg8[%c0_62, %c0_63] : memref<1x128xf32, #tpu.memory_space<vmem>>, vector<1x128xf32>
      tpu.vector_store %arg8[%c0_62, %c0_63], %91 {strides = array<i32>} : memref<1x128xf32, #tpu.memory_space<vmem>>, vector<1x128xf32>,
      %c0_64 = arith.constant 0 : index
      %c0_65 = arith.constant 0 : index
      %93 = vector.load %arg9[%c0_64, %c0_65] : memref<1x128xf32, #tpu.memory_space<vmem>>, vector<1x128xf32>
      %94 = arith.mulf %82, %82 : vector<336x128xf32>
      %cst_66 = arith.constant dense<0.000000e+00> : vector<128xf32>
      %95 = vector.multi_reduction <add>, %94, %cst_66 [0] : vector<336x128xf32> to vector<128xf32>
      %96 = vector.shape_cast %95 : vector<128xf32> to vector<1x128xf32>
      %97 = arith.addf %93, %96 : vector<1x128xf32>
      %c0_67 = arith.constant 0 : index
      %c0_68 = arith.constant 0 : index
      %98 = vector.load %arg9[%c0_67, %c0_68] : memref<1x128xf32, #tpu.memory_space<vmem>>, vector<1x128xf32>
      tpu.vector_store %arg9[%c0_67, %c0_68], %97 {strides = array<i32>} : memref<1x128xf32, #tpu.memory_space<vmem>>, vector<1x128xf32>,
    } else {
    }
    %c1_i32 = arith.constant 1 : i32
    %3 = arith.cmpi eq, %arg0, %c1_i32 : i32
    %4 = arith.extui %3 : i1 to i32
    %c0_i32_1 = arith.constant 0 : i32
    %5 = arith.cmpi ne, %4, %c0_i32_1 : i32
    scf.if %5 {
      %c0 = arith.constant 0 : index
      %c0_2 = arith.constant 0 : index
      %6 = vector.load %arg8[%c0, %c0_2] : memref<1x128xf32, #tpu.memory_space<vmem>>, vector<1x128xf32>
      %cst = arith.constant 6.250000e-04 : f32
      %7 = vector.broadcast %cst : f32 to vector<1x128xf32>
      %8 = arith.mulf %6, %7 : vector<1x128xf32>
      %c0_3 = arith.constant 0 : index
      %c0_4 = arith.constant 0 : index
      %9 = vector.load %arg9[%c0_3, %c0_4] : memref<1x128xf32, #tpu.memory_space<vmem>>, vector<1x128xf32>
      %cst_5 = arith.constant 6.250000e-04 : f32
      %10 = vector.broadcast %cst_5 : f32 to vector<1x128xf32>
      %11 = arith.mulf %9, %10 : vector<1x128xf32>
      %12 = arith.mulf %8, %8 : vector<1x128xf32>
      %13 = arith.subf %11, %12 : vector<1x128xf32>
      %cst_6 = arith.constant 0.000000e+00 : f32
      %14 = vector.broadcast %cst_6 : f32 to vector<1x128xf32>
      %15 = arith.maximumf %13, %14 : vector<1x128xf32>
      %c0_7 = arith.constant 0 : index
      %c0_8 = arith.constant 0 : index
      %16 = vector.load %arg4[%c0_7, %c0_8] : memref<1x128xf32, #tpu.memory_space<vmem>>, vector<1x128xf32>
      %cst_9 = arith.constant 9.99999974E-6 : f32
      %17 = vector.broadcast %cst_9 : f32 to vector<1x128xf32>
      %18 = arith.addf %15, %17 : vector<1x128xf32>
      %19 = math.rsqrt %18 : vector<1x128xf32>
      %20 = arith.mulf %16, %19 : vector<1x128xf32>
      %c0_10 = arith.constant 0 : index
      %c0_11 = arith.constant 0 : index
      %21 = vector.load %arg5[%c0_10, %c0_11] : memref<1x128xf32, #tpu.memory_space<vmem>>, vector<1x128xf32>
      %22 = arith.mulf %8, %20 : vector<1x128xf32>
      %23 = arith.subf %21, %22 : vector<1x128xf32>
      %24 = arith.index_cast %arg1 : i32 to index
      %c0_12 = arith.constant 0 : index
      %c0_13 = arith.constant 0 : index
      %25 = vector.load %arg7[%24, %c0_12, %c0_13] : memref<5x336x128xbf16, #tpu.memory_space<vmem>>, vector<1x336x128xbf16>
      %26 = vector.shape_cast %25 : vector<1x336x128xbf16> to vector<336x128xbf16>
      %27 = arith.extf %26 : vector<336x128xbf16> to vector<336x128xf32>
      %28 = vector.broadcast %20 : vector<1x128xf32> to vector<336x128xf32>
      %29 = arith.mulf %27, %28 : vector<336x128xf32>
      %30 = vector.broadcast %23 : vector<1x128xf32> to vector<336x128xf32>
      %31 = arith.addf %29, %30 : vector<336x128xf32>
      %cst_14 = arith.constant 0.000000e+00 : f32
      %32 = vector.broadcast %cst_14 : f32 to vector<336x128xf32>
      %33 = arith.maximumf %31, %32 : vector<336x128xf32>
      %34 = arith.truncf %33 : vector<336x128xf32> to vector<336x128xbf16>
      %c0_15 = arith.constant 0 : index
      %c0_16 = arith.constant 0 : index
      %c0_17 = arith.constant 0 : index
      %35 = vector.load %arg6[%c0_15, %c0_16, %c0_17] : memref<1x336x128xbf16, #tpu.memory_space<vmem>>, vector<1x336x128xbf16>
      %36 = vector.shape_cast %35 : vector<1x336x128xbf16> to vector<336x128xbf16>
      %37 = vector.shape_cast %34 : vector<336x128xbf16> to vector<1x336x128xbf16>
      tpu.vector_store %arg6[%c0_15, %c0_16, %c0_17], %37 {strides = array<i32>} : memref<1x336x128xbf16, #tpu.memory_space<vmem>>, vector<1x336x128xbf16>,
    } else {
    }
    return
  }
  func.func @transform_0(%arg0: i32, %arg1: i32) -> (i32, i32, i32) {
    %c1_i32 = arith.constant 1 : i32
    %0 = arith.subi %c1_i32, %arg0 : i32
    %1 = arith.muli %arg1, %0 : i32
    %c0_i32 = arith.constant 0 : i32
    %c0_i32_0 = arith.constant 0 : i32
    %c0_i32_1 = arith.constant 0 : i32
    return %1, %c0_i32, %c0_i32_0 : i32, i32, i32
  }
  func.func @transform_1(%arg0: i32, %arg1: i32) -> (i32, i32, i32) {
    %c0_i32 = arith.constant 0 : i32
    %c0_i32_0 = arith.constant 0 : i32
    %c0_i32_1 = arith.constant 0 : i32
    %c0_i32_2 = arith.constant 0 : i32
    return %c0_i32, %c0_i32_0, %c0_i32_1 : i32, i32, i32
  }
  func.func @transform_2(%arg0: i32, %arg1: i32) -> (i32, i32) {
    %c0_i32 = arith.constant 0 : i32
    %c0_i32_0 = arith.constant 0 : i32
    %c0_i32_1 = arith.constant 0 : i32
    return %c0_i32, %c0_i32_0 : i32, i32
  }
  func.func @transform_3(%arg0: i32, %arg1: i32) -> (i32, i32) {
    %c0_i32 = arith.constant 0 : i32
    %c0_i32_0 = arith.constant 0 : i32
    %c0_i32_1 = arith.constant 0 : i32
    return %c0_i32, %c0_i32_0 : i32, i32
  }
  func.func @transform_4(%arg0: i32, %arg1: i32) -> (i32, i32, i32) {
    %0 = arith.muli %arg1, %arg0 : i32
    %c0_i32 = arith.constant 0 : i32
    %c0_i32_0 = arith.constant 0 : i32
    %c0_i32_1 = arith.constant 0 : i32
    return %0, %c0_i32, %c0_i32_0 : i32, i32, i32
  }
}

</mosaic_0001>

<bundles_post_ra>
// kernel: tpu_custom_call.1
= control target key start
LH: loop header
LB: loop body
LE: loop exit
PB: predicated region body
PF: predicated region fallthrough
CT: control target
= control target key end

     0   :  { %s12060_s0 = inlined_call_operand.hbm [shape: bf16[5,462,128], index: 0, kind: input, shape index: {}]   ;;  %s12061_s1 = inlined_call_operand.hbm [shape: bf16[9,128,128], index: 1, kind: input, shape index: {}]   ;;  %s12062_s2 = inlined_call_operand.vmem [shape: f32[1,128], index: 2, kind: input, shape index: {}]   ;;  %s12063_s3 = inlined_call_operand.vmem [shape: f32[1,128], index: 3, kind: input, shape index: {}]   ;;  %s12064_s4 = inlined_call_operand.hbm [shape: bf16[5,336,128], index: 4, kind: output, shape index: {}]  }
   0x1   :  { %12082 = sst [smem:[#allocation27_spill]] %s12061_s1 }
   0x2   :  { %12083 = sst [smem:[#allocation28_spill]] %s12063_s3 }
   0x3   :  { %12084 = sst [smem:[#allocation29_spill]] %s12064_s4 }
   0x4   :  { %9 = vsyncpa [#allocation6], 0 }
   0x5   :  { %11 = vsyncpa [#allocation6 + $0x1], 0 }
   0x6   :  { %12 = vsyncpa [#allocation9], 0 }
   0x7   :  { %13 = vsyncpa [#allocation7], 0 }
   0x8   :  { %15 = vsyncpa [#allocation7 + $0x1], 0  ;;  %s8873_s15 = smov 0   ;;  %s8875_s16 = smov 0  }
   0x9   :  { %s8877_s17 = smov 0   ;;  %s8879_s18 = smov 0  }
   0xa   :  { %s8881_s19 = smov 0   ;;  %s8883_s20 = smov 0  }
   0xb   :  { %s8885_s21 = smov 0   ;;  %s8887_s22 = smov 0  }
   0xc   :  { %s8889_s23 = smov 0   ;;  %s8891_s24 = smov 0  }
   0xd   :  { %s8893_s25 = smov 0  }
   0xe LB: > { %12085 = sst [smem:[#allocation14_spill]] %s8795_s15  ;;  %s6058_s26 = sadd.s32 4294967295, %s8835_s25   ;;  %s8835_s25 = sphi %s8893_s25, %s21_s25   ;;  %s8831_s24 = sphi %s8891_s24, %s12294_s24   ;;  %s8827_s23 = sphi %s8889_s23, %s12301_s23   ;;  %s8823_s22 = sphi %s8887_s22, %s12292_s22   ;;  %s8819_s21 = sphi %s8885_s21, %s12291_s21   ;;  %s8815_s20 = sphi %s8883_s20, %s12300_s20   ;;  %s8811_s19 = sphi %s8881_s19, %s12299_s19   ;;  %s8807_s18 = sphi %s8879_s18, %s12298_s18   ;;  %s8803_s17 = sphi %s8877_s17, %s12297_s17   ;;  %s8799_s16 = sphi %s8875_s16, %s12296_s16   ;;  %s8795_s15 = sphi %s8873_s15, %s12295_s15  }
   0xf   : > { %12086 = sst [smem:[#allocation15_spill]] %s8827_s23  ;;  %s6059_s27 = sadd.s32 4294967294, %s8835_s25  }
  0x10   : > { %12087 = sst [smem:[#allocation16_spill]] %s8831_s24  ;;  %p57_p0 = scmp.ne.s32.totalorder %s8811_s19, %s8807_s18 }
  0x11   : > { %p8929_p1 = scmp.eq.s32.totalorder %s6058_s26, 0  ;;  %p145_p2 = scmp.ne.s32.totalorder %s8803_s17, %s8799_s16 }
  0x12   : > { %p146_p4 = scmp.eq.s32.totalorder %s6058_s26, 9  ;;  %p151_p5 = scmp.ne.s32.totalorder %s8799_s16, %s8795_s15 }
  0x13   : > { %s12088_s28 = scalar_select %p8929_p1, 1, 0 }
  0x14   : > { %p8938_p3 = por %p8929_p1, %p57_p0  ;;  %p152_p6 = scmp.eq.s32.totalorder %s6059_s27, 9 }
  0x15   : > { %p8944_p7 = por %p146_p4, %p145_p2  ;;  %p6060_p8 = scmp.ge.s32.totalorder %s8835_s25, 1 }
  0x16   : > { %s12089_s30 = scalar_select %p8938_p3, 1, 0 }
  0x17   : > { %s12090_s5 = scalar_select %p8944_p7, 1, 0 }
  0x18   : > { %p8949_p9 = por %p152_p6, %p151_p5  ;;  %p159_p10 = scmp.lt.s32.totalorder %s8835_s25, 11 }
  0x19   : > { %12091 = sst [smem:[#allocation17_spill]] %s12090_s5  ;;  %s8837_s8 = smov [#allocation8]  }
  0x1a   : > { %s12092_s6 = scalar_select %p8949_p9, 1, 0 }
  0x1b   : > { %p8954_p11 = pnand %p6060_p8, %p159_p10  ;;  %s171_s9 = sshll.u32 %s8837_s8, 4  ;;  %s172_s9 = int_to_ptr.vmem [resolvable:$true] %s171_s9 }
  0x1c   : > { %12093 = sst [smem:[#allocation18_spill]] %s12092_s6 }
  0x1d   : > { %s12094_s7 = scalar_select %p8954_p11, 1, 0 }
  0x1e   : > { %p8332_p12 = pneg %p8954_p11  ;;  %s12096_s1 = sld [smem:[#allocation27_spill]] }
  0x20   : > { %p8962_p13 = pnand %p8332_p12, %p8929_p1 }
  0x22   : > { %p8653_p2 = pneg %p8962_p13 }
  0x24   : > { %s8651_s13 = scalar_lea.hbm %s12096_s1, 9216 }
  0x25   : > { %p8652_p0 = scmp.ne.s32.totalorder %s12096_s1, %s8651_s13  ;;  %p8658_p6 = scmp.lt.u32.totalorder %s8651_s13, %s12096_s1 }
  0x27   : > { %p8654_p4 = pnand %p8653_p2, %p8652_p0 }
  0x29   : > { %p8655_p5 = pneg %p8654_p4 }
  0x2b   : > { %p8660_p8 = pnand %p8658_p6, %p8655_p5 }
  0x2d   : > { %8663 = shalt.err (!%p8660_p8)
}
  0x2e   : > { %s8664_s8 = scalar_lea.vmem %s172_s9, 9216  ;;  %p8672_p7 = scmp.lt.s32.totalorder %s172_s9, %s172_s9 }
  0x2f   : > { %p8665_p10 = scmp.ne.s32.totalorder %s172_s9, %s8664_s8  ;;  %p8673_p1 = scmp.lt.s32.totalorder %s8664_s8, %s8664_s8 }
  0x31   : > { %p8667_p12 = pnand %p8665_p10, %p8653_p2  ;;  %p8674_p3 = por %p8673_p1, %p8672_p7 }
  0x33   : > { %p8668_p9 = pneg %p8667_p12 }
  0x35   : > { %p8675_p11 = pnand %p8674_p3, %p8668_p9 }
  0x37   : > { %8678 = shalt.err (!%p8675_p11)
}
  0x38   : > { %s12070_s11 = smov 64   ;;  %s12071_s12 = smov 4  }
  0x39   : > { %8335 = dma.hbm_to_vmem [thread:$0]  (!%p8962_p13), %s12096_s1, 9216, %s172_s9, [#allocation9], %s12070_s11, %s12070_s11, %s12071_s12  }
  0x3a   : > { %s30_s18 = sadd.s32 1, %s8827_s23  ;;  %s33_s26 = sadd.s32 1, %s8831_s24 }
  0x3b   : > { %p31_p1 = scmp.ge.s32.totalorder %s30_s18, 5  ;;  %s37_s27 = ssub.s32 1, %s8831_s24 }
  0x3c   : > { %s44_s8 = sadd.s32 1, %s8815_s20  ;;  %s38_s29 = smul.u32 %s8827_s23, %s37_s27 }
  0x3d   : > { %s12303_s18 = smov (%p31_p1, %s30_s18), 0  ;;  %s12305_s26 = smov (!%p31_p1, %s33_s26), %s8831_s24 }
  0x3e   : > { %p51_p3 = scmp.ne.s32.totalorder %s8815_s20, %s8811_s19  ;;  %p35_p7 = scmp.ge.s32.totalorder %s12305_s26, 2 }
  0x3f   : > { %p52_p9 = scmp.eq.s32.totalorder %s8835_s25, 0  ;;  %s130_s10 = smul.u32 %s8827_s23, %s8831_s24 }
  0x40   : > { %p8345_p11 = scmp.lt.s32.totalorder %s8835_s25, 10  ;;  %s12307_s26 = smov (%p35_p7, %s12305_s26), 0 }
  0x41   : > { %12097 = sst [smem:[#allocation19_spill]] %s12307_s26  ;;  %p9001_p13 = por %p52_p9, %p51_p3 }
  0x42   : > { %s191_s13 = sand.u32 1, %s8815_s20   ;;  %s39_s14 = ssub.s32 1, %s12307_s26 }
  0x43   : > { %s131_s27 = smul.u32 %s12307_s26, %s12303_s18  ;;  %s12099_s24 = sadd.s32 1, %s8803_s17 }
  0x44   : > { %s40_s11 = smul.u32 %s39_s14, %s12303_s18  ;;  %p9024_p4 = pnand %p8345_p11, %p9001_p13 }
  0x45   : > { %s132_s12 = ssub.s32 %s130_s10, %s131_s27  ;;  %s8235_s1 = smul.u32 232, %s191_s13 }
  0x46   : > { %s41_s6 = ssub.s32 %s38_s29, %s40_s11  ;;  %p133_p0 = scmp.eq.s32.totalorder %s132_s12, 0 }
  0x47   : > { %p42_p2 = scmp.eq.s32.totalorder %s41_s6, 0  ;;  %s8236_s4 = smul.u32 3712, %s38_s29 }
  0x48   : > { %s9013_s23 = scalar_select %p133_p0, %s8803_s17, %s12099_s24  }
  0x49   : > { %s9016_s15 = scalar_select %p42_p2, %s8815_s20, %s44_s8  }
  0x4a   : > { %s195_s5 = scalar_lea.vmem [#allocation5], %s8235_s1  ;;  %s9031_s24 = scalar_lea.hbm %s12060_s0, %s8236_s4 }
  0x4b   : > { %s204_s3 = sshll.u32 %s195_s5, 4  ;;  %s9033_s1 = scalar_lea.sflag [#allocation6], %s191_s13  ;;  %s9018_s3 = int_to_ptr.vmem [resolvable:$true] %s204_s3 }
  0x4c   : > { %s8679_s29 = scalar_lea.hbm %s9031_s24, 3712  ;;  %p8681_p6 = pneg %p9024_p4 }
  0x4d   : > { %p8680_p5 = scmp.ne.s32.totalorder %s9031_s24, %s8679_s29  ;;  %s8684_s12 = scalar_lea.hbm %s12060_s0, 18560 }
  0x4e   : > { %p8685_p12 = scmp.lt.u32.totalorder %s9031_s24, %s12060_s0  ;;  %p8686_p1 = scmp.lt.u32.totalorder %s8684_s12, %s8679_s29 }
  0x4f   : > { %p8682_p8 = pnand %p8681_p6, %p8680_p5  ;;  %p8688_p7 = scmp.lt.u32.totalorder %s8679_s29, %s9031_s24 }
  0x50   : > { %p8687_p3 = por %p8686_p1, %p8685_p12 }
  0x51   : > { %p8683_p10 = pneg %p8682_p8 }
  0x52   : > { %p8689_p9 = por %p8688_p7, %p8687_p3 }
  0x54   : > { %p8690_p11 = pnand %p8689_p9, %p8683_p10 }
  0x56   : > { %8693 = shalt.err (!%p8690_p11)
}
  0x57   : > { %s8694_s9 = scalar_lea.vmem %s9018_s3, 3712  ;;  %s8840_s13 = smov [#allocation5]  }
  0x58   : > { %p8695_p13 = scmp.ne.s32.totalorder %s9018_s3, %s8694_s9  ;;  %s8699_s14 = sshll.u32 %s8840_s13, 4  ;;  %s8700_s14 = int_to_ptr.vmem [resolvable:$false] %s8699_s14 }
  0x59   : > { %s8701_s27 = scalar_lea.vmem %s8700_s14, 7424  ;;  %p8702_p5 = scmp.lt.s32.totalorder %s9018_s3, %s8700_s14 }
  0x5a   : > { %p8697_p0 = pnand %p8695_p13, %p8681_p6  ;;  %p8703_p8 = scmp.lt.s32.totalorder %s8701_s27, %s8694_s9 }
  0x5c   : > { %p8698_p2 = pneg %p8697_p0  ;;  %p8704_p12 = por %p8703_p8, %p8702_p5 }
  0x5e   : > { %p8705_p1 = pnand %p8704_p12, %p8698_p2 }
  0x60   : > { %8708 = shalt.err (!%p8705_p1)
}
  0x61   : > { %s12101_s10 = smov 4   ;;  %s12102_s11 = smov 64  }
  0x62   : > { %8339 = dma.hbm_to_vmem [thread:$0]  (!%p9024_p4), %s9031_s24, 3712, %s9018_s3, %s9033_s1, %s12102_s11, %s12102_s11, %s12101_s10  }
  0x63   : > { %p12103_p6 = scmp.ne.s32.totalorder %s12094_s7, 0 }
  0x64   : > { %s218_s29 = sand.u32 (!%p12103_p6), 1, %s8811_s19   ;;  %p12104_p10 = scmp.ne.s32.totalorder (!%p12103_p6), %s12089_s30, 0 }
  0x65   : > { %216 = sbr.rel (%p12103_p6) target bundleno = 1255 (0x4e7), region = 36  ;;  %s219_s6 = scalar_lea.sflag (!%p12103_p6), [#allocation6], %s218_s29 }
  0x66   : > { %s8237_s5 = smul.u32 (!%p12103_p6), 232, %s218_s29 }
  0x68   : > { %s9067_s12 = scalar_lea.vmem (!%p12103_p6), [#allocation5], %s8237_s5 }
  0x6c   : > { %8782 = dma.done.wait (%p12104_p10), %s219_s6, 3712  }
  0x6d   : > { %8784 = vsyncadd (%p12104_p10), %s219_s6, 4294963584  ;;  %p12105_p3 = scmp.ne.s32.totalorder %s12088_s28, 0 }
  0x6f   : > { %8786 = dma.done.wait (%p12105_p3), [#allocation9], 9216  }
  0x70   : > { %8788 = vsyncadd (%p12105_p3), [#allocation9], 4294958080  ;;  %s248_s3 = sand.u32 1, %s8799_s16   ;;  %p6066_p4 = scmp.ne.s32.totalorder %s8823_s22, 0 }
  0x71   : > { %s8238_s7 = smul.u32 168, %s248_s3 }
  0x72   : > { %258 = sbr.rel (%p6066_p4) target bundleno = 1152 (0x480), region = 48 }
  0x73   : > { %s9080_s26 = scalar_lea.vmem [#allocation10], %s8238_s7 }
  0x79   : > { %p6067_p7 = scmp.ne.s32.totalorder %s8819_s21, 0 }
  0x7a   : > { %v8841_v0 = vmov (!%p6067_p7), 0.0  }
  0x7b   : > { %262 = sbr.rel (%p6067_p7) target bundleno = 130 (0x82), region = 52  ;;  %263 = vst [vmem:[#allocation3] sm:$0x1] (!%p6067_p7), %v8841_v0  ;;  %264 = vst [vmem:[#allocation4] sm:$0x1] (!%p6067_p7), %v8841_v0 }
  0x82 PF: > { %v8445_v1 = vld [vmem:[#allocation8 + $0x40] sm:$0xff]   ;;  %v8842_v2 = vmov 0.0   ;;  %v8447_v4 = vld [vmem:[#allocation8 + $0x48] sm:$0xff]   ;;  %vm8843_vm0 = vmmov 0   ;;  %v8449_v6 = vld [vmem:[#allocation8 + $0x50] sm:$0xff]   ;;  %vm2614_vm3 = vcmask 1045504  }
  0x83   : > { %6689 = vmatprep.subr.bf16.mxu1 %v8842_v2  ;;  %7089 = vmatprep.subr.bf16.mxu0 %v8842_v2  ;;  %v8446_v3 = vld [vmem:[#allocation8 + $0x100] sm:$0xff]   ;;  %v8448_v5 = vld [vmem:[#allocation8 + $0x108] sm:$0xff]   ;;  %v8450_v7 = vld [vmem:[#allocation8 + $0x110] sm:$0xff]   ;;  %vm449_vm1 = vsmask.f32 7424  ;;  %vm1183_vm4 = vcmask 1046528  }
  0x84   : > { %6690 = vmatpush3.bf16.msra.mxu1 %v8445_v1  ;;  %6705 = vmatprep.mubr.msk.bf16.mxu1 %vm8843_vm0, %v8842_v2  ;;  %v8451_v8 = vld [vmem:[#allocation8 + $0x58] sm:$0xff]   ;;  %v8453_v10 = vld [vmem:[#allocation8 + $0x60] sm:$0xff]   ;;  %v8455_v12 = vld [vmem:[#allocation8 + $0x68] sm:$0xff]   ;;  %vm2083_vm2 = vsmask.f32 6400  ;;  %vm4045_vm6 = vcmask 1044480  }
  0x85   : > { %7090 = vmatpush3.bf16.msra.mxu0 %v8446_v3  ;;  %6691 = vmatprep.subr.bf16.mxu1 %v8842_v2  ;;  %v8452_v9 = vld [vmem:[#allocation8 + $0x118] sm:$0xff]   ;;  %v8454_v11 = vld [vmem:[#allocation8 + $0x120] sm:$0xff]   ;;  %v9108_v19 = vld [vmem:[%s9067_s12 + $0x18] sm:$0xf]  ;;  %vm3514_vm5 = vsmask.f32 5376 }
  0x86   : > { %7091 = vmatprep.subr.bf16.mxu0 %v8842_v2  ;;  %7105 = vmatprep.mubr.msk.bf16.mxu0 %vm8843_vm0, %v8842_v2  ;;  %v265_v13 = vld [vmem:[%s9067_s12] sm:$0xf]  ;;  %v266_v14 = vld [vmem:[%s9067_s12 + $0x4] sm:$0xf]  ;;  %v8462_v16 = vld [vmem:[%s9067_s12 + $0x8] sm:$0xff]   ;;  %s6259_s28 = smul.u32 168, %s8819_s21 }
  0x87   : > { %v9100_v15 = vcombine.low %v265_v13, %v266_v14  ;;  %v9104_v17 = vld [vmem:[%s9067_s12 + $0x1c] sm:$0xff]   ;;  %v1539_v18 = vld [vmem:[%s9067_s12 + $0x14] sm:$0xe]  ;;  %v458_v31 = vshll.u32 %v8462_v16, 16  ;;  %v9124_v36 = vld [vmem:[%s9067_s12 + $0x24] sm:$0xff]   ;;  %v462_v48 = vshrl.u32 %v8462_v16, 16 }
  0x88   : > { %6692 = vmatpush3.bf16.msra.mxu1 %v8447_v4  ;;  %v8456_v20 = vld [vmem:[#allocation8 + $0x128] sm:$0xff]   ;;  %v9113_v22 = vcombine.low %v1539_v18, %v9108_v19  ;;  %v8457_v23 = vld [vmem:[#allocation8 + $0x70] sm:$0xff]   ;;  %v2093_v24 = vshrl.u32 %v9104_v17, 16  ;;  %v2096_v25 = vshll.u32 %v9104_v17, 16  ;;  %v8459_v37 = vld [vmem:[#allocation8 + $0x78] sm:$0xff]   ;;  %v2102_v41 = vshrl.u32 %v9124_v36, 16 }
  0x89   : > { %7092 = vmatpush3.bf16.msra.mxu0 %v8448_v5  ;;  %6693 = vmatprep.subr.bf16.mxu1 %v8842_v2  ;;  %v453_v21 = vshll.u32 %v9100_v15, 16  ;;  %v8458_v26 = vld [vmem:[#allocation8 + $0x130] sm:$0xff]   ;;  %v451_v27 = vshrl.u32 %v9100_v15, 16  ;;  %v460_v39 = vrot.slane %v458_v31, 1  ;;  %v8466_v40 = vld [vmem:[%s9067_s12 + $0x10] sm:$0xff]   ;;  %v8460_v42 = vld [vmem:[#allocation8 + $0x138] sm:$0xff]  }
  0x8a   : > { %7093 = vmatprep.subr.bf16.mxu0 %v8842_v2  ;;  %v2085_v28 = vshrl.u32 %v9113_v22, 16  ;;  %v2088_v29 = vshll.u32 %v9113_v22, 16  ;;  %v2095_v34 = vrot.slane %v2093_v24, 1  ;;  %v2098_v35 = vrot.slane %v2096_v25, 2  ;;  %v8465_v47 = vld [vmem:[#allocation8 + $0x140] sm:$0xff]   ;;  %v8470_v57 = vld [vmem:[%s9067_s12 + $0x18] sm:$0xff]  }
  0x8b   : > { %v455_v30 = vrot.slane %v453_v21, 1  ;;  %v2105_v45 = vshll.u32 %v9124_v36, 16  ;;  %v466_v49 = vshll.u32 %v8466_v40, 16  ;;  %v2104_v50 = vrot.slane %v2102_v41, 1  ;;  %v9135_v53 = vld [vmem:[%s9067_s12 + $0x2c] sm:$0xff]   ;;  %v8472_v0 = vld [vmem:[#allocation8 + $0x150] sm:$0xff]  }
  0x8c   : > { %6694 = vmatpush3.bf16.msra.mxu1 %v8449_v6  ;;  %v2087_v32 = vrot.slane %v2085_v28, 1  ;;  %v2090_v33 = vrot.slane %v2088_v29, 2  ;;  %v2099_v44 = vor.u32 %v2098_v35, %v2095_v34  ;;  %v8468_v54 = vld [vmem:[#allocation8] sm:$0xff]   ;;  %v464_v55 = vor.u32 %v462_v48, %v460_v39  ;;  %v8469_v59 = vld [vmem:[#allocation8 + $0x148] sm:$0xff]   ;;  %v8478_v14 = vld [vmem:[#allocation8 + $0x158] sm:$0xff]   ;;  %s10626_s30 = scalar_lea.vmem [#allocation2], %s6259_s28 }
  0x8d   : > { %7094 = vmatpush3.bf16.msra.mxu0 %v8450_v7  ;;  %6695 = vmatprep.subr.bf16.mxu1 %v8842_v2  ;;  %v456_v38 = vor.u32 %v455_v30, %v451_v27  ;;  %v2107_v52 = vrot.slane %v2105_v45, 2  ;;  %v468_v56 = vrot.slane %v466_v49, 1  ;;  %v2111_v60 = vshrl.u32 %v9135_v53, 16  ;;  %v8475_v62 = vld [vmem:[#allocation8 + $0x8] sm:$0xff]   ;;  %v8484_v16 = vld [vmem:[#allocation8 + $0x10] sm:$0xff]   ;;  %v8481_v27 = vld [vmem:[#allocation8 + $0x160] sm:$0xff]  }
  0x8e   : > { %7095 = vmatprep.subr.bf16.mxu0 %v8842_v2  ;;  %v2091_v43 = vor.u32 %v2090_v33, %v2087_v32  ;;  %v2114_v61 = vshll.u32 %v9135_v53, 16  ;;  %v470_v63 = vshrl.u32 %v8466_v40, 16  ;;  %v474_v3 = vshll.u32 %v8470_v57, 16  ;;  %v9149_v4 = vld [vmem:[%s9067_s12 + $0x34] sm:$0xff]   ;;  %v8476_v28 = vld [vmem:[%s9067_s12 + $0x28] sm:$0xff]  }
  0x8f   : > { %v461_v46 = vsel %vm449_vm1, %v456_v38, %v460_v39  ;;  %v2108_v58 = vor.u32 %v2107_v52, %v2104_v50  ;;  %v469_v1 = vsel %vm449_vm1, %v464_v55, %v468_v56  ;;  %v2113_v6 = vrot.slane %v2111_v60, 1  ;;  %v8487_v34 = vld [vmem:[#allocation8 + $0x168] sm:$0xff]   ;;  %v8492_v38 = vld [vmem:[#allocation8 + $0x18] sm:$0xff]  }
  0x90   : > { %6696 = vmatpush3.bf16.msra.mxu1 %v8451_v8  ;;  %v2100_v51 = vsel %vm2083_vm2, %v2091_v43, %v2099_v44  ;;  %v2116_v7 = vrot.slane %v2114_v61, 2  ;;  %v472_v8 = vor.u32 %v470_v63, %v468_v56  ;;  %v2123_v13 = vshll.u32 %v9149_v4, 16  ;;  %v9180_v43 = vld [vmem:[%s9067_s12 + $0x44] sm:$0xff]   ;;  %v9195_v60 = vld [vmem:[%s9067_s12 + $0x4c] sm:$0xff]   ;;  %v9202_v63 = vld [vmem:[%s9067_s12 + $0x38] sm:$0xff]  }
  0x91   : > { %7096 = vmatpush3.bf16.msra.mxu0 %v8452_v9  ;;  %6697 = vmatprep.subr.bf16.mxu1 %v8842_v2  ;;  %v2109_v5 = vsel %vm2083_vm2, %v2099_v44, %v2108_v58  ;;  %v476_v9 = vrot.slane %v474_v3, 1  ;;  %v478_v18 = vshrl.u32 %v8470_v57, 16  ;;  %v8490_v44 = vld [vmem:[#allocation8 + $0x170] sm:$0xff]   ;;  %v2138_v49 = vshrl.u32 %v9180_v43, 16  ;;  %v8500_v56 = vld [vmem:[#allocation8 + $0x20] sm:$0xff]  }
  0x92   : > { %7097 = vmatprep.subr.bf16.mxu0 %v8842_v2  ;;  %v2141_v50 = vshll.u32 %v9180_v43, 16  ;;  %v494_v52 = vshrl.u32 %v8476_v28, 16  ;;  %v2150_v3 = vshll.u32 %v9195_v60, 16 }
  0x93   : > { %v480_v29 = vor.u32 %v478_v18, %v476_v9 }
  0x94   : > { %6698 = vmatpush3.bf16.msra.mxu1 %v8453_v10  ;;  %v8473_v10 = vld [vmem:[%s9067_s12 + $0x20] sm:$0xff]  }
  0x95   : > { %7098 = vmatpush3.bf16.msra.mxu0 %v8454_v11  ;;  %6699 = vmatprep.subr.bf16.mxu1 %v8842_v2  ;;  %v2120_v11 = vshrl.u32 %v9149_v4, 16  ;;  %v482_v21 = vshll.u32 %v8473_v10, 16  ;;  %v486_v35 = vshrl.u32 %v8473_v10, 16 }
  0x96   : > { %7099 = vmatprep.subr.bf16.mxu0 %v8842_v2 }
  0x97   : > { %v2122_v25 = vrot.slane %v2120_v11, 1  ;;  %v484_v30 = vrot.slane %v482_v21, 1 }
  0x98   : > { %6700 = vmatpush3.bf16.msra.mxu1 %v8455_v12  ;;  %v2117_v12 = vor.u32 %v2116_v7, %v2113_v6 }
  0x99   : > { %7100 = vmatpush3.bf16.msra.mxu0 %v8456_v20  ;;  %6701 = vmatprep.subr.bf16.mxu1 %v8842_v2  ;;  %v477_v20 = vsel %vm449_vm1, %v472_v8, %v476_v9  ;;  %v485_v39 = vsel %vm449_vm1, %v480_v29, %v484_v30  ;;  %v506_v8 = vshll.u32 %v9202_v63, 16  ;;  %v9211_v9 = vld [vmem:[%s9067_s12 + $0x54] sm:$0xff]   ;;  %v510_v29 = vshrl.u32 %v9202_v63, 16 }
  0x9a   : > { %7101 = vmatprep.subr.bf16.mxu0 %v8842_v2  ;;  %v2118_v24 = vsel %vm2083_vm2, %v2108_v58, %v2117_v12  ;;  %v2140_v58 = vrot.slane %v2138_v49, 1 }
  0x9b   : > { %v508_v18 = vrot.slane %v506_v8, 1 }
  0x9c   : > { %6702 = vmatpush3.bf16.msra.mxu1 %v8457_v23  ;;  %v9164_v23 = vld [vmem:[%s9067_s12 + $0x3c] sm:$0xff]  }
  0x9d   : > { %7102 = vmatpush3.bf16.msra.mxu0 %v8458_v26  ;;  %6703 = vmatprep.subr.bf16.mxu1 %v8842_v2  ;;  %v2125_v26 = vrot.slane %v2123_v13, 2  ;;  %v2129_v31 = vshrl.u32 %v9164_v23, 16  ;;  %v2132_v33 = vshll.u32 %v9164_v23, 16  ;;  %v9215_v13 = vld [vmem:[%s9067_s12 + $0x40] sm:$0xff]  }
  0x9e   : > { %7103 = vmatprep.subr.bf16.mxu0 %v8842_v2 }
  0x9f   : > { %v2126_v32 = vor.u32 %v2125_v26, %v2122_v25  ;;  %v2131_v41 = vrot.slane %v2129_v31, 1  ;;  %v9225_v25 = vld [vmem:[%s9067_s12 + $0x48] sm:$0xff]   ;;  %v514_v26 = vshll.u32 %v9215_v13, 16 }
  0xa0   : > { %6704 = vmatpush3.bf16.msra.mxu1 %v8459_v37  ;;  %v490_v37 = vshll.u32 %v8476_v28, 16 }
  0xa1   : > { %7104 = vmatpush3.bf16.msra.mxu0 %v8460_v42  ;;  %6789 = vmatprep.subr.bf16.mxu1 %v8842_v2  ;;  %v2127_v40 = vsel %vm2083_vm2, %v2117_v12, %v2126_v32  ;;  %v2134_v42 = vrot.slane %v2132_v33, 2  ;;  %v2152_v12 = vrot.slane %v2150_v3, 2  ;;  %v9236_v33 = vld [vmem:[%s9067_s12 + $0x64] sm:$0xff]  }
  0xa2   : > { %7189 = vmatprep.subr.bf16.mxu0 %v8842_v2  ;;  %v492_v45 = vrot.slane %v490_v37, 1  ;;  %v522_v37 = vshll.u32 %v9225_v25, 16  ;;  %v9270_v3 = vld [vmem:[%s9067_s12 + $0x60] sm:$0xff]  }
  0xa3   : > { %6706 = vmatmul.mubr.bf16.vlgmr.msra.gmra.mrb[0].mxu1 %v461_v46  ;;  %v8479_v46 = vld [vmem:[%s9067_s12 + $0x30] sm:$0xff]   ;;  %v2135_v48 = vor.u32 %v2134_v42, %v2131_v41 }
  0xa4   : > { %7106 = vmatmul.mubr.bf16.vlgmr.msra.gmra.mrb[0].mxu0 %v2100_v51  ;;  %6709 = vmatprep.mubr.msk.bf16.mxu1 %vm8843_vm0, %v8842_v2  ;;  %v8494_v51 = vld [vmem:[#allocation8 + $0x178] sm:$0xff]   ;;  %v498_v55 = vshll.u32 %v8479_v46, 16  ;;  %v496_v61 = vor.u32 %v494_v52, %v492_v45  ;;  %v502_v7 = vshrl.u32 %v8479_v46, 16  ;;  %v9244_v41 = vld [vmem:[%s9067_s12 + $0x50] sm:$0xff]   ;;  %v2174_v46 = vshrl.u32 %v9236_v33, 16 }
  0xa5   : > { %7190 = vmatpush3.bf16.msra.mxu0 %v8465_v47  ;;  %7109 = vmatprep.mubr.msk.bf16.mxu0 %vm8843_vm0, %v8842_v2  ;;  %v488_v47 = vor.u32 %v486_v35, %v484_v30  ;;  %v2136_v57 = vsel %vm2083_vm2, %v2126_v32, %v2135_v48  ;;  %v516_v35 = vrot.slane %v514_v26, 1  ;;  %v2593_v26 = vld [vmem:[%s9067_s12 + $0x14] sm:$0xc] }
  0xa6   : > { %6790 = vmatpush3.bf16.msra.mxu1 %v8468_v54  ;;  %7191 = vmatprep.subr.bf16.mxu0 %v8842_v2 }
  0xa7   : > { %6791 = vmatprep.subr.bf16.mxu1 %v8842_v2  ;;  %v493_v54 = vsel %vm449_vm1, %v488_v47, %v492_v45  ;;  %v526_v45 = vshrl.u32 %v9225_v25, 16  ;;  %v524_v47 = vrot.slane %v522_v37, 1  ;;  %v9296_v37 = vld [vmem:[%s9067_s12 + $0x68] sm:$0xff]  }
  0xa9   : > { %7192 = vmatpush3.bf16.msra.mxu0 %v8469_v59  ;;  %v2143_v59 = vrot.slane %v2141_v50, 2 }
  0xaa   : > { %7193 = vmatprep.subr.bf16.mxu0 %v8842_v2  ;;  %6792 = vmatpush3.bf16.msra.mxu1 %v8475_v62  ;;  %v500_v62 = vrot.slane %v498_v55, 1  ;;  %v2177_v55 = vshll.u32 %v9236_v33, 16 }
  0xab   : > { %6710 = vmatmul.mubr.bf16.gmra.mrb[4].mxu1 %v469_v1  ;;  %6793 = vmatprep.subr.bf16.mxu1 %v8842_v2  ;;  %v2147_v1 = vshrl.u32 %v9195_v60, 16 }
  0xac   : > { %7110 = vmatmul.mubr.bf16.gmra.mrb[4].mxu0 %v2109_v5  ;;  %6713 = vmatprep.mubr.msk.bf16.mxu1 %vm8843_vm0, %v8842_v2  ;;  %v8505_v5 = vld [vmem:[#allocation8 + $0x28] sm:$0xff]   ;;  %v501_v6 = vsel %vm449_vm1, %v496_v61, %v500_v62 }
  0xad   : > { %7113 = vmatprep.mubr.msk.bf16.mxu0 %vm8843_vm0, %v8842_v2  ;;  %7194 = vmatpush3.bf16.msra.mxu0 %v8472_v0  ;;  %v2144_v0 = vor.u32 %v2143_v59, %v2140_v58  ;;  %v2149_v11 = vrot.slane %v2147_v1, 1  ;;  %v2179_v59 = vrot.slane %v2177_v55, 2  ;;  %v9264_v61 = vld [vmem:[%s9067_s12 + $0x6c] sm:$0xff]  }
  0xae   : > { %7195 = vmatprep.subr.bf16.mxu0 %v8842_v2  ;;  %6794 = vmatpush3.bf16.msra.mxu1 %v8484_v16  ;;  %v504_v16 = vor.u32 %v502_v7, %v500_v62  ;;  %v534_v7 = vshrl.u32 %v9244_v41, 16  ;;  %v2183_v8 = vshrl.u32 %v9264_v61, 16 }
  0xaf   : > { %6795 = vmatprep.subr.bf16.mxu1 %v8842_v2  ;;  %v2145_v10 = vsel %vm2083_vm2, %v2135_v48, %v2144_v0  ;;  %v2153_v21 = vor.u32 %v2152_v12, %v2149_v11 }
  0xb0   : > { %v509_v28 = vsel %vm449_vm1, %v504_v16, %v508_v18 }
  0xb1   : > { %7196 = vmatpush3.bf16.msra.mxu0 %v8478_v14  ;;  %v8509_v14 = vld [vmem:[#allocation8 + $0x30] sm:$0xff]   ;;  %v2154_v31 = vsel %vm2083_vm2, %v2144_v0, %v2153_v21 }
  0xb2   : > { %7197 = vmatprep.subr.bf16.mxu0 %v8842_v2  ;;  %6796 = vmatpush3.bf16.msra.mxu1 %v8492_v38 }
  0xb3   : > { %6714 = vmatmul.mubr.bf16.gmra.mrb[8].mxu1 %v477_v20  ;;  %6797 = vmatprep.subr.bf16.mxu1 %v8842_v2  ;;  %v2156_v20 = vshrl.u32 %v9211_v9, 16 }
  0xb4   : > { %7114 = vmatmul.mubr.bf16.gmra.mrb[8].mxu0 %v2118_v24  ;;  %6717 = vmatprep.mubr.msk.bf16.mxu1 %vm8843_vm0, %v8842_v2  ;;  %v2159_v24 = vshll.u32 %v9211_v9, 16 }
  0xb5   : > { %7117 = vmatprep.mubr.msk.bf16.mxu0 %vm8843_vm0, %v8842_v2  ;;  %7198 = vmatpush3.bf16.msra.mxu0 %v8481_v27  ;;  %v9230_v27 = vld [vmem:[%s9067_s12 + $0x5c] sm:$0xff]   ;;  %v2158_v30 = vrot.slane %v2156_v20, 1  ;;  %v2185_v20 = vrot.slane %v2183_v8, 1 }
  0xb6   : > { %7199 = vmatprep.subr.bf16.mxu0 %v8842_v2  ;;  %6798 = vmatpush3.bf16.msra.mxu1 %v8500_v56  ;;  %v2161_v32 = vrot.slane %v2159_v24, 2  ;;  %v2165_v38 = vshrl.u32 %v9230_v27, 16  ;;  %v9257_v56 = vld [vmem:[%s9067_s12 + $0x58] sm:$0xff]  }
  0xb7   : > { %6799 = vmatprep.subr.bf16.mxu1 %v8842_v2  ;;  %v538_v1 = vshll.u32 %v9257_v56, 16 }
  0xb8   : > { %v2162_v42 = vor.u32 %v2161_v32, %v2158_v30  ;;  %v2167_v48 = vrot.slane %v2165_v38, 1  ;;  %v2616_v30 = vrot.slane %v9104_v17, 2 }
  0xb9   : > { %7200 = vmatpush3.bf16.msra.mxu0 %v8487_v34  ;;  %v8514_v34 = vld [vmem:[#allocation8 + $0x38] sm:$0xff]   ;;  %v540_v12 = vrot.slane %v538_v1, 1 }
  0xba   : > { %7201 = vmatprep.subr.bf16.mxu0 %v8842_v2  ;;  %6800 = vmatpush3.bf16.msra.mxu1 %v8505_v5  ;;  %v2163_v52 = vsel %vm2083_vm2, %v2153_v21, %v2162_v42  ;;  %v528_v5 = vor.u32 %v526_v45, %v524_v47  ;;  %v8499_v45 = vld [vmem:[#allocation8 + $0x180] sm:$0xff]  }
  0xbb   : > { %6718 = vmatmul.mubr.bf16.gmra.mrb[12].mxu1 %v485_v39  ;;  %6801 = vmatprep.subr.bf16.mxu1 %v8842_v2  ;;  %v512_v39 = vor.u32 %v510_v29, %v508_v18  ;;  %v542_v29 = vshrl.u32 %v9257_v56, 16 }
  0xbc   : > { %7118 = vmatmul.mubr.bf16.gmra.mrb[12].mxu0 %v2127_v40  ;;  %6721 = vmatprep.mubr.msk.bf16.mxu1 %vm8843_vm0, %v8842_v2  ;;  %v2168_v40 = vshll.u32 %v9230_v27, 16 }
  0xbd   : > { %7121 = vmatprep.mubr.msk.bf16.mxu0 %vm8843_vm0, %v8842_v2  ;;  %7202 = vmatpush3.bf16.msra.mxu0 %v8490_v44  ;;  %v518_v44 = vshrl.u32 %v9215_v13, 16  ;;  %v517_v49 = vsel %vm449_vm1, %v512_v39, %v516_v35  ;;  %v544_v38 = vor.u32 %v542_v29, %v540_v12  ;;  %v550_v39 = vshrl.u32 %v9270_v3, 16 }
  0xbe   : > { %7203 = vmatprep.subr.bf16.mxu0 %v8842_v2  ;;  %6802 = vmatpush3.bf16.msra.mxu1 %v8509_v14  ;;  %v2170_v50 = vrot.slane %v2168_v40, 2  ;;  %v546_v14 = vshll.u32 %v9270_v3, 16  ;;  %v554_v40 = vshll.u32 %v9296_v37, 16  ;;  %v2624_v29 = vrot.slane %v9164_v23, 2 }
  0xbf   : > { %6803 = vmatprep.subr.bf16.mxu1 %v8842_v2 }
  0xc0   : > { %v2171_v58 = vor.u32 %v2170_v50, %v2167_v48 }
  0xc1   : > { %7204 = vmatpush3.bf16.msra.mxu0 %v8494_v51  ;;  %v530_v51 = vshll.u32 %v9244_v41, 16 }
  0xc2   : > { %7289 = vmatprep.subr.bf16.mxu0 %v8842_v2  ;;  %6804 = vmatpush3.bf16.msra.mxu1 %v8514_v34  ;;  %v2172_v0 = vsel %vm2083_vm2, %v2162_v42, %v2171_v58  ;;  %v548_v34 = vrot.slane %v546_v14, 1  ;;  %v9305_v42 = vld [vmem:[%s9067_s12 + $0x70] sm:$0xff]  }
  0xc3   : > { %6722 = vmatmul.mubr.bf16.gmra.mrb[16].mxu1 %v493_v54  ;;  %6889 = vmatprep.subr.bf16.mxu1 %v8842_v2  ;;  %v2176_v54 = vrot.slane %v2174_v46, 1  ;;  %v2618_v46 = vrot.slane %v9124_v36, 2  ;;  %v562_v50 = vshll.u32 %v9305_v42, 16  ;;  %v2620_v36 = vrot.slane %v9135_v53, 2 }
  0xc4   : > { %7122 = vmatmul.mubr.bf16.gmra.mrb[16].mxu0 %v2136_v57  ;;  %6725 = vmatprep.mubr.msk.bf16.mxu1 %vm8843_vm0, %v8842_v2  ;;  %v520_v57 = vor.u32 %v518_v44, %v516_v35  ;;  %v6154_v35 = vcombine.low %v2593_v26, %v9108_v19  ;;  %v549_v19 = vsel %vm449_vm1, %v544_v38, %v548_v34  ;;  %v9351_v26 = vld [vmem:[%s9067_s12 + $0x88] sm:$0xff]  }
  0xc5   : > { %7125 = vmatprep.mubr.msk.bf16.mxu0 %vm8843_vm0, %v8842_v2  ;;  %v2180_v11 = vor.u32 %v2179_v59, %v2176_v54  ;;  %v552_v48 = vor.u32 %v550_v39, %v548_v34  ;;  %v2619_v54 = vsel %vm2614_vm3, %v2616_v30, %v2618_v46  ;;  %v564_v55 = vrot.slane %v562_v50, 1  ;;  %v8513_v59 = vld [vmem:[#allocation8 + $0x198] sm:$0xff]  }
  0xc6   : > { %v525_v62 = vsel %vm449_vm1, %v520_v57, %v524_v47  ;;  %v2615_v17 = vrot.slane %v6154_v35, 2  ;;  %v8503_v47 = vld [vmem:[#allocation8 + $0x188] sm:$0xff]   ;;  %v8508_v57 = vld [vmem:[#allocation8 + $0x190] sm:$0xff]   ;;  %v586_v34 = vshll.u32 %v9351_v26, 16  ;;  %v2626_v39 = vrot.slane %v9180_v43, 2 }
  0xc7   : > { %v2181_v18 = vsel %vm2083_vm2, %v2171_v58, %v2180_v11  ;;  %v9321_v58 = vld [vmem:[%s9067_s12 + $0x78] sm:$0xff]   ;;  %v2628_v43 = vrot.slane %v9195_v60, 2  ;;  %v2630_v60 = vrot.slane %v9211_v9, 2  ;;  %v2632_v9 = vrot.slane %v9230_v27, 2 }
  0xc8   : > { %v2617_v44 = vsel %vm2614_vm3, %v2615_v17, %v2616_v30  ;;  %v570_v1 = vshll.u32 %v9321_v58, 16  ;;  %v8530_v30 = vld [vmem:[#allocation8 + $0x1b8] sm:$0xff]   ;;  %v588_v38 = vrot.slane %v586_v34, 1  ;;  %v9365_v17 = vld [vmem:[%s9067_s12 + $0x90] sm:$0xff]   ;;  %v2634_v27 = vrot.slane %v9236_v33, 2 }
  0xc9   : > { %v598_v50 = vshrl.u32 %v9365_v17, 16  ;;  %v8518_v33 = vld [vmem:[#allocation8 + $0x80] sm:$0xff]   ;;  %v8531_v34 = vld [vmem:[#allocation8 + $0x98] sm:$0xff]  }
  0xca   : > { %v572_v8 = vrot.slane %v570_v1, 1 }
  0xcb   : > { %6726 = vmatmul.mubr.bf16.gmra.mrb[20].mxu1 %v501_v6  ;;  %v532_v6 = vrot.slane %v530_v51, 1  ;;  %v558_v51 = vshrl.u32 %v9296_v37, 16 }
  0xcc   : > { %7126 = vmatmul.mubr.bf16.gmra.mrb[20].mxu0 %v2145_v10  ;;  %6729 = vmatprep.mubr.msk.bf16.mxu1 %vm8843_vm0, %v8842_v2  ;;  %v2186_v10 = vshll.u32 %v9264_v61, 16 }
  0xcd   : > { %7129 = vmatprep.mubr.msk.bf16.mxu0 %vm8843_vm0, %v8842_v2  ;;  %v533_v16 = vsel %vm449_vm1, %v528_v5, %v532_v6  ;;  %v536_v24 = vor.u32 %v534_v7, %v532_v6  ;;  %v2621_v5 = vsel %vm2614_vm3, %v2618_v46, %v2620_v36  ;;  %v8516_v6 = vld [vmem:[#allocation8 + $0x1a0] sm:$0xff]  }
  0xce   : > { %v2188_v21 = vrot.slane %v2186_v10, 2  ;;  %v9337_v10 = vld [vmem:[%s9067_s12 + $0x80] sm:$0xff]  }
  0xd3   : > { %6730 = vmatmul.mubr.bf16.gmra.mrb[24].mxu1 %v509_v28  ;;  %v9287_v28 = vor.u32 %v2188_v21, %v2185_v20  ;;  %v8525_v21 = vld [vmem:[#allocation8 + $0x1b0] sm:$0xff]  }
  0xd4   : > { %7130 = vmatmul.mubr.bf16.gmra.mrb[24].mxu0 %v2154_v31  ;;  %6733 = vmatprep.mubr.msk.bf16.mxu1 %vm8843_vm0, %v8842_v2  ;;  %v541_v31 = vsel %vm449_vm1, %v536_v24, %v540_v12  ;;  %v8521_v12 = vld [vmem:[#allocation8 + $0x1a8] sm:$0xff]  }
  0xd5   : > { %7133 = vmatprep.mubr.msk.bf16.mxu0 %vm8843_vm0, %v8842_v2  ;;  %v2190_v32 = vsel %vm2083_vm2, %v2180_v11, %v9287_v28  ;;  %v2622_v11 = vrot.slane %v9149_v4, 2 }
  0xd7   : > { %v2623_v20 = vsel %vm2614_vm3, %v2620_v36, %v2622_v11  ;;  %v2625_v35 = vsel %vm2614_vm3, %v2622_v11, %v2624_v29  ;;  %v2629_v36 = vsel %vm2614_vm3, %v2626_v39, %v2628_v43  ;;  %v2633_v11 = vsel %vm2614_vm3, %v2630_v60, %v2632_v9 }
  0xdb   : > { %6734 = vmatmul.mubr.bf16.gmra.mrb[28].mxu1 %v517_v49  ;;  %v556_v49 = vrot.slane %v554_v40, 1 }
  0xdc   : > { %7134 = vmatmul.mubr.bf16.gmra.mrb[28].mxu0 %v2163_v52  ;;  %6737 = vmatprep.mubr.msk.bf16.mxu1 %vm8843_vm0, %v8842_v2 }
  0xdd   : > { %7137 = vmatprep.mubr.msk.bf16.mxu0 %vm8843_vm0, %v8842_v2  ;;  %v557_v52 = vsel %vm449_vm1, %v552_v48, %v556_v49  ;;  %v9377_v48 = vld [vmem:[%s9067_s12 + $0x98] sm:$0xff]  }
  0xe3   : > { %6738 = vmatmul.mubr.bf16.gmra.mrb[32].mxu1 %v525_v62  ;;  %v560_v62 = vor.u32 %v558_v51, %v556_v49  ;;  %v602_v51 = vshll.u32 %v9377_v48, 16 }
  0xe4   : > { %7138 = vmatmul.mubr.bf16.gmra.mrb[32].mxu0 %v2172_v0  ;;  %6741 = vmatprep.mubr.msk.bf16.mxu1 %vm8843_vm0, %v8842_v2  ;;  %v566_v0 = vshrl.u32 %v9305_v42, 16 }
  0xe5   : > { %7141 = vmatprep.mubr.msk.bf16.mxu0 %vm8843_vm0, %v8842_v2  ;;  %v565_v53 = vsel %vm449_vm1, %v560_v62, %v564_v55 }
  0xe6   : > { %v568_v7 = vor.u32 %v566_v0, %v564_v55  ;;  %v9389_v55 = vld [vmem:[%s9067_s12 + $0xa0] sm:$0xff]  }
  0xe7   : > { %v610_v62 = vshll.u32 %v9389_v55, 16 }
  0xe8   : > { %v573_v14 = vsel %vm449_vm1, %v568_v7, %v572_v8  ;;  %v614_v7 = vshrl.u32 %v9389_v55, 16 }
  0xe9   : > { %v612_v1 = vrot.slane %v610_v62, 1 }
  0xeb   : > { %6742 = vmatmul.mubr.bf16.gmra.mrb[36].mxu1 %v533_v16  ;;  %v574_v16 = vshrl.u32 %v9321_v58, 16 }
  0xec   : > { %7142 = vmatmul.mubr.bf16.gmra.mrb[36].mxu0 %v2181_v18  ;;  %6745 = vmatprep.mubr.msk.bf16.mxu1 %vm8843_vm0, %v8842_v2  ;;  %v578_v18 = vshll.u32 %v9337_v10, 16 }
  0xed   : > { %7145 = vmatprep.mubr.msk.bf16.mxu0 %vm8843_vm0, %v8842_v2  ;;  %v576_v4 = vor.u32 %v574_v16, %v572_v8 }
  0xee   : > { %v580_v24 = vrot.slane %v578_v18, 1  ;;  %v2635_v18 = vsel %vm2614_vm3, %v2632_v9, %v2634_v27 }
  0xf3   : > { %6746 = vmatmul.mubr.bf16.gmra.mrb[40].mxu1 %v541_v31  ;;  %v581_v31 = vsel %vm449_vm1, %v576_v4, %v580_v24  ;;  %v8517_v4 = vld [vmem:[%s9067_s12 + $0x74] sm:$0xff]  }
  0xf4   : > { %7146 = vmatmul.mubr.bf16.gmra.mrb[40].mxu0 %v2190_v32  ;;  %6749 = vmatprep.mubr.msk.bf16.mxu1 %vm8843_vm0, %v8842_v2  ;;  %v582_v32 = vshrl.u32 %v9337_v10, 16 }
  0xf5   : > { %7205 = vmatprep.mubr.msk.bf16.mxu0 %vm8843_vm0, %v8842_v2 }
  0xf6   : > { %v584_v23 = vor.u32 %v582_v32, %v580_v24  ;;  %v2638_v24 = vrot.slane %v8517_v4, 2 }
  0xf8   : > { %v589_v40 = vsel %vm449_vm1, %v584_v23, %v588_v38  ;;  %v8520_v23 = vld [vmem:[%s9067_s12 + $0x84] sm:$0xff]  }
  0xfb   : > { %6750 = vmatmul.mubr.bf16.gmra.mrb[44].mxu1 %v549_v19  ;;  %v590_v19 = vshrl.u32 %v9351_v26, 16 }
  0xfc   : > { %7206 = vmatmul.mubr.bf16.vlgmr.msra.gmra.mrb[0].mxu0 %v2617_v44  ;;  %6753 = vmatprep.mubr.msk.bf16.mxu1 %vm8843_vm0, %v8842_v2  ;;  %v594_v44 = vshll.u32 %v9365_v17, 16 }
  0xfd   : > { %7290 = vmatpush3.bf16.msra.mxu0 %v8499_v45  ;;  %7209 = vmatprep.mubr.msk.bf16.mxu0 %vm8843_vm0, %v8842_v2  ;;  %v2627_v45 = vsel %vm2614_vm3, %v2624_v29, %v2626_v39  ;;  %v592_v46 = vor.u32 %v590_v19, %v588_v38  ;;  %v8522_v29 = vld [vmem:[#allocation8 + $0x88] sm:$0xff]   ;;  %v8537_v38 = vld [vmem:[#allocation8 + $0xa0] sm:$0xff]  }
  0xfe   : > { %7291 = vmatprep.subr.bf16.mxu0 %v8842_v2  ;;  %v9446_v39 = vld [vmem:[%s9067_s12 + $0x10] sm:$0xff]  }
  0xff   : > { %v8542_v19 = vld [vmem:[#allocation8 + $0xa8] sm:$0xff]  }
 0x101   : > { %7292 = vmatpush3.bf16.msra.mxu0 %v8503_v47  ;;  %v596_v47 = vrot.slane %v594_v44, 1 }
 0x102   : > { %7293 = vmatprep.subr.bf16.mxu0 %v8842_v2 }
 0x103   : > { %6754 = vmatmul.mubr.bf16.gmra.mrb[48].mxu1 %v557_v52  ;;  %v597_v49 = vsel %vm449_vm1, %v592_v46, %v596_v47  ;;  %v600_v52 = vor.u32 %v598_v50, %v596_v47  ;;  %v8546_v46 = vld [vmem:[#allocation8 + $0xb0] sm:$0xff]  }
 0x104   : > { %7210 = vmatmul.mubr.bf16.gmra.mrb[4].mxu0 %v2619_v54  ;;  %6757 = vmatprep.mubr.msk.bf16.mxu1 %vm8843_vm0, %v8842_v2  ;;  %v604_v54 = vrot.slane %v602_v51, 1  ;;  %v9458_v47 = vld [vmem:[%s9067_s12 + $0x18] sm:$0xff]  }
 0x105   : > { %7213 = vmatprep.mubr.msk.bf16.mxu0 %vm8843_vm0, %v8842_v2  ;;  %7294 = vmatpush3.bf16.msra.mxu0 %v8508_v57  ;;  %v8524_v51 = vld [vmem:[%s9067_s12 + $0x94] sm:$0xff]  }
 0x106   : > { %7295 = vmatprep.subr.bf16.mxu0 %v8842_v2  ;;  %v605_v57 = vsel %vm449_vm1, %v600_v52, %v604_v54  ;;  %v2646_v52 = vrot.slane %v8524_v51, 2  ;;  %v9593_v51 = vld [vmem:[%s9067_s12 + $0x60] sm:$0xff]  }
 0x109   : > { %7296 = vmatpush3.bf16.msra.mxu0 %v8513_v59  ;;  %v606_v59 = vshrl.u32 %v9377_v48, 16 }
 0x10a   : > { %7297 = vmatprep.subr.bf16.mxu0 %v8842_v2 }
 0x10b   : > { %6758 = vmatmul.mubr.bf16.gmra.mrb[52].mxu1 %v565_v53  ;;  %v2631_v53 = vsel %vm2614_vm3, %v2628_v43, %v2630_v60  ;;  %v608_v0 = vor.u32 %v606_v59, %v604_v54  ;;  %v8526_v60 = vld [vmem:[%s9067_s12 + $0x9c] sm:$0xff]  }
 0x10c   : > { %7214 = vmatmul.mubr.bf16.gmra.mrb[8].mxu0 %v2621_v5  ;;  %6761 = vmatprep.mubr.msk.bf16.mxu1 %vm8843_vm0, %v8842_v2  ;;  %v9401_v5 = vld [vmem:[%s9067_s12 + $0xa8] ss:$0 sps:$4 sm:$0x11]   ;;  %v2648_v59 = vrot.slane %v8526_v60, 2 }
 0x10d   : > { %7217 = vmatprep.mubr.msk.bf16.mxu0 %vm8843_vm0, %v8842_v2  ;;  %7298 = vmatpush3.bf16.msra.mxu0 %v8516_v6  ;;  %v613_v6 = vsel %vm449_vm1, %v608_v0, %v612_v1  ;;  %v618_v8 = vshll.u32 %v9401_v5, 16  ;;  %v9490_v0 = vld [vmem:[%s9067_s12 + $0x30] sm:$0xff]  }
 0x10e   : > { %7299 = vmatprep.subr.bf16.mxu0 %v8842_v2  ;;  %v2649_v62 = vsel %vm2614_vm3, %v2646_v52, %v2648_v59 }
 0x111   : > { %7300 = vmatpush3.bf16.msra.mxu0 %v8521_v12  ;;  %v616_v12 = vor.u32 %v614_v7, %v612_v1 }
 0x112   : > { %7301 = vmatprep.subr.bf16.mxu0 %v8842_v2 }
 0x113   : > { %6762 = vmatmul.mubr.bf16.gmra.mrb[56].mxu1 %v573_v14  ;;  %v620_v14 = vrot.slane %v618_v8, 1 }
 0x114   : > { %7218 = vmatmul.mubr.bf16.gmra.mrb[12].mxu0 %v2623_v20  ;;  %6765 = vmatprep.mubr.msk.bf16.mxu1 %vm8843_vm0, %v8842_v2  ;;  %v2636_v20 = vrot.slane %v9264_v61, 2 }
 0x115   : > { %7221 = vmatprep.mubr.msk.bf16.mxu0 %vm8843_vm0, %v8842_v2  ;;  %7302 = vmatpush3.bf16.msra.mxu0 %v8525_v21  ;;  %v621_v16 = vsel %vm449_vm1, %v616_v12, %v620_v14  ;;  %v8533_v14 = vld [vmem:[%s9067_s12 + $0xbc] ss:$0 sps:$4 sm:$0x33]  }
 0x116   : > { %7303 = vmatprep.subr.bf16.mxu0 %v8842_v2  ;;  %v2637_v21 = vsel %vm2614_vm3, %v2634_v27, %v2636_v20  ;;  %v2639_v61 = vsel %vm2614_vm3, %v2636_v20, %v2638_v24  ;;  %v2970_v27 = vld [vmem:[%s9067_s12 + $0x28] sm:$0xc] }
 0x119   : > { %7304 = vmatpush3.bf16.msra.mxu0 %v8530_v30  ;;  %v8519_v30 = vld [vmem:[%s9067_s12 + $0x7c] sm:$0xff]  }
 0x11a   : > { %7389 = vmatprep.subr.bf16.mxu0 %v8842_v2  ;;  %v2640_v32 = vrot.slane %v8519_v30, 2 }
 0x11b   : > { %6766 = vmatmul.mubr.bf16.gmra.mrb[60].mxu1 %v581_v31  ;;  %v8527_v31 = vld [vmem:[#allocation8 + $0x90] sm:$0xff]  }
 0x11c   : > { %7222 = vmatmul.mubr.bf16.gmra.mrb[16].mxu0 %v2625_v35  ;;  %6769 = vmatprep.mubr.msk.bf16.mxu1 %vm8843_vm0, %v8842_v2  ;;  %v2641_v35 = vsel %vm2614_vm3, %v2638_v24, %v2640_v32  ;;  %v8536_v24 = vld [vmem:[#allocation8 + $0x1c0] sm:$0xff]  }
 0x11d   : > { %7225 = vmatprep.mubr.msk.bf16.mxu0 %vm8843_vm0, %v8842_v2 }
 0x123   : > { %6770 = vmatmul.mubr.bf16.gmra.mrb[64].mxu1 %v589_v40  ;;  %v2642_v40 = vrot.slane %v8520_v23, 2  ;;  %v9558_v23 = vld [vmem:[%s9067_s12 + $0x48] sm:$0xff]  }
 0x124   : > { %7226 = vmatmul.mubr.bf16.gmra.mrb[20].mxu0 %v2627_v45  ;;  %6773 = vmatprep.mubr.msk.bf16.mxu1 %vm8843_vm0, %v8842_v2  ;;  %v8523_v45 = vld [vmem:[%s9067_s12 + $0x8c] sm:$0xff]  }
 0x125   : > { %7229 = vmatprep.mubr.msk.bf16.mxu0 %vm8843_vm0, %v8842_v2  ;;  %v2643_v44 = vsel %vm2614_vm3, %v2640_v32, %v2642_v40  ;;  %v2644_v43 = vrot.slane %v8523_v45, 2 }
 0x127   : > { %v2645_v50 = vsel %vm2614_vm3, %v2642_v40, %v2644_v43  ;;  %v2647_v54 = vsel %vm2614_vm3, %v2644_v43, %v2646_v52  ;;  %v8560_v40 = vld [vmem:[#allocation8 + $0x1e8] sm:$0xff]  }
 0x12b   : > { %6774 = vmatmul.mubr.bf16.gmra.mrb[68].mxu1 %v597_v49  ;;  %v8551_v49 = vld [vmem:[#allocation8 + $0xb8] sm:$0xff]  }
 0x12c   : > { %7230 = vmatmul.mubr.bf16.gmra.mrb[24].mxu0 %v2629_v36  ;;  %6777 = vmatprep.mubr.msk.bf16.mxu1 %vm8843_vm0, %v8842_v2  ;;  %v9470_v36 = vld [vmem:[%s9067_s12 + $0x20] sm:$0xff]  }
 0x12d   : > { %7233 = vmatprep.mubr.msk.bf16.mxu0 %vm8843_vm0, %v8842_v2 }
 0x133   : > { %6778 = vmatmul.mubr.bf16.gmra.mrb[72].mxu1 %v605_v57  ;;  %v9480_v57 = vld [vmem:[%s9067_s12 + $0x28] sm:$0xff]  }
 0x134   : > { %7234 = vmatmul.mubr.bf16.gmra.mrb[28].mxu0 %v2631_v53  ;;  %6781 = vmatprep.mubr.msk.bf16.mxu1 %vm8843_vm0, %v8842_v2  ;;  %v8528_v53 = vld [vmem:[%s9067_s12 + $0xa4] sm:$0xff]  }
 0x135   : > { %7237 = vmatprep.mubr.msk.bf16.mxu0 %vm8843_vm0, %v8842_v2  ;;  %v2650_v1 = vrot.slane %v8528_v53, 2 }
 0x137   : > { %v2651_v9 = vsel %vm2614_vm3, %v2648_v59, %v2650_v1 }
 0x13b   : > { %6782 = vmatmul.mubr.bf16.gmra.mrb[76].mxu1 %v613_v6  ;;  %v8529_v6 = vld [vmem:[%s9067_s12 + $0xac] sm:$0xff]  }
 0x13c   : > { %7238 = vmatmul.mubr.bf16.gmra.mrb[32].mxu0 %v2633_v11  ;;  %6785 = vmatprep.mubr.msk.bf16.mxu1 %vm8843_vm0, %v8842_v2  ;;  %v2652_v7 = vrot.slane %v8529_v6, 2  ;;  %v8532_v11 = vld [vmem:[%s9067_s12 + $0xb4] sm:$0xff]  }
 0x13d   : > { %7241 = vmatprep.mubr.msk.bf16.mxu0 %vm8843_vm0, %v8842_v2 }
 0x13e   : > { %v2653_v8 = vsel %vm2614_vm3, %v2650_v1, %v2652_v7 }
 0x143   : > { %6786 = vmatmul.mubr.bf16.gmra.mrb[80].mxu1 %v621_v16  ;;  %v2971_v16 = vld [vmem:[%s9067_s12 + $0x2c] sm:$0xf] }
 0x144   : > { %7242 = vmatmul.mubr.bf16.gmra.mrb[36].mxu0 %v2635_v18  ;;  %6805 = vmatprep.mubr.msk.bf16.mxu1 %vm8843_vm0, %v8842_v2  ;;  %v9521_v20 = vcombine.low %v2970_v27, %v2971_v16 }
 0x145   : > { %7245 = vmatprep.mubr.msk.bf16.mxu0 %vm8843_vm0, %v8842_v2 }
 0x14b   : > { %6806 = vmatmul.mubr.bf16.vlgmr.msra.gmra.mrb[0].mxu1 %v9100_v15  ;;  %v9434_v15 = vld [vmem:[%s9067_s12 + $0x8] sm:$0xff]  }
 0x14c   : > { %7246 = vmatmul.mubr.bf16.gmra.mrb[40].mxu0 %v2637_v21  ;;  %6809 = vmatprep.mubr.msk.bf16.mxu1 %vm8843_vm0, %v8842_v2  ;;  %v9524_v21 = vld [vmem:[%s9067_s12 + $0x30] sm:$0xff]  }
 0x14d   : > { %7249 = vmatprep.mubr.msk.bf16.mxu0 %vm8843_vm0, %v8842_v2  ;;  %6890 = vmatpush3.bf16.msra.mxu1 %v8518_v33  ;;  %v3139_v4 = vrot.slane %v9524_v21, 2 }
 0x14e   : > { %6891 = vmatprep.subr.bf16.mxu1 %v8842_v2 }
 0x151   : > { %6892 = vmatpush3.bf16.msra.mxu1 %v8522_v29  ;;  %v9535_v29 = vld [vmem:[%s9067_s12 + $0x38] sm:$0xff]  }
 0x152   : > { %6893 = vmatprep.subr.bf16.mxu1 %v8842_v2 }
 0x153   : > { %6810 = vmatmul.mubr.bf16.gmra.mrb[4].mxu1 %v9434_v15 }
 0x154   : > { %7250 = vmatmul.mubr.bf16.gmra.mrb[44].mxu0 %v2639_v61  ;;  %6813 = vmatprep.mubr.msk.bf16.mxu1 %vm8843_vm0, %v8842_v2  ;;  %v8540_v61 = vld [vmem:[#allocation8 + $0x1c8] sm:$0xff]  }
 0x155   : > { %7253 = vmatprep.mubr.msk.bf16.mxu0 %vm8843_vm0, %v8842_v2  ;;  %6894 = vmatpush3.bf16.msra.mxu1 %v8527_v31  ;;  %v9546_v31 = vld [vmem:[%s9067_s12 + $0x40] sm:$0xff]  }
 0x156   : > { %6895 = vmatprep.subr.bf16.mxu1 %v8842_v2  ;;  %v3143_v32 = vrot.slane %v9546_v31, 2 }
 0x159   : > { %6896 = vmatpush3.bf16.msra.mxu1 %v8531_v34  ;;  %v8550_v34 = vld [vmem:[#allocation8 + $0x1d8] sm:$0xff]  }
 0x15a   : > { %6897 = vmatprep.subr.bf16.mxu1 %v8842_v2 }
 0x15b   : > { %6814 = vmatmul.mubr.bf16.gmra.mrb[8].mxu1 %v9446_v39 }
 0x15c   : > { %7254 = vmatmul.mubr.bf16.gmra.mrb[48].mxu0 %v2641_v35  ;;  %6817 = vmatprep.mubr.msk.bf16.mxu1 %vm8843_vm0, %v8842_v2 }
 0x15d   : > { %7257 = vmatprep.mubr.msk.bf16.mxu0 %vm8843_vm0, %v8842_v2  ;;  %6898 = vmatpush3.bf16.msra.mxu1 %v8537_v38  ;;  %v3145_v38 = vrot.slane %v9558_v23, 2 }
 0x15e   : > { %6899 = vmatprep.subr.bf16.mxu1 %v8842_v2 }
 0x161   : > { %6900 = vmatpush3.bf16.msra.mxu1 %v8542_v19  ;;  %v3146_v19 = vsel %vm2614_vm3, %v3143_v32, %v3145_v38 }
 0x162   : > { %6901 = vmatprep.subr.bf16.mxu1 %v8842_v2 }
 0x163   : > { %6818 = vmatmul.mubr.bf16.gmra.mrb[12].mxu1 %v9458_v47 }
 0x164   : > { %7258 = vmatmul.mubr.bf16.gmra.mrb[52].mxu0 %v2643_v44  ;;  %6821 = vmatprep.mubr.msk.bf16.mxu1 %vm8843_vm0, %v8842_v2  ;;  %v9570_v44 = vld [vmem:[%s9067_s12 + $0x50] sm:$0xff]  }
 0x165   : > { %7261 = vmatprep.mubr.msk.bf16.mxu0 %vm8843_vm0, %v8842_v2  ;;  %6902 = vmatpush3.bf16.msra.mxu1 %v8546_v46  ;;  %v3147_v45 = vrot.slane %v9570_v44, 2  ;;  %v8569_v46 = vld [vmem:[#allocation8 + $0x1f8] sm:$0xff]  }
 0x166   : > { %6903 = vmatprep.subr.bf16.mxu1 %v8842_v2 }
 0x167   : > { %v3148_v43 = vsel %vm2614_vm3, %v3145_v38, %v3147_v45  ;;  %v9672_v38 = vld [vmem:[%s9067_s12 + $0x98] sm:$0xff]  }
 0x169   : > { %6904 = vmatpush3.bf16.msra.mxu1 %v8551_v49  ;;  %v9582_v49 = vld [vmem:[%s9067_s12 + $0x58] sm:$0xff]  }
 0x16a   : > { %6989 = vmatprep.subr.bf16.mxu1 %v8842_v2 }
 0x16b   : > { %6822 = vmatmul.mubr.bf16.gmra.mrb[16].mxu1 %v9470_v36 }
 0x16c   : > { %7262 = vmatmul.mubr.bf16.gmra.mrb[56].mxu0 %v2645_v50  ;;  %6825 = vmatprep.mubr.msk.bf16.mxu1 %vm8843_vm0, %v8842_v2 }
 0x16d   : > { %7265 = vmatprep.mubr.msk.bf16.mxu0 %vm8843_vm0, %v8842_v2 }
 0x173   : > { %6826 = vmatmul.mubr.bf16.gmra.mrb[20].mxu1 %v9480_v57 }
 0x174   : > { %7266 = vmatmul.mubr.bf16.gmra.mrb[60].mxu0 %v2647_v54  ;;  %6829 = vmatprep.mubr.msk.bf16.mxu1 %vm8843_vm0, %v8842_v2  ;;  %v9603_v54 = vld [vmem:[%s9067_s12 + $0x68] sm:$0xff]  }
 0x175   : > { %7269 = vmatprep.mubr.msk.bf16.mxu0 %vm8843_vm0, %v8842_v2  ;;  %v3153_v60 = vrot.slane %v9603_v54, 2 }
 0x17b   : > { %6830 = vmatmul.mubr.bf16.gmra.mrb[24].mxu1 %v9490_v0 }
 0x17c   : > { %7270 = vmatmul.mubr.bf16.gmra.mrb[64].mxu0 %v2649_v62  ;;  %6833 = vmatprep.mubr.msk.bf16.mxu1 %vm8843_vm0, %v8842_v2  ;;  %v9613_v62 = vld [vmem:[%s9067_s12 + $0x70] sm:$0xff]  }
 0x17d   : > { %7273 = vmatprep.mubr.msk.bf16.mxu0 %vm8843_vm0, %v8842_v2  ;;  %v3155_v53 = vrot.slane %v9613_v62, 2 }
 0x17f   : > { %v3156_v1 = vsel %vm2614_vm3, %v3153_v60, %v3155_v53 }
 0x183   : > { %6834 = vmatmul.mubr.bf16.gmra.mrb[28].mxu1 %v9202_v63  ;;  %v2654_v63 = vrot.slane %v8532_v11, 2 }
 0x184   : > { %7274 = vmatmul.mubr.bf16.gmra.mrb[68].mxu0 %v2651_v9  ;;  %6837 = vmatprep.mubr.msk.bf16.mxu1 %vm8843_vm0, %v8842_v2  ;;  %v9623_v9 = vld [vmem:[%s9067_s12 + $0x78] sm:$0xff]  }
 0x185   : > { %7277 = vmatprep.mubr.msk.bf16.mxu0 %vm8843_vm0, %v8842_v2  ;;  %v2655_v12 = vsel %vm2614_vm3, %v2652_v7, %v2654_v63  ;;  %v3157_v6 = vrot.slane %v9623_v9, 2  ;;  %v1162_v7 = vld [vmem:[%s9067_s12] sm:$0xe] }
 0x18b   : > { %6838 = vmatmul.mubr.bf16.gmra.mrb[32].mxu1 %v9215_v13  ;;  %v2656_v13 = vrot.slane %v8533_v14, 2 }
 0x18c   : > { %7278 = vmatmul.mubr.bf16.gmra.mrb[72].mxu0 %v2653_v8  ;;  %6841 = vmatprep.mubr.msk.bf16.mxu1 %vm8843_vm0, %v8842_v2  ;;  %v8594_v8 = vld [vmem:[%s9067_s12 + $0x4] sm:$0xf] }
 0x18d   : > { %7281 = vmatprep.mubr.msk.bf16.mxu0 %vm8843_vm0, %v8842_v2  ;;  %v2657_v18 = vsel %vm2614_vm3, %v2654_v63, %v2656_v13  ;;  %v6106_v11 = vcombine.low %v1162_v7, %v8594_v8  ;;  %v3158_v63 = vsel %vm2614_vm3, %v3155_v53, %v3157_v6  ;;  %v1185_v13 = vrot.slane %v9434_v15, 1  ;;  %v9710_v7 = vld [vmem:[%s9067_s12 + $0xb0] sm:$0xff]   ;;  %v8595_v8 = vld [vmem:[%s9067_s12 + $0x38] sm:$0xff]  }
 0x18e   : > { %v1187_v15 = vrot.slane %v9446_v39, 1  ;;  %v1189_v39 = vrot.slane %v9458_v47, 1  ;;  %v1191_v47 = vrot.slane %v9470_v36, 1  ;;  %v1193_v36 = vrot.slane %v9480_v57, 1 }
 0x18f   : > { %v1184_v14 = vrot.slane %v6106_v11, 1  ;;  %v1195_v57 = vrot.slane %v9490_v0, 1  ;;  %v1197_v0 = vrot.slane %v8595_v8, 1  ;;  %v3171_v11 = vrot.slane %v9710_v7, 2  ;;  %v8600_v8 = vld [vmem:[%s9067_s12 + $0x60] sm:$0xff]  }
 0x191   : > { %v1186_v16 = vsel %vm1183_vm4, %v1184_v14, %v1185_v13 }
 0x193   : > { %6842 = vmatmul.mubr.bf16.gmra.mrb[36].mxu1 %v9225_v25  ;;  %v3138_v25 = vrot.slane %v9521_v20, 2 }
 0x194   : > { %7282 = vmatmul.mubr.bf16.gmra.mrb[76].mxu0 %v2655_v12  ;;  %6845 = vmatprep.mubr.msk.bf16.mxu1 %vm8843_vm0, %v8842_v2  ;;  %v9635_v12 = vld [vmem:[%s9067_s12 + $0x80] sm:$0xff]  }
 0x195   : > { %7285 = vmatprep.mubr.msk.bf16.mxu0 %vm8843_vm0, %v8842_v2  ;;  %v3140_v33 = vsel %vm2614_vm3, %v3138_v25, %v3139_v4  ;;  %v3159_v27 = vrot.slane %v9635_v12, 2  ;;  %v9647_v25 = vld [vmem:[%s9067_s12 + $0x88] sm:$0xff]  }
 0x19b   : > { %6846 = vmatmul.mubr.bf16.gmra.mrb[40].mxu1 %v9244_v41  ;;  %v3141_v41 = vrot.slane %v9535_v29, 2 }
 0x19c   : > { %7286 = vmatmul.mubr.bf16.gmra.mrb[80].mxu0 %v2657_v18  ;;  %6849 = vmatprep.mubr.msk.bf16.mxu1 %vm8843_vm0, %v8842_v2  ;;  %v3160_v18 = vsel %vm2614_vm3, %v3157_v6, %v3159_v27 }
 0x19d   : > { %7305 = vmatprep.mubr.msk.bf16.mxu0 %vm8843_vm0, %v8842_v2  ;;  %v3142_v30 = vsel %vm2614_vm3, %v3139_v4, %v3141_v41  ;;  %v3144_v35 = vsel %vm2614_vm3, %v3141_v41, %v3143_v32  ;;  %v8557_v4 = vld [vmem:[#allocation8 + $0xc0] sm:$0xff]   ;;  %v1188_v41 = vsel %vm1183_vm4, %v1185_v13, %v1187_v15  ;;  %v9721_v13 = vld [vmem:[%s9067_s12 + $0xb8] sm:$0xff]  }
 0x1a3   : > { %6850 = vmatmul.mubr.bf16.gmra.mrb[44].mxu1 %v9257_v56  ;;  %v8545_v56 = vld [vmem:[#allocation8 + $0x1d0] sm:$0xff]  }
 0x1a4   : > { %7306 = vmatmul.mubr.bf16.vlgmr.msra.gmra.mrb[0].mxu0 %v3140_v33  ;;  %6853 = vmatprep.mubr.msk.bf16.mxu1 %vm8843_vm0, %v8842_v2  ;;  %v3161_v33 = vrot.slane %v9647_v25, 2 }
 0x1a5   : > { %7390 = vmatpush3.bf16.msra.mxu0 %v8536_v24  ;;  %7309 = vmatprep.mubr.msk.bf16.mxu0 %vm8843_vm0, %v8842_v2  ;;  %v8561_v24 = vld [vmem:[#allocation8 + $0xc8] sm:$0xff]  }
 0x1a6   : > { %7391 = vmatprep.subr.bf16.mxu0 %v8842_v2 }
 0x1a9   : > { %7392 = vmatpush3.bf16.msra.mxu0 %v8540_v61  ;;  %v3162_v61 = vsel %vm2614_vm3, %v3159_v27, %v3161_v33  ;;  %v8596_v27 = vld [vmem:[%s9067_s12 + $0x40] sm:$0xff]  }
 0x1aa   : > { %7393 = vmatprep.subr.bf16.mxu0 %v8842_v2 }
 0x1ab   : > { %6854 = vmatmul.mubr.bf16.gmra.mrb[48].mxu1 %v9270_v3  ;;  %v8555_v3 = vld [vmem:[#allocation8 + $0x1e0] sm:$0xff]  }
 0x1ac   : > { %7310 = vmatmul.mubr.bf16.gmra.mrb[4].mxu0 %v3142_v30  ;;  %6857 = vmatprep.mubr.msk.bf16.mxu1 %vm8843_vm0, %v8842_v2  ;;  %v9659_v30 = vld [vmem:[%s9067_s12 + $0x90] sm:$0xff]  }
 0x1ad   : > { %7313 = vmatprep.mubr.msk.bf16.mxu0 %vm8843_vm0, %v8842_v2  ;;  %7394 = vmatpush3.bf16.msra.mxu0 %v8545_v56  ;;  %v8566_v56 = vld [vmem:[#allocation8 + $0xd0] sm:$0xff]   ;;  %v3163_v32 = vrot.slane %v9659_v30, 2 }
 0x1ae   : > { %7395 = vmatprep.subr.bf16.mxu0 %v8842_v2 }
 0x1b1   : > { %7396 = vmatpush3.bf16.msra.mxu0 %v8550_v34  ;;  %v8570_v34 = vld [vmem:[#allocation8 + $0xd8] sm:$0xff]  }
 0x1b2   : > { %7397 = vmatprep.subr.bf16.mxu0 %v8842_v2 }
 0x1b3   : > { %6858 = vmatmul.mubr.bf16.gmra.mrb[52].mxu1 %v9296_v37  ;;  %v8564_v37 = vld [vmem:[#allocation8 + $0x1f0] sm:$0xff]  }
 0x1b4   : > { %7314 = vmatmul.mubr.bf16.gmra.mrb[8].mxu0 %v3144_v35  ;;  %6861 = vmatprep.mubr.msk.bf16.mxu1 %vm8843_vm0, %v8842_v2  ;;  %v1190_v35 = vsel %vm1183_vm4, %v1187_v15, %v1189_v39 }
 0x1b5   : > { %7317 = vmatprep.mubr.msk.bf16.mxu0 %vm8843_vm0, %v8842_v2  ;;  %7398 = vmatpush3.bf16.msra.mxu0 %v8555_v3  ;;  %v3164_v3 = vsel %vm2614_vm3, %v3161_v33, %v3163_v32  ;;  %v9732_v33 = vld [vmem:[%s9067_s12 + $0xc0] sm:$0xff]  }
 0x1b6   : > { %7399 = vmatprep.subr.bf16.mxu0 %v8842_v2 }
 0x1b9   : > { %7400 = vmatpush3.bf16.msra.mxu0 %v8560_v40  ;;  %v8574_v40 = vld [vmem:[#allocation8 + $0xe0] sm:$0xff]  }
 0x1ba   : > { %7401 = vmatprep.subr.bf16.mxu0 %v8842_v2 }
 0x1bb   : > { %6862 = vmatmul.mubr.bf16.gmra.mrb[56].mxu1 %v9305_v42  ;;  %v3149_v42 = vrot.slane %v9582_v49, 2 }
 0x1bc   : > { %7318 = vmatmul.mubr.bf16.gmra.mrb[12].mxu0 %v3146_v19  ;;  %6865 = vmatprep.mubr.msk.bf16.mxu1 %vm8843_vm0, %v8842_v2  ;;  %v3165_v19 = vrot.slane %v9672_v38, 2 }
 0x1bd   : > { %7321 = vmatprep.mubr.msk.bf16.mxu0 %vm8843_vm0, %v8842_v2  ;;  %7402 = vmatpush3.bf16.msra.mxu0 %v8564_v37  ;;  %v3150_v50 = vsel %vm2614_vm3, %v3147_v45, %v3149_v42  ;;  %v8576_v37 = vld [vmem:[#allocation8 + $0xe8] sm:$0xff]   ;;  %v1192_v45 = vsel %vm1183_vm4, %v1189_v39, %v1191_v47 }
 0x1be   : > { %7403 = vmatprep.subr.bf16.mxu0 %v8842_v2 }
 0x1c1   : > { %7404 = vmatpush3.bf16.msra.mxu0 %v8569_v46  ;;  %v3166_v46 = vsel %vm2614_vm3, %v3163_v32, %v3165_v19  ;;  %v9743_v32 = vld [vmem:[%s9067_s12 + $0xc8] sm:$0xff]  }
 0x1c2   : > { %7489 = vmatprep.subr.bf16.mxu0 %v8842_v2 }
 0x1c3   : > { %6866 = vmatmul.mubr.bf16.gmra.mrb[60].mxu1 %v9321_v58  ;;  %v3151_v58 = vrot.slane %v9593_v51, 2 }
 0x1c4   : > { %7322 = vmatmul.mubr.bf16.gmra.mrb[16].mxu0 %v3148_v43  ;;  %6869 = vmatprep.mubr.msk.bf16.mxu1 %vm8843_vm0, %v8842_v2  ;;  %v9685_v43 = vld [vmem:[%s9067_s12 + $0xa0] sm:$0xff]  }
 0x1c5   : > { %7325 = vmatprep.mubr.msk.bf16.mxu0 %vm8843_vm0, %v8842_v2  ;;  %v3152_v52 = vsel %vm2614_vm3, %v3149_v42, %v3151_v58  ;;  %v3154_v59 = vsel %vm2614_vm3, %v3151_v58, %v3153_v60  ;;  %v8578_v42 = vld [vmem:[#allocation8 + $0xf0] sm:$0xff]   ;;  %v8580_v58 = vld [vmem:[#allocation8 + $0xf8] sm:$0xff]  }
 0x1cb   : > { %6870 = vmatmul.mubr.bf16.gmra.mrb[64].mxu1 %v9337_v10 }
 0x1cc   : > { %7326 = vmatmul.mubr.bf16.gmra.mrb[20].mxu0 %v3150_v50  ;;  %6873 = vmatprep.mubr.msk.bf16.mxu1 %vm8843_vm0, %v8842_v2  ;;  %v3167_v50 = vrot.slane %v9685_v43, 2 }
 0x1cd   : > { %7329 = vmatprep.mubr.msk.bf16.mxu0 %vm8843_vm0, %v8842_v2 }
 0x1ce   : > { %v3168_v60 = vsel %vm2614_vm3, %v3165_v19, %v3167_v50 }
 0x1d3   : > { %6874 = vmatmul.mubr.bf16.gmra.mrb[68].mxu1 %v9351_v26 }
 0x1d4   : > { %7330 = vmatmul.mubr.bf16.gmra.mrb[24].mxu0 %v3152_v52  ;;  %6877 = vmatprep.mubr.msk.bf16.mxu1 %vm8843_vm0, %v8842_v2  ;;  %v1194_v52 = vsel %vm1183_vm4, %v1191_v47, %v1193_v36  ;;  %v8572_v47 = vld [vmem:[%s9067_s12 + $0xd0] ss:$0 sps:$4 sm:$0x33]  }
 0x1d5   : > { %7333 = vmatprep.mubr.msk.bf16.mxu0 %vm8843_vm0, %v8842_v2 }
 0x1db   : > { %6878 = vmatmul.mubr.bf16.gmra.mrb[72].mxu1 %v9365_v17 }
 0x1dc   : > { %7334 = vmatmul.mubr.bf16.gmra.mrb[28].mxu0 %v3154_v59  ;;  %6881 = vmatprep.mubr.msk.bf16.mxu1 %vm8843_vm0, %v8842_v2  ;;  %v9698_v59 = vld [vmem:[%s9067_s12 + $0xa8] sm:$0xff]  }
 0x1dd   : > { %7337 = vmatprep.mubr.msk.bf16.mxu0 %vm8843_vm0, %v8842_v2  ;;  %v3169_v53 = vrot.slane %v9698_v59, 2 }
 0x1df   : > { %v3170_v6 = vsel %vm2614_vm3, %v3167_v50, %v3169_v53  ;;  %v3172_v14 = vsel %vm2614_vm3, %v3169_v53, %v3171_v11  ;;  %v3524_v50 = vshrl.u32 %v9524_v21, 16 }
 0x1e3   : > { %6882 = vmatmul.mubr.bf16.gmra.mrb[76].mxu1 %v9377_v48 }
 0x1e4   : > { %7338 = vmatmul.mubr.bf16.gmra.mrb[32].mxu0 %v3156_v1  ;;  %6885 = vmatprep.mubr.msk.bf16.mxu1 %vm8843_vm0, %v8842_v2  ;;  %v1196_v1 = vsel %vm1183_vm4, %v1193_v36, %v1195_v57  ;;  %v3519_v36 = vshll.u32 %v9521_v20, 16 }
 0x1e5   : > { %7341 = vmatprep.mubr.msk.bf16.mxu0 %vm8843_vm0, %v8842_v2 }
 0x1e6   : > { %v3521_v53 = vrot.slane %v3519_v36, 3 }
 0x1eb   : > { %6886 = vmatmul.mubr.bf16.gmra.mrb[80].mxu1 %v9389_v55 }
 0x1ec   : > { %7342 = vmatmul.mubr.bf16.gmra.mrb[36].mxu0 %v3158_v63  ;;  %6905 = vmatprep.mubr.msk.bf16.mxu1 %vm8843_vm0, %v8842_v2  ;;  %v1198_v63 = vsel %vm1183_vm4, %v1195_v57, %v1197_v0 }
 0x1ed   : > { %7345 = vmatprep.mubr.msk.bf16.mxu0 %vm8843_vm0, %v8842_v2 }
 0x1f3   : > { %6906 = vmatmul.mubr.bf16.vlgmr.msra.gmra.mrb[0].mxu1 %v1186_v16  ;;  %v1199_v16 = vrot.slane %v8596_v27, 1 }
 0x1f4   : > { %7346 = vmatmul.mubr.bf16.gmra.mrb[40].mxu0 %v3160_v18  ;;  %6909 = vmatprep.mubr.msk.bf16.mxu1 %vm8843_vm0, %v8842_v2  ;;  %v3173_v18 = vrot.slane %v9721_v13, 2 }
 0x1f5   : > { %7349 = vmatprep.mubr.msk.bf16.mxu0 %vm8843_vm0, %v8842_v2  ;;  %6990 = vmatpush3.bf16.msra.mxu1 %v8557_v4  ;;  %v1200_v4 = vsel %vm1183_vm4, %v1197_v0, %v1199_v16 }
 0x1f6   : > { %6991 = vmatprep.subr.bf16.mxu1 %v8842_v2  ;;  %v3174_v15 = vsel %vm2614_vm3, %v3171_v11, %v3173_v18  ;;  %v3533_v11 = vshrl.u32 %v9535_v29, 16 }
 0x1f9   : > { %6992 = vmatpush3.bf16.msra.mxu1 %v8561_v24  ;;  %v8597_v24 = vld [vmem:[%s9067_s12 + $0x48] sm:$0xff]  }
 0x1fa   : > { %6993 = vmatprep.subr.bf16.mxu1 %v8842_v2 }
 0x1fb   : > { %6910 = vmatmul.mubr.bf16.gmra.mrb[4].mxu1 %v1188_v41  ;;  %v1201_v41 = vrot.slane %v8597_v24, 1 }
 0x1fc   : > { %7350 = vmatmul.mubr.bf16.gmra.mrb[44].mxu0 %v3162_v61  ;;  %6913 = vmatprep.mubr.msk.bf16.mxu1 %vm8843_vm0, %v8842_v2  ;;  %v3175_v61 = vrot.slane %v9732_v33, 2 }
 0x1fd   : > { %7353 = vmatprep.mubr.msk.bf16.mxu0 %vm8843_vm0, %v8842_v2  ;;  %6994 = vmatpush3.bf16.msra.mxu1 %v8566_v56  ;;  %v1202_v56 = vsel %vm1183_vm4, %v1199_v16, %v1201_v41  ;;  %v8573_v16 = vld [vmem:[#allocation8 + $0x200] sm:$0xff]  }
 0x1fe   : > { %6995 = vmatprep.subr.bf16.mxu1 %v8842_v2  ;;  %v3176_v39 = vsel %vm2614_vm3, %v3173_v18, %v3175_v61  ;;  %v3535_v18 = vrot.slane %v3533_v11, 2  ;;  %v8583_v11 = vld [vmem:[#allocation8 + $0x230] sm:$0xff]  }
 0x201   : > { %6996 = vmatpush3.bf16.msra.mxu1 %v8570_v34  ;;  %v8598_v34 = vld [vmem:[%s9067_s12 + $0x50] sm:$0xff]  }
 0x202   : > { %6997 = vmatprep.subr.bf16.mxu1 %v8842_v2 }
 0x203   : > { %6914 = vmatmul.mubr.bf16.gmra.mrb[8].mxu1 %v1190_v35  ;;  %v1203_v35 = vrot.slane %v8598_v34, 1 }
 0x204   : > { %7354 = vmatmul.mubr.bf16.gmra.mrb[48].mxu0 %v3164_v3  ;;  %6917 = vmatprep.mubr.msk.bf16.mxu1 %vm8843_vm0, %v8842_v2  ;;  %v3177_v3 = vrot.slane %v9743_v32, 2 }
 0x205   : > { %7357 = vmatprep.mubr.msk.bf16.mxu0 %vm8843_vm0, %v8842_v2  ;;  %6998 = vmatpush3.bf16.msra.mxu1 %v8574_v40  ;;  %v1204_v40 = vsel %vm1183_vm4, %v1201_v41, %v1203_v35  ;;  %v3542_v41 = vshrl.u32 %v9546_v31, 16 }
 0x206   : > { %6999 = vmatprep.subr.bf16.mxu1 %v8842_v2  ;;  %v3178_v19 = vsel %vm2614_vm3, %v3175_v61, %v3177_v3  ;;  %v3545_v61 = vshll.u32 %v9546_v31, 16 }
 0x209   : > { %7000 = vmatpush3.bf16.msra.mxu1 %v8576_v37  ;;  %v8599_v37 = vld [vmem:[%s9067_s12 + $0x58] sm:$0xff]  }
 0x20a   : > { %7001 = vmatprep.subr.bf16.mxu1 %v8842_v2 }
 0x20b   : > { %6918 = vmatmul.mubr.bf16.gmra.mrb[12].mxu1 %v1192_v45  ;;  %v1205_v45 = vrot.slane %v8599_v37, 1  ;;  %v3551_v37 = vshrl.u32 %v9558_v23, 16 }
 0x20c   : > { %7358 = vmatmul.mubr.bf16.gmra.mrb[52].mxu0 %v3166_v46  ;;  %6921 = vmatprep.mubr.msk.bf16.mxu1 %vm8843_vm0, %v8842_v2  ;;  %v3179_v46 = vrot.slane %v8572_v47, 2  ;;  %v8602_v47 = vld [vmem:[%s9067_s12 + $0x70] sm:$0xff]  }
 0x20d   : > { %7361 = vmatprep.mubr.msk.bf16.mxu0 %vm8843_vm0, %v8842_v2  ;;  %7002 = vmatpush3.bf16.msra.mxu1 %v8578_v42  ;;  %v3516_v42 = vshrl.u32 %v9521_v20, 16  ;;  %v1207_v20 = vrot.slane %v8600_v8, 1  ;;  %v1211_v31 = vrot.slane %v8602_v47, 1  ;;  %v3590_v47 = vshll.u32 %v9603_v54, 16 }
 0x20e   : > { %7003 = vmatprep.subr.bf16.mxu1 %v8842_v2 }
 0x20f   : > { %v3518_v57 = vrot.slane %v3516_v42, 2 }
 0x211   : > { %7004 = vmatpush3.bf16.msra.mxu1 %v8580_v58  ;;  %v3527_v58 = vshll.u32 %v9524_v21, 16  ;;  %v3522_v21 = vor.u32 %v3521_v53, %v3518_v57  ;;  %v3560_v53 = vshrl.u32 %v9570_v44, 16 }
 0x212   : > { %7589 = vmatprep.subr.bf16.mxu1 %v8842_v2 }
 0x213   : > { %6922 = vmatmul.mubr.bf16.gmra.mrb[16].mxu1 %v1194_v52  ;;  %v1206_v52 = vsel %vm1183_vm4, %v1203_v35, %v1205_v45  ;;  %v3544_v35 = vrot.slane %v3542_v41, 2  ;;  %v3578_v41 = vshrl.u32 %v9593_v51, 16 }
 0x214   : > { %7362 = vmatmul.mubr.bf16.gmra.mrb[56].mxu0 %v3168_v60  ;;  %6925 = vmatprep.mubr.msk.bf16.mxu1 %vm8843_vm0, %v8842_v2  ;;  %v3180_v60 = vsel %vm2614_vm3, %v3177_v3, %v3179_v46  ;;  %v3547_v3 = vrot.slane %v3545_v61, 3  ;;  %v8579_v46 = vld [vmem:[#allocation8 + $0x218] sm:$0xff]   ;;  %v3581_v61 = vshll.u32 %v9593_v51, 16 }
 0x215   : > { %7365 = vmatprep.mubr.msk.bf16.mxu0 %vm8843_vm0, %v8842_v2 }
 0x21b   : > { %6926 = vmatmul.mubr.bf16.gmra.mrb[20].mxu1 %v1196_v1  ;;  %v3526_v1 = vrot.slane %v3524_v50, 2  ;;  %v3553_v50 = vrot.slane %v3551_v37, 2 }
 0x21c   : > { %7366 = vmatmul.mubr.bf16.gmra.mrb[60].mxu0 %v3170_v6  ;;  %6929 = vmatprep.mubr.msk.bf16.mxu1 %vm8843_vm0, %v8842_v2  ;;  %v3529_v6 = vrot.slane %v3527_v58, 3 }
 0x21d   : > { %7369 = vmatprep.mubr.msk.bf16.mxu0 %vm8843_vm0, %v8842_v2 }
 0x21e   : > { %v3530_v0 = vor.u32 %v3529_v6, %v3526_v1  ;;  %v3563_v1 = vshll.u32 %v9570_v44, 16  ;;  %v8582_v6 = vld [vmem:[#allocation8 + $0x228] sm:$0xff]   ;;  %v1215_v44 = vrot.slane %v9337_v10, 1  ;;  %v1217_v10 = vrot.slane %v9351_v26, 1 }
 0x21f   : > { %v1219_v26 = vrot.slane %v9365_v17, 1  ;;  %v1221_v17 = vrot.slane %v9377_v48, 1  ;;  %v1223_v48 = vrot.slane %v9389_v55, 1  ;;  %v1225_v55 = vrot.slane %v9401_v5, 1 }
 0x220   : > { %v3531_v27 = vsel %vm3514_vm5, %v3522_v21, %v3530_v0  ;;  %v3562_v21 = vrot.slane %v3560_v53, 2  ;;  %v1707_v5 = vrot.slane %v9113_v22, 1  ;;  %v8605_v22 = vld [vmem:[%s9067_s12 + $0x24] sm:$0xff]  }
 0x221   : > { %v1224_v53 = vsel %vm1183_vm4, %v1221_v17, %v1223_v48 }
 0x223   : > { %6930 = vmatmul.mubr.bf16.gmra.mrb[24].mxu1 %v1198_v63  ;;  %v3536_v63 = vshll.u32 %v9535_v29, 16 }
 0x224   : > { %7370 = vmatmul.mubr.bf16.gmra.mrb[64].mxu0 %v3172_v14  ;;  %6933 = vmatprep.mubr.msk.bf16.mxu1 %vm8843_vm0, %v8842_v2  ;;  %v1208_v14 = vsel %vm1183_vm4, %v1205_v45, %v1207_v20  ;;  %v3554_v45 = vshll.u32 %v9558_v23, 16  ;;  %v8603_v23 = vld [vmem:[%s9067_s12 + $0x78] sm:$0xff]  }
 0x225   : > { %7373 = vmatprep.mubr.msk.bf16.mxu0 %vm8843_vm0, %v8842_v2 }
 0x226   : > { %v3556_v58 = vrot.slane %v3554_v45, 3  ;;  %v3592_v45 = vrot.slane %v3590_v47, 3 }
 0x228   : > { %v3557_v57 = vor.u32 %v3556_v58, %v3553_v50  ;;  %v1222_v50 = vsel %vm1183_vm4, %v1219_v26, %v1221_v17 }
 0x22b   : > { %6934 = vmatmul.mubr.bf16.gmra.mrb[28].mxu1 %v1200_v4  ;;  %v3538_v4 = vrot.slane %v3536_v63, 3 }
 0x22c   : > { %7374 = vmatmul.mubr.bf16.gmra.mrb[68].mxu0 %v3174_v15  ;;  %6937 = vmatprep.mubr.msk.bf16.mxu1 %vm8843_vm0, %v8842_v2  ;;  %v8601_v15 = vld [vmem:[%s9067_s12 + $0x68] sm:$0xff]  }
 0x22d   : > { %7377 = vmatprep.mubr.msk.bf16.mxu0 %vm8843_vm0, %v8842_v2  ;;  %v1209_v24 = vrot.slane %v8601_v15, 1  ;;  %v3539_v29 = vor.u32 %v3538_v4, %v3535_v18 }
 0x22f   : > { %v3540_v34 = vsel %vm3514_vm5, %v3530_v0, %v3539_v29  ;;  %v1212_v42 = vsel %vm1183_vm4, %v1209_v24, %v1211_v31  ;;  %v3565_v0 = vrot.slane %v3563_v1, 3 }
 0x231   : > { %v3566_v63 = vor.u32 %v3565_v0, %v3562_v21  ;;  %v3617_v21 = vshll.u32 %v9635_v12, 16  ;;  %v1226_v0 = vsel %vm1183_vm4, %v1223_v48, %v1225_v55  ;;  %v8612_v48 = vld [vmem:[#allocation8 + $0x120] sm:$0xff]   ;;  %v3659_v55 = vshrl.u32 %v9698_v59, 16 }
 0x233   : > { %6938 = vmatmul.mubr.bf16.gmra.mrb[32].mxu1 %v1202_v56  ;;  %v8575_v56 = vld [vmem:[#allocation8 + $0x208] sm:$0xff]   ;;  %v3567_v4 = vsel %vm3514_vm5, %v3557_v57, %v3566_v63 }
 0x234   : > { %7378 = vmatmul.mubr.bf16.gmra.mrb[72].mxu0 %v3176_v39  ;;  %6941 = vmatprep.mubr.msk.bf16.mxu1 %vm8843_vm0, %v8842_v2  ;;  %v1210_v39 = vsel %vm1183_vm4, %v1207_v20, %v1209_v24 }
 0x235   : > { %7381 = vmatprep.mubr.msk.bf16.mxu0 %vm8843_vm0, %v8842_v2 }
 0x23b   : > { %6942 = vmatmul.mubr.bf16.gmra.mrb[36].mxu1 %v1204_v40  ;;  %v8577_v40 = vld [vmem:[#allocation8 + $0x210] sm:$0xff]  }
 0x23c   : > { %7382 = vmatmul.mubr.bf16.gmra.mrb[76].mxu0 %v3178_v19  ;;  %6945 = vmatprep.mubr.msk.bf16.mxu1 %vm8843_vm0, %v8842_v2  ;;  %v3548_v19 = vor.u32 %v3547_v3, %v3544_v35  ;;  %v3583_v35 = vrot.slane %v3581_v61, 3  ;;  %v8606_v61 = vld [vmem:[#allocation8 + $0x100] sm:$0xff]  }
 0x23d   : > { %7385 = vmatprep.mubr.msk.bf16.mxu0 %vm8843_vm0, %v8842_v2 }
 0x23e   : > { %v3549_v36 = vsel %vm3514_vm5, %v3539_v29, %v3548_v19  ;;  %v3558_v20 = vsel %vm3514_vm5, %v3548_v19, %v3557_v57  ;;  %v3605_v57 = vshrl.u32 %v9623_v9, 16 }
 0x243   : > { %6946 = vmatmul.mubr.bf16.gmra.mrb[40].mxu1 %v1206_v52  ;;  %v8581_v52 = vld [vmem:[#allocation8 + $0x220] sm:$0xff]  }
 0x244   : > { %7386 = vmatmul.mubr.bf16.gmra.mrb[80].mxu0 %v3180_v60  ;;  %6949 = vmatprep.mubr.msk.bf16.mxu1 %vm8843_vm0, %v8842_v2  ;;  %v1213_v60 = vrot.slane %v8603_v23, 1 }
 0x245   : > { %7405 = vmatprep.mubr.msk.bf16.mxu0 %vm8843_vm0, %v8842_v2 }
 0x246   : > { %v1214_v8 = vsel %vm1183_vm4, %v1211_v31, %v1213_v60  ;;  %v1216_v18 = vsel %vm1183_vm4, %v1213_v60, %v1215_v44  ;;  %v1220_v31 = vsel %vm1183_vm4, %v1217_v10, %v1219_v26 }
 0x24b   : > { %6950 = vmatmul.mubr.bf16.gmra.mrb[44].mxu1 %v1208_v14  ;;  %v3569_v14 = vshrl.u32 %v9582_v49, 16 }
 0x24c   : > { %7406 = vmatmul.mubr.bf16.vlgmr.msra.gmra.mrb[0].mxu0 %v3531_v27  ;;  %6953 = vmatprep.mubr.msk.bf16.mxu1 %vm8843_vm0, %v8842_v2  ;;  %v3572_v27 = vshll.u32 %v9582_v49, 16 }
 0x24d   : > { %7490 = vmatpush3.bf16.msra.mxu0 %v8573_v16  ;;  %7409 = vmatprep.mubr.msk.bf16.mxu0 %vm8843_vm0, %v8842_v2  ;;  %v8584_v16 = vld [vmem:[#allocation8 + $0x238] sm:$0xff]   ;;  %v3571_v15 = vrot.slane %v3569_v14, 2 }
 0x24e   : > { %7491 = vmatprep.subr.bf16.mxu0 %v8842_v2  ;;  %v3574_v24 = vrot.slane %v3572_v27, 3  ;;  %v8604_v14 = vld [vmem:[%s9067_s12 + $0x1c] sm:$0xff]  }
 0x24f   : > { %v1708_v27 = vrot.slane %v8604_v14, 1 }
 0x250   : > { %v3575_v29 = vor.u32 %v3574_v24, %v3571_v15 }
 0x251   : > { %7492 = vmatpush3.bf16.msra.mxu0 %v8575_v56  ;;  %v1218_v56 = vsel %vm1183_vm4, %v1215_v44, %v1217_v10 }
 0x252   : > { %7493 = vmatprep.subr.bf16.mxu0 %v8842_v2 }
 0x253   : > { %6954 = vmatmul.mubr.bf16.gmra.mrb[48].mxu1 %v1210_v39  ;;  %v3576_v39 = vsel %vm3514_vm5, %v3566_v63, %v3575_v29  ;;  %v3619_v63 = vrot.slane %v3617_v21, 3 }
 0x254   : > { %7410 = vmatmul.mubr.bf16.gmra.mrb[4].mxu0 %v3540_v34  ;;  %6957 = vmatprep.mubr.msk.bf16.mxu1 %vm8843_vm0, %v8842_v2  ;;  %v3580_v34 = vrot.slane %v3578_v41, 2 }
 0x255   : > { %7413 = vmatprep.mubr.msk.bf16.mxu0 %vm8843_vm0, %v8842_v2  ;;  %7494 = vmatpush3.bf16.msra.mxu0 %v8577_v40  ;;  %v3587_v40 = vshrl.u32 %v9603_v54, 16 }
 0x256   : > { %7495 = vmatprep.subr.bf16.mxu0 %v8842_v2  ;;  %v3584_v3 = vor.u32 %v3583_v35, %v3580_v34 }
 0x257   : > { %v3589_v37 = vrot.slane %v3587_v40, 2  ;;  %v8608_v40 = vld [vmem:[%s9067_s12 + $0x2c] sm:$0xff]  }
 0x258   : > { %v3585_v19 = vsel %vm3514_vm5, %v3575_v29, %v3584_v3  ;;  %v1710_v29 = vrot.slane %v8605_v22, 1  ;;  %v1712_v47 = vrot.slane %v8608_v40, 1  ;;  %v3689_v40 = vshll.u32 %v9732_v33, 16 }
 0x259   : > { %7496 = vmatpush3.bf16.msra.mxu0 %v8579_v46  ;;  %v3593_v46 = vor.u32 %v3592_v45, %v3589_v37  ;;  %v8609_v37 = vld [vmem:[#allocation8 + $0x110] sm:$0xff]  }
 0x25a   : > { %7497 = vmatprep.subr.bf16.mxu0 %v8842_v2  ;;  %v1713_v45 = vsel %vm1183_vm4, %v1710_v29, %v1712_v47 }
 0x25b   : > { %6958 = vmatmul.mubr.bf16.gmra.mrb[52].mxu1 %v1212_v42  ;;  %v3596_v42 = vshrl.u32 %v9613_v62, 16  ;;  %v3594_v58 = vsel %vm3514_vm5, %v3584_v3, %v3593_v46  ;;  %v8607_v3 = vld [vmem:[#allocation8 + $0x108] sm:$0xff]  }
 0x25c   : > { %7414 = vmatmul.mubr.bf16.gmra.mrb[8].mxu0 %v3549_v36  ;;  %6961 = vmatprep.mubr.msk.bf16.mxu1 %vm8843_vm0, %v8842_v2  ;;  %v3599_v36 = vshll.u32 %v9613_v62, 16  ;;  %v3608_v62 = vshll.u32 %v9623_v9, 16  ;;  %v3614_v9 = vshrl.u32 %v9635_v12, 16 }
 0x25d   : > { %7417 = vmatprep.mubr.msk.bf16.mxu0 %vm8843_vm0, %v8842_v2  ;;  %7498 = vmatpush3.bf16.msra.mxu0 %v8581_v52  ;;  %v3598_v52 = vrot.slane %v3596_v42, 2 }
 0x25e   : > { %7499 = vmatprep.subr.bf16.mxu0 %v8842_v2  ;;  %v3601_v23 = vrot.slane %v3599_v36, 3  ;;  %v3616_v44 = vrot.slane %v3614_v9, 2  ;;  %v8610_v36 = vld [vmem:[#allocation8 + $0x118] sm:$0xff]   ;;  %v8615_v9 = vld [vmem:[#allocation8 + $0x130] sm:$0xff]  }
 0x260   : > { %v3602_v60 = vor.u32 %v3601_v23, %v3598_v52  ;;  %v3620_v12 = vor.u32 %v3619_v63, %v3616_v44  ;;  %v3650_v52 = vshrl.u32 %v9685_v43, 16  ;;  %v3653_v23 = vshll.u32 %v9685_v43, 16  ;;  %v8614_v43 = vld [vmem:[%s9067_s12 + $0x3c] sm:$0xff]  }
 0x261   : > { %7500 = vmatpush3.bf16.msra.mxu0 %v8582_v6  ;;  %v3607_v6 = vrot.slane %v3605_v57, 2  ;;  %v8616_v63 = vld [vmem:[#allocation8 + $0x138] sm:$0xff]  }
 0x262   : > { %7501 = vmatprep.subr.bf16.mxu0 %v8842_v2  ;;  %v3603_v1 = vsel %vm3514_vm5, %v3593_v46, %v3602_v60 }
 0x263   : > { %6962 = vmatmul.mubr.bf16.gmra.mrb[56].mxu1 %v1214_v8  ;;  %v3610_v8 = vrot.slane %v3608_v62, 3  ;;  %v3652_v62 = vrot.slane %v3650_v52, 2  ;;  %v8621_v52 = vld [vmem:[%s9067_s12 + $0x64] sm:$0xff]  }
 0x264   : > { %7418 = vmatmul.mubr.bf16.gmra.mrb[12].mxu0 %v3558_v20  ;;  %6965 = vmatprep.mubr.msk.bf16.mxu1 %vm8843_vm0, %v8842_v2 }
 0x265   : > { %7421 = vmatprep.mubr.msk.bf16.mxu0 %vm8843_vm0, %v8842_v2  ;;  %7502 = vmatpush3.bf16.msra.mxu0 %v8583_v11  ;;  %v3611_v20 = vor.u32 %v3610_v8, %v3607_v6  ;;  %v1716_v6 = vrot.slane %v8614_v43, 1  ;;  %v8622_v43 = vld [vmem:[%s9067_s12 + $0x6c] sm:$0xff]  }
 0x266   : > { %7503 = vmatprep.subr.bf16.mxu0 %v8842_v2 }
 0x267   : > { %v3612_v11 = vsel %vm3514_vm5, %v3602_v60, %v3611_v20  ;;  %v3621_v15 = vsel %vm3514_vm5, %v3611_v20, %v3620_v12  ;;  %v3662_v20 = vshll.u32 %v9698_v59, 16 }
 0x269   : > { %7504 = vmatpush3.bf16.msra.mxu0 %v8584_v16  ;;  %v3623_v16 = vshrl.u32 %v9647_v25, 16  ;;  %v3664_v44 = vrot.slane %v3662_v20, 3 }
 0x26b   : > { %6966 = vmatmul.mubr.bf16.gmra.mrb[60].mxu1 %v1216_v18  ;;  %v3626_v18 = vshll.u32 %v9647_v25, 16  ;;  %v3625_v24 = vrot.slane %v3623_v16, 2  ;;  %v3632_v25 = vshrl.u32 %v9659_v30, 16  ;;  %v3671_v16 = vshll.u32 %v9710_v7, 16 }
 0x26c   : > { %7422 = vmatmul.mubr.bf16.gmra.mrb[16].mxu0 %v3567_v4  ;;  %6969 = vmatprep.mubr.msk.bf16.mxu1 %vm8843_vm0, %v8842_v2  ;;  %v1709_v4 = vsel %vm1183_vm4, %v1707_v5, %v1708_v27  ;;  %v8617_v5 = vld [vmem:[%s9067_s12 + $0x44] sm:$0xff]  }
 0x26d   : > { %7425 = vmatprep.mubr.msk.bf16.mxu0 %vm8843_vm0, %v8842_v2  ;;  %v3628_v10 = vrot.slane %v3626_v18, 3  ;;  %v3634_v35 = vrot.slane %v3632_v25, 2  ;;  %v1718_v14 = vrot.slane %v8617_v5, 1  ;;  %v8625_v5 = vld [vmem:[%s9067_s12 + $0x30] sm:$0xff]  }
 0x26f   : > { %v3629_v41 = vor.u32 %v3628_v10, %v3625_v24  ;;  %v1719_v18 = vsel %vm1183_vm4, %v1716_v6, %v1718_v14  ;;  %v3673_v24 = vrot.slane %v3671_v16, 3  ;;  %v8618_v10 = vld [vmem:[%s9067_s12 + $0x4c] sm:$0xff]   ;;  %v9986_v16 = vld [vmem:[%s9067_s12 + $0x7c] sm:$0xff]  }
 0x270   : > { %v1720_v22 = vrot.slane %v8618_v10, 1 }
 0x271   : > { %v3630_v34 = vsel %vm3514_vm5, %v3620_v12, %v3629_v41  ;;  %v3668_v12 = vshrl.u32 %v9710_v7, 16 }
 0x272   : > { %v1721_v25 = vsel %vm1183_vm4, %v1718_v14, %v1720_v22  ;;  %v4047_v14 = vrot.slane %v8625_v5, 3 }
 0x273   : > { %6970 = vmatmul.mubr.bf16.gmra.mrb[64].mxu1 %v1218_v56  ;;  %v3635_v56 = vshll.u32 %v9659_v30, 16 }
 0x274   : > { %7426 = vmatmul.mubr.bf16.gmra.mrb[20].mxu0 %v3576_v39  ;;  %6973 = vmatprep.mubr.msk.bf16.mxu1 %vm8843_vm0, %v8842_v2  ;;  %v1711_v39 = vsel %vm1183_vm4, %v1708_v27, %v1710_v29 }
 0x275   : > { %7429 = vmatprep.mubr.msk.bf16.mxu0 %vm8843_vm0, %v8842_v2  ;;  %v3637_v26 = vrot.slane %v3635_v56, 3 }
 0x277   : > { %v3638_v30 = vor.u32 %v3637_v26, %v3634_v35  ;;  %v8619_v35 = vld [vmem:[%s9067_s12 + $0x54] sm:$0xff]  }
 0x278   : > { %v1722_v26 = vrot.slane %v8619_v35, 1  ;;  %v8631_v35 = vld [vmem:[%s9067_s12 + $0x48] sm:$0xff]  }
 0x279   : > { %v3639_v17 = vsel %vm3514_vm5, %v3629_v41, %v3638_v30  ;;  %v3677_v41 = vshrl.u32 %v9721_v13, 16 }
 0x27b   : > { %6974 = vmatmul.mubr.bf16.gmra.mrb[68].mxu1 %v1220_v31  ;;  %v3641_v31 = vshrl.u32 %v9672_v38, 16 }
 0x27c   : > { %7430 = vmatmul.mubr.bf16.gmra.mrb[24].mxu0 %v3585_v19  ;;  %6977 = vmatprep.mubr.msk.bf16.mxu1 %vm8843_vm0, %v8842_v2  ;;  %v3644_v19 = vshll.u32 %v9672_v38, 16  ;;  %v8611_v38 = vld [vmem:[%s9067_s12 + $0x34] sm:$0xff]  }
 0x27d   : > { %7433 = vmatprep.mubr.msk.bf16.mxu0 %vm8843_vm0, %v8842_v2  ;;  %v3643_v46 = vrot.slane %v3641_v31, 2 }
 0x27e   : > { %v3646_v42 = vrot.slane %v3644_v19, 3  ;;  %v3691_v19 = vrot.slane %v3689_v40, 3  ;;  %v10019_v40 = vld [vmem:[%s9067_s12 + $0x94] sm:$0xff]  }
 0x283   : > { %6978 = vmatmul.mubr.bf16.gmra.mrb[72].mxu1 %v1222_v50  ;;  %v1714_v50 = vrot.slane %v8611_v38, 1 }
 0x284   : > { %7434 = vmatmul.mubr.bf16.gmra.mrb[28].mxu0 %v3594_v58  ;;  %6981 = vmatprep.mubr.msk.bf16.mxu1 %vm8843_vm0, %v8842_v2  ;;  %v3647_v58 = vor.u32 %v3646_v42, %v3643_v46  ;;  %v3698_v46 = vshll.u32 %v9743_v32, 16 }
 0x285   : > { %7437 = vmatprep.mubr.msk.bf16.mxu0 %vm8843_vm0, %v8842_v2  ;;  %v1715_v60 = vsel %vm1183_vm4, %v1712_v47, %v1714_v50  ;;  %v1717_v21 = vsel %vm1183_vm4, %v1714_v50, %v1716_v6  ;;  %v1723_v47 = vsel %vm1183_vm4, %v1720_v22, %v1722_v26  ;;  %v1728_v6 = vrot.slane %v8622_v43, 1  ;;  %v9997_v22 = vld [vmem:[%s9067_s12 + $0x84] sm:$0xff]   ;;  %v8587_v43 = vld [vmem:[%s9067_s12 + $0xbc] ss:$0 sps:$4 sm:$0x11]  }
 0x286   : > { %v3648_v57 = vsel %vm3514_vm5, %v3638_v30, %v3647_v58  ;;  %v3700_v50 = vrot.slane %v3698_v46, 3 }
 0x28b   : > { %6982 = vmatmul.mubr.bf16.gmra.mrb[76].mxu1 %v1224_v53  ;;  %v3655_v53 = vrot.slane %v3653_v23, 3  ;;  %v1726_v23 = vrot.slane %v8621_v52, 1 }
 0x28c   : > { %7438 = vmatmul.mubr.bf16.gmra.mrb[32].mxu0 %v3603_v1  ;;  %6985 = vmatprep.mubr.msk.bf16.mxu1 %vm8843_vm0, %v8842_v2  ;;  %v8613_v1 = vld [vmem:[#allocation8 + $0x128] sm:$0xff]  }
 0x28d   : > { %7441 = vmatprep.mubr.msk.bf16.mxu0 %vm8843_vm0, %v8842_v2  ;;  %v3656_v8 = vor.u32 %v3655_v53, %v3652_v62  ;;  %v1729_v20 = vsel %vm1183_vm4, %v1726_v23, %v1728_v6 }
 0x293   : > { %6986 = vmatmul.mubr.bf16.gmra.mrb[80].mxu1 %v1226_v0  ;;  %v3657_v0 = vsel %vm3514_vm5, %v3647_v58, %v3656_v8  ;;  %v9952_v58 = vld [vmem:[%s9067_s12 + $0xd0] ss:$0 sps:$4 sm:$0x77]  }
 0x294   : > { %7442 = vmatmul.mubr.bf16.gmra.mrb[36].mxu0 %v3612_v11  ;;  %7005 = vmatprep.mubr.msk.bf16.mxu1 %vm8843_vm0, %v8842_v2  ;;  %v3661_v11 = vrot.slane %v3659_v55, 2  ;;  %v4024_v55 = vld [vmem:[%s9067_s12 + $0x28] sm:$0x8] }
 0x295   : > { %7445 = vmatprep.mubr.msk.bf16.mxu0 %vm8843_vm0, %v8842_v2 }
 0x296   : > { %v3665_v27 = vor.u32 %v3664_v44, %v3661_v11  ;;  %v9975_v11 = vld [vmem:[%s9067_s12 + $0x74] sm:$0xff]  }
 0x297   : > { %v1730_v44 = vrot.slane %v9975_v11, 1 }
 0x29b   : > { %7006 = vmatmul.mubr.bf16.vlgmr.msra.gmra.mrb[0].mxu1 %v1709_v4  ;;  %v3666_v4 = vsel %vm3514_vm5, %v3656_v8, %v3665_v27 }
 0x29c   : > { %7446 = vmatmul.mubr.bf16.gmra.mrb[40].mxu0 %v3621_v15  ;;  %7009 = vmatprep.mubr.msk.bf16.mxu1 %vm8843_vm0, %v8842_v2  ;;  %v3670_v15 = vrot.slane %v3668_v12, 2 }
 0x29d   : > { %7449 = vmatprep.mubr.msk.bf16.mxu0 %vm8843_vm0, %v8842_v2  ;;  %7597 = vmatpush3.bf16.msra.mxu1 %v8606_v61  ;;  %v3680_v61 = vshll.u32 %v9721_v13, 16  ;;  %v3686_v13 = vshrl.u32 %v9732_v33, 16  ;;  %v3695_v33 = vshrl.u32 %v9743_v32, 16 }
 0x29e   : > { %7590 = vmatprep.subr.bf16.mxu1 %v8842_v2  ;;  %v3674_v29 = vor.u32 %v3673_v24, %v3670_v15 }
 0x29f   : > { %v3688_v31 = vrot.slane %v3686_v13, 2  ;;  %v3697_v38 = vrot.slane %v3695_v33, 2  ;;  %v4057_v33 = vrot.slane %v9582_v49, 3 }
 0x2a0   : > { %v3675_v56 = vsel %vm3514_vm5, %v3665_v27, %v3674_v29  ;;  %v1731_v27 = vsel %vm1183_vm4, %v1728_v6, %v1730_v44 }
 0x2a1   : > { %7598 = vmatpush3.bf16.msra.mxu1 %v8607_v3  ;;  %v3701_v32 = vor.u32 %v3700_v50, %v3697_v38  ;;  %v4059_v50 = vrot.slane %v9593_v51, 3  ;;  %v4061_v51 = vrot.slane %v9603_v54, 3 }
 0x2a2   : > { %7591 = vmatprep.subr.bf16.mxu1 %v8842_v2 }
 0x2a3   : > { %7010 = vmatmul.mubr.bf16.gmra.mrb[4].mxu1 %v1711_v39  ;;  %v3679_v39 = vrot.slane %v3677_v41, 2  ;;  %v8629_v41 = vld [vmem:[%s9067_s12 + $0x40] sm:$0xff]   ;;  %v4060_v52 = vsel %vm4045_vm6, %v4057_v33, %v4059_v50 }
 0x2a4   : > { %7450 = vmatmul.mubr.bf16.gmra.mrb[44].mxu0 %v3630_v34  ;;  %7013 = vmatprep.mubr.msk.bf16.mxu1 %vm8843_vm0, %v8842_v2  ;;  %v3682_v34 = vrot.slane %v3680_v61, 3  ;;  %v4051_v61 = vrot.slane %v8629_v41, 3  ;;  %v2213_v41 = vshll.u32 %v9997_v22, 16 }
 0x2a5   : > { %7453 = vmatprep.mubr.msk.bf16.mxu0 %vm8843_vm0, %v8842_v2  ;;  %7599 = vmatpush3.bf16.msra.mxu1 %v8609_v37  ;;  %v8620_v37 = vld [vmem:[%s9067_s12 + $0x5c] sm:$0xff]  }
 0x2a6   : > { %7592 = vmatprep.subr.bf16.mxu1 %v8842_v2  ;;  %v3683_v3 = vor.u32 %v3682_v34, %v3679_v39  ;;  %v10008_v39 = vld [vmem:[%s9067_s12 + $0x8c] sm:$0xff]  }
 0x2a7   : > { %v1736_v34 = vrot.slane %v10008_v39, 1 }
 0x2a8   : > { %v3684_v30 = vsel %vm3514_vm5, %v3674_v29, %v3683_v3  ;;  %v1734_v29 = vrot.slane %v9997_v22, 1 }
 0x2a9   : > { %7600 = vmatpush3.bf16.msra.mxu1 %v8610_v36 }
 0x2aa   : > { %7593 = vmatprep.subr.bf16.mxu1 %v8842_v2 }
 0x2ab   : > { %7014 = vmatmul.mubr.bf16.gmra.mrb[8].mxu1 %v1713_v45  ;;  %v1724_v45 = vrot.slane %v8620_v37, 1 }
 0x2ac   : > { %7454 = vmatmul.mubr.bf16.gmra.mrb[48].mxu0 %v3639_v17  ;;  %7017 = vmatprep.mubr.msk.bf16.mxu1 %vm8843_vm0, %v8842_v2  ;;  %v3692_v17 = vor.u32 %v3691_v19, %v3688_v31 }
 0x2ad   : > { %7457 = vmatprep.mubr.msk.bf16.mxu0 %vm8843_vm0, %v8842_v2  ;;  %7601 = vmatpush3.bf16.msra.mxu1 %v8612_v48  ;;  %v1725_v42 = vsel %vm1183_vm4, %v1722_v26, %v1724_v45  ;;  %v3704_v48 = vshrl.u32 %v9952_v58, 16  ;;  %v4053_v26 = vrot.slane %v8631_v35, 3 }
 0x2ae   : > { %7594 = vmatprep.subr.bf16.mxu1 %v8842_v2  ;;  %v3693_v36 = vsel %vm3514_vm5, %v3683_v3, %v3692_v17  ;;  %v3702_v62 = vsel %vm3514_vm5, %v3692_v17, %v3701_v32  ;;  %v1737_v3 = vsel %vm1183_vm4, %v1734_v29, %v1736_v34 }
 0x2af   : > { %v3706_v53 = vrot.slane %v3704_v48, 2  ;;  %v4054_v13 = vsel %vm4045_vm6, %v4051_v61, %v4053_v26 }
 0x2b1   : > { %7602 = vmatpush3.bf16.msra.mxu1 %v8613_v1 }
 0x2b2   : > { %7595 = vmatprep.subr.bf16.mxu1 %v8842_v2 }
 0x2b3   : > { %7018 = vmatmul.mubr.bf16.gmra.mrb[12].mxu1 %v1715_v60  ;;  %v3707_v60 = vshll.u32 %v9952_v58, 16 }
 0x2b4   : > { %7458 = vmatmul.mubr.bf16.gmra.mrb[52].mxu0 %v3648_v57  ;;  %7021 = vmatprep.mubr.msk.bf16.mxu1 %vm8843_vm0, %v8842_v2  ;;  %v1727_v57 = vsel %vm1183_vm4, %v1724_v45, %v1726_v23  ;;  %v10030_v45 = vld [vmem:[%s9067_s12 + $0x9c] sm:$0xff]   ;;  %v10052_v23 = vld [vmem:[%s9067_s12 + $0xac] sm:$0xff]  }
 0x2b5   : > { %7461 = vmatprep.mubr.msk.bf16.mxu0 %vm8843_vm0, %v8842_v2  ;;  %7603 = vmatpush3.bf16.msra.mxu1 %v8615_v9  ;;  %v3709_v1 = vrot.slane %v3707_v60, 3  ;;  %v1740_v17 = vrot.slane %v10030_v45, 1  ;;  %v4062_v60 = vsel %vm4045_vm6, %v4059_v50, %v4061_v51 }
 0x2b6   : > { %7596 = vmatprep.subr.bf16.mxu1 %v8842_v2 }
 0x2b7   : > { %v3710_v8 = vor.u32 %v3709_v1, %v3706_v53  ;;  %v8638_v53 = vld [vmem:[%s9067_s12 + $0x70] sm:$0xff]  }
 0x2b8   : > { %v4063_v1 = vrot.slane %v8638_v53, 3 }
 0x2b9   : > { %7604 = vmatpush3.bf16.msra.mxu1 %v8616_v63  ;;  %v3711_v9 = vsel %vm3514_vm5, %v3701_v32, %v3710_v8  ;;  %v1744_v32 = vrot.slane %v10052_v23, 1  ;;  %v1748_v8 = vrot.slane %v8587_v43, 1 }
 0x2ba   : > { %v4064_v6 = vsel %vm4045_vm6, %v4061_v51, %v4063_v1  ;;  %v2237_v51 = vshrl.u32 %v10030_v45, 16 }
 0x2bb   : > { %7022 = vmatmul.mubr.bf16.gmra.mrb[16].mxu1 %v1717_v21  ;;  %v8623_v21 = vld [vmem:[%s9067_s12 + $0x2c] sm:$0xf] }
 0x2bc   : > { %7462 = vmatmul.mubr.bf16.gmra.mrb[56].mxu0 %v3657_v0  ;;  %7025 = vmatprep.mubr.msk.bf16.mxu1 %vm8843_vm0, %v8842_v2  ;;  %v6202_v0 = vcombine.low %v4024_v55, %v8623_v21  ;;  %v2192_v55 = vshrl.u32 %v9975_v11, 16  ;;  %v2239_v53 = vrot.slane %v2237_v51, 1 }
 0x2bd   : > { %7465 = vmatprep.mubr.msk.bf16.mxu0 %vm8843_vm0, %v8842_v2 }
 0x2be   : > { %v4046_v63 = vrot.slane %v6202_v0, 3 }
 0x2c0   : > { %v4048_v12 = vsel %vm4045_vm6, %v4046_v63, %v4047_v14 }
 0x2c3   : > { %7026 = vmatmul.mubr.bf16.gmra.mrb[20].mxu1 %v1719_v18  ;;  %v1732_v18 = vrot.slane %v9986_v16, 1 }
 0x2c4   : > { %7466 = vmatmul.mubr.bf16.gmra.mrb[60].mxu0 %v3666_v4  ;;  %7029 = vmatprep.mubr.msk.bf16.mxu1 %vm8843_vm0, %v8842_v2  ;;  %v8627_v4 = vld [vmem:[%s9067_s12 + $0x38] sm:$0xff]  }
 0x2c5   : > { %7469 = vmatprep.mubr.msk.bf16.mxu0 %vm8843_vm0, %v8842_v2  ;;  %v4049_v15 = vrot.slane %v8627_v4, 3  ;;  %v1733_v24 = vsel %vm1183_vm4, %v1730_v44, %v1732_v18  ;;  %v2194_v44 = vrot.slane %v2192_v55, 1 }
 0x2c7   : > { %v4050_v10 = vsel %vm4045_vm6, %v4047_v14, %v4049_v15 }
 0x2cb   : > { %7030 = vmatmul.mubr.bf16.gmra.mrb[24].mxu1 %v1721_v25  ;;  %v1735_v25 = vsel %vm1183_vm4, %v1732_v18, %v1734_v29 }
 0x2cc   : > { %7470 = vmatmul.mubr.bf16.gmra.mrb[64].mxu0 %v3675_v56  ;;  %7033 = vmatprep.mubr.msk.bf16.mxu1 %vm8843_vm0, %v8842_v2  ;;  %v4052_v56 = vsel %vm4045_vm6, %v4049_v15, %v4051_v61  ;;  %v8641_v61 = vld [vmem:[%s9067_s12 + $0x88] sm:$0xff]  }
 0x2cd   : > { %7473 = vmatprep.mubr.msk.bf16.mxu0 %vm8843_vm0, %v8842_v2 }
 0x2d3   : > { %7034 = vmatmul.mubr.bf16.gmra.mrb[28].mxu1 %v1723_v47  ;;  %v1738_v47 = vrot.slane %v10019_v40, 1 }
 0x2d4   : > { %7474 = vmatmul.mubr.bf16.gmra.mrb[68].mxu0 %v3684_v30  ;;  %7037 = vmatprep.mubr.msk.bf16.mxu1 %vm8843_vm0, %v8842_v2  ;;  %v8633_v30 = vld [vmem:[%s9067_s12 + $0x50] sm:$0xff]  }
 0x2d5   : > { %7477 = vmatprep.mubr.msk.bf16.mxu0 %vm8843_vm0, %v8842_v2  ;;  %v4055_v31 = vrot.slane %v8633_v30, 3  ;;  %v1739_v19 = vsel %vm1183_vm4, %v1736_v34, %v1738_v47  ;;  %v1741_v46 = vsel %vm1183_vm4, %v1738_v47, %v1740_v17  ;;  %v2215_v34 = vrot.slane %v2213_v41, 2 }
 0x2d7   : > { %v4056_v37 = vsel %vm4045_vm6, %v4053_v26, %v4055_v31 }
 0x2db   : > { %7038 = vmatmul.mubr.bf16.gmra.mrb[32].mxu1 %v1725_v42  ;;  %v4058_v42 = vsel %vm4045_vm6, %v4055_v31, %v4057_v33  ;;  %v2228_v33 = vshrl.u32 %v10019_v40, 16 }
 0x2dc   : > { %7478 = vmatmul.mubr.bf16.gmra.mrb[72].mxu0 %v3693_v36  ;;  %7041 = vmatprep.mubr.msk.bf16.mxu1 %vm8843_vm0, %v8842_v2  ;;  %v10041_v36 = vld [vmem:[%s9067_s12 + $0xa4] sm:$0xff]  }
 0x2dd   : > { %7481 = vmatprep.mubr.msk.bf16.mxu0 %vm8843_vm0, %v8842_v2  ;;  %v1742_v38 = vrot.slane %v10041_v36, 1  ;;  %v2230_v50 = vrot.slane %v2228_v33, 1 }
 0x2df   : > { %v1743_v49 = vsel %vm1183_vm4, %v1740_v17, %v1742_v38  ;;  %v1745_v48 = vsel %vm1183_vm4, %v1742_v38, %v1744_v32 }
 0x2e3   : > { %7042 = vmatmul.mubr.bf16.gmra.mrb[36].mxu1 %v1727_v57  ;;  %v10063_v57 = vld [vmem:[%s9067_s12 + $0xb4] sm:$0xff]  }
 0x2e4   : > { %7482 = vmatmul.mubr.bf16.gmra.mrb[76].mxu0 %v3702_v62  ;;  %7045 = vmatprep.mubr.msk.bf16.mxu1 %vm8843_vm0, %v8842_v2  ;;  %v1746_v62 = vrot.slane %v10063_v57, 1 }
 0x2e5   : > { %7485 = vmatprep.mubr.msk.bf16.mxu0 %vm8843_vm0, %v8842_v2 }
 0x2e6   : > { %v1747_v54 = vsel %vm1183_vm4, %v1744_v32, %v1746_v62  ;;  %v1749_v0 = vsel %vm1183_vm4, %v1746_v62, %v1748_v8  ;;  %v4077_v8 = vrot.slane %v9698_v59, 3  ;;  %v4079_v59 = vrot.slane %v9710_v7, 3 }
 0x2e7   : > { %v2264_v7 = vshrl.u32 %v10063_v57, 16 }
 0x2eb   : > { %7046 = vmatmul.mubr.bf16.gmra.mrb[40].mxu1 %v1729_v20  ;;  %v2195_v20 = vshll.u32 %v9975_v11, 16  ;;  %v2204_v11 = vshll.u32 %v9986_v16, 16 }
 0x2ec   : > { %7486 = vmatmul.mubr.bf16.gmra.mrb[80].mxu0 %v3711_v9  ;;  %7049 = vmatprep.mubr.msk.bf16.mxu1 %vm8843_vm0, %v8842_v2  ;;  %v8639_v9 = vld [vmem:[%s9067_s12 + $0x78] sm:$0xff]  }
 0x2ed   : > { %7505 = vmatprep.mubr.msk.bf16.mxu0 %vm8843_vm0, %v8842_v2  ;;  %v4065_v21 = vrot.slane %v8639_v9, 3  ;;  %v2197_v63 = vrot.slane %v2195_v20, 2 }
 0x2ef   : > { %v4066_v5 = vsel %vm4045_vm6, %v4063_v1, %v4065_v21  ;;  %v2198_v14 = vor.u32 %v2197_v63, %v2194_v44  ;;  %v2255_v44 = vshrl.u32 %v10052_v23, 16 }
 0x2f1   : > { %v2199_v4 = vsel %vm2083_vm2, %v9287_v28, %v2198_v14  ;;  %v4069_v28 = vrot.slane %v8641_v61, 3 }
 0x2f3   : > { %7050 = vmatmul.mubr.bf16.gmra.mrb[44].mxu1 %v1731_v27  ;;  %v2201_v27 = vshrl.u32 %v9986_v16, 16  ;;  %v2210_v16 = vshrl.u32 %v9997_v22, 16  ;;  %v2222_v22 = vshll.u32 %v10008_v39, 16 }
 0x2f4   : > { %7506 = vmatmul.mubr.bf16.vlgmr.msra.gmra.mrb[0].mxu0 %v4048_v12  ;;  %7053 = vmatprep.mubr.msk.bf16.mxu1 %vm8843_vm0, %v8842_v2  ;;  %v8640_v12 = vld [vmem:[%s9067_s12 + $0x80] sm:$0xff]  }
 0x2f5   : > { %7509 = vmatprep.mubr.msk.bf16.mxu0 %vm8843_vm0, %v8842_v2  ;;  %v4067_v18 = vrot.slane %v8640_v12, 3  ;;  %v2203_v15 = vrot.slane %v2201_v27, 1 }
 0x2f7   : > { %v4070_v35 = vsel %vm4045_vm6, %v4067_v18, %v4069_v28 }
 0x2fb   : > { %7054 = vmatmul.mubr.bf16.gmra.mrb[48].mxu1 %v1733_v24  ;;  %v2206_v24 = vrot.slane %v2204_v11, 2  ;;  %v2257_v11 = vrot.slane %v2255_v44, 1 }
 0x2fc   : > { %7510 = vmatmul.mubr.bf16.gmra.mrb[4].mxu0 %v4050_v10  ;;  %7057 = vmatprep.mubr.msk.bf16.mxu1 %vm8843_vm0, %v8842_v2  ;;  %v4068_v10 = vsel %vm4045_vm6, %v4065_v21, %v4067_v18 }
 0x2fd   : > { %7513 = vmatprep.mubr.msk.bf16.mxu0 %vm8843_vm0, %v8842_v2  ;;  %v2207_v29 = vor.u32 %v2206_v24, %v2203_v15  ;;  %v2267_v15 = vshll.u32 %v10063_v57, 16  ;;  %v8645_v24 = vld [vmem:[%s9067_s12 + $0xb8] sm:$0xff]  }
 0x303   : > { %7058 = vmatmul.mubr.bf16.gmra.mrb[52].mxu1 %v1735_v25  ;;  %v2208_v25 = vsel %vm2083_vm2, %v2198_v14, %v2207_v29 }
 0x304   : > { %7514 = vmatmul.mubr.bf16.gmra.mrb[8].mxu0 %v4052_v56  ;;  %7061 = vmatprep.mubr.msk.bf16.mxu1 %vm8843_vm0, %v8842_v2  ;;  %v2212_v56 = vrot.slane %v2210_v16, 1 }
 0x305   : > { %7517 = vmatprep.mubr.msk.bf16.mxu0 %vm8843_vm0, %v8842_v2 }
 0x306   : > { %v2216_v26 = vor.u32 %v2215_v34, %v2212_v56 }
 0x308   : > { %v2217_v30 = vsel %vm2083_vm2, %v2207_v29, %v2216_v26 }
 0x30b   : > { %7062 = vmatmul.mubr.bf16.gmra.mrb[56].mxu1 %v1737_v3  ;;  %v2219_v3 = vshrl.u32 %v10008_v39, 16  ;;  %v2231_v39 = vshll.u32 %v10019_v40, 16  ;;  %v2240_v40 = vshll.u32 %v10030_v45, 16  ;;  %v2249_v45 = vshll.u32 %v10041_v36, 16 }
 0x30c   : > { %7518 = vmatmul.mubr.bf16.gmra.mrb[12].mxu0 %v4054_v13  ;;  %7065 = vmatprep.mubr.msk.bf16.mxu1 %vm8843_vm0, %v8842_v2  ;;  %v8642_v13 = vld [vmem:[%s9067_s12 + $0x90] sm:$0xff]  }
 0x30d   : > { %7521 = vmatprep.mubr.msk.bf16.mxu0 %vm8843_vm0, %v8842_v2  ;;  %v4071_v47 = vrot.slane %v8642_v13, 3  ;;  %v2221_v31 = vrot.slane %v2219_v3, 1  ;;  %v2242_v1 = vrot.slane %v2240_v40, 2  ;;  %v2251_v9 = vrot.slane %v2249_v45, 2 }
 0x30f   : > { %v2243_v43 = vor.u32 %v2242_v1, %v2239_v53 }
 0x313   : > { %7066 = vmatmul.mubr.bf16.gmra.mrb[60].mxu1 %v1739_v19  ;;  %v2224_v19 = vrot.slane %v2222_v22, 2  ;;  %v8647_v22 = vld [vmem:[%s9067_s12 + $0xc0] sm:$0xff]  }
 0x314   : > { %7522 = vmatmul.mubr.bf16.gmra.mrb[16].mxu0 %v4056_v37  ;;  %7069 = vmatprep.mubr.msk.bf16.mxu1 %vm8843_vm0, %v8842_v2  ;;  %v4072_v37 = vsel %vm4045_vm6, %v4069_v28, %v4071_v47  ;;  %v2266_v28 = vrot.slane %v2264_v7, 1  ;;  %v4083_v13 = vrot.slane %v8647_v22, 3 }
 0x315   : > { %7525 = vmatprep.mubr.msk.bf16.mxu0 %vm8843_vm0, %v8842_v2  ;;  %v2225_v17 = vor.u32 %v2224_v19, %v2221_v31 }
 0x317   : > { %v2226_v38 = vsel %vm2083_vm2, %v2216_v26, %v2225_v17 }
 0x31b   : > { %7070 = vmatmul.mubr.bf16.gmra.mrb[64].mxu1 %v1741_v46  ;;  %v8643_v46 = vld [vmem:[%s9067_s12 + $0x98] sm:$0xff]  }
 0x31c   : > { %7526 = vmatmul.mubr.bf16.gmra.mrb[20].mxu0 %v4058_v42  ;;  %7073 = vmatprep.mubr.msk.bf16.mxu1 %vm8843_vm0, %v8842_v2  ;;  %v4073_v42 = vrot.slane %v8643_v46, 3 }
 0x31d   : > { %7529 = vmatprep.mubr.msk.bf16.mxu0 %vm8843_vm0, %v8842_v2 }
 0x323   : > { %7074 = vmatmul.mubr.bf16.gmra.mrb[68].mxu1 %v1743_v49  ;;  %v2233_v49 = vrot.slane %v2231_v39, 2 }
 0x324   : > { %7530 = vmatmul.mubr.bf16.gmra.mrb[24].mxu0 %v4060_v52  ;;  %7077 = vmatprep.mubr.msk.bf16.mxu1 %vm8843_vm0, %v8842_v2  ;;  %v4074_v52 = vsel %vm4045_vm6, %v4071_v47, %v4073_v42 }
 0x325   : > { %7533 = vmatprep.mubr.msk.bf16.mxu0 %vm8843_vm0, %v8842_v2  ;;  %v2234_v32 = vor.u32 %v2233_v49, %v2230_v50 }
 0x327   : > { %v2235_v62 = vsel %vm2083_vm2, %v2225_v17, %v2234_v32  ;;  %v2244_v55 = vsel %vm2083_vm2, %v2234_v32, %v2243_v43 }
 0x32b   : > { %7078 = vmatmul.mubr.bf16.gmra.mrb[72].mxu1 %v1745_v48  ;;  %v8644_v48 = vld [vmem:[%s9067_s12 + $0xa0] sm:$0xff]  }
 0x32c   : > { %7534 = vmatmul.mubr.bf16.gmra.mrb[28].mxu0 %v4062_v60  ;;  %7081 = vmatprep.mubr.msk.bf16.mxu1 %vm8843_vm0, %v8842_v2  ;;  %v4075_v60 = vrot.slane %v8644_v48, 3  ;;  %v4401_v48 = vlaneseq }
 0x32d   : > { %7537 = vmatprep.mubr.msk.bf16.mxu0 %vm8843_vm0, %v8842_v2 }
 0x32e   : > { %v4078_v21 = vsel %vm4045_vm6, %v4075_v60, %v4077_v8  ;;  %v10190_v1 = vshrl.u32 %v4401_v48, 7 }
 0x333   : > { %7082 = vmatmul.mubr.bf16.gmra.mrb[76].mxu1 %v1747_v54  ;;  %v4076_v54 = vsel %vm4045_vm6, %v4073_v42, %v4075_v60  ;;  %v8648_v42 = vld [vmem:[%s9067_s12 + $0xc8] sm:$0xff]   ;;  %v4087_v60 = vrot.slane %v9952_v58, 3 }
 0x334   : > { %7538 = vmatmul.mubr.bf16.gmra.mrb[32].mxu0 %v4064_v6  ;;  %7085 = vmatprep.mubr.msk.bf16.mxu1 %vm8843_vm0, %v8842_v2  ;;  %v2246_v6 = vshrl.u32 %v10041_v36, 16  ;;  %v2258_v36 = vshll.u32 %v10052_v23, 16 }
 0x335   : > { %7541 = vmatprep.mubr.msk.bf16.mxu0 %vm8843_vm0, %v8842_v2 }
 0x336   : > { %v2248_v20 = vrot.slane %v2246_v6, 1  ;;  %v2260_v12 = vrot.slane %v2258_v36, 2 }
 0x338   : > { %v2261_v23 = vor.u32 %v2260_v12, %v2257_v11  ;;  %v10222_v12 = vadd.s32 32, %v10190_v1 }
 0x33b   : > { %7086 = vmatmul.mubr.bf16.gmra.mrb[80].mxu1 %v1749_v0  ;;  %v2252_v0 = vor.u32 %v2251_v9, %v2248_v20 }
 0x33c   : > { %7542 = vmatmul.mubr.bf16.gmra.mrb[36].mxu0 %v4066_v5  ;;  %7149 = vmatprep.mubr.msk.bf16.mxu1 %vm8843_vm0, %v8842_v2 }
 0x33d   : > { %7545 = vmatprep.mubr.msk.bf16.mxu0 %vm8843_vm0, %v8842_v2  ;;  %v2253_v27 = vsel %vm2083_vm2, %v2243_v43, %v2252_v0  ;;  %v2262_v61 = vsel %vm2083_vm2, %v2252_v0, %v2261_v23 }
 0x343   : > { %7150 = vmatmul.mubr.bf16.vlgmr.msra.gmra.mrb[44].mxu1 %v2199_v4  ;;  %v4080_v4 = vsel %vm4045_vm6, %v4077_v8, %v4079_v59  ;;  %v10196_v45 = vmul.u32.u64.low 3272356035, %v10190_v1  ;;  %v10197_v8 = vmul.u32.u64.high 3272356035, %v10190_v1, %v10196_v45 }
 0x344   : > { %7546 = vmatmul.mubr.bf16.gmra.mrb[40].mxu0 %v4068_v10  ;;  %7153 = vmatprep.mubr.msk.bf16.mxu1 %vm8843_vm0, %v8842_v2  ;;  %v4081_v10 = vrot.slane %v8645_v24, 3 }
 0x345   : > { %7549 = vmatprep.mubr.msk.bf16.mxu0 %vm8843_vm0, %v8842_v2  ;;  %vm4450_vm7 = vc.u32 %v10196_v45, 3272356035 }
 0x346   : > { %v4082_v34 = vsel %vm4045_vm6, %v4079_v59, %v4081_v10  ;;  %v4084_v39 = vsel %vm4045_vm6, %v4081_v10, %v4083_v13 }
 0x34b   : > { %7154 = vmatmul.mubr.bf16.gmra.mrb[48].mxu1 %v2208_v25  ;;  %v2269_v25 = vrot.slane %v2267_v15, 2 }
 0x34c   : > { %7550 = vmatmul.mubr.bf16.gmra.mrb[44].mxu0 %v4070_v35  ;;  %7157 = vmatprep.mubr.msk.bf16.mxu1 %vm8843_vm0, %v8842_v2  ;;  %v8646_v35 = vld [vmem:[%s9067_s12 + $0xbc] ss:$0 sps:$4 sm:$0x33]  }
 0x34d   : > { %7553 = vmatprep.mubr.msk.bf16.mxu0 %vm8843_vm0, %v8842_v2  ;;  %v2270_v57 = vor.u32 %v2269_v25, %v2266_v28  ;;  %v2273_v26 = vshrl.u32 %v8646_v35, 16  ;;  %v2276_v3 = vshll.u32 %v8646_v35, 16 }
 0x34f   : > { %v2271_v19 = vsel %vm2083_vm2, %v2261_v23, %v2270_v57  ;;  %v2278_v17 = vrot.slane %v2276_v3, 2 }
 0x353   : > { %7158 = vmatmul.mubr.bf16.gmra.mrb[52].mxu1 %v2217_v30 }
 0x354   : > { %7554 = vmatmul.mubr.bf16.gmra.mrb[48].mxu0 %v4072_v37  ;;  %7161 = vmatprep.mubr.msk.bf16.mxu1 %vm8843_vm0, %v8842_v2  ;;  %v2275_v37 = vrot.slane %v2273_v26, 1 }
 0x355   : > { %7557 = vmatprep.mubr.msk.bf16.mxu0 %vm8843_vm0, %v8842_v2 }
 0x356   : > { %v2279_v46 = vor.u32 %v2278_v17, %v2275_v37 }
 0x358   : > { %v2280_v32 = vsel %vm2083_vm2, %v2270_v57, %v2279_v46  ;;  %v10260_v46 = vadd.s32 64, %v10190_v1 }
 0x35b   : > { %7162 = vmatmul.mubr.bf16.gmra.mrb[56].mxu1 %v2226_v38  ;;  %v4085_v38 = vrot.slane %v8648_v42, 3 }
 0x35c   : > { %7558 = vmatmul.mubr.bf16.gmra.mrb[52].mxu0 %v4074_v52  ;;  %7165 = vmatprep.mubr.msk.bf16.mxu1 %vm8843_vm0, %v8842_v2 }
 0x35d   : > { %7561 = vmatprep.mubr.msk.bf16.mxu0 %vm8843_vm0, %v8842_v2  ;;  %v4086_v40 = vsel %vm4045_vm6, %v4083_v13, %v4085_v38  ;;  %v4088_v6 = vsel %vm4045_vm6, %v4085_v38, %v4087_v60  ;;  %v10250_v13 = vadd.s32 48, %v10190_v1  ;;  %v10271_v60 = vadd.s32 72, %v10190_v1 }
 0x363   : > { %7166 = vmatmul.mubr.bf16.gmra.mrb[60].mxu1 %v2235_v62 }
 0x364   : > { %7562 = vmatmul.mubr.bf16.gmra.mrb[56].mxu0 %v4076_v54  ;;  %7169 = vmatprep.mubr.msk.bf16.mxu1 %vm8843_vm0, %v8842_v2 }
 0x365   : > { %7565 = vmatprep.mubr.msk.bf16.mxu0 %vm8843_vm0, %v8842_v2 }
 0x36b   : > { %7170 = vmatmul.mubr.bf16.gmra.mrb[64].mxu1 %v2244_v55  ;;  %v10200_v55 = vadd.s32 8, %v10190_v1 }
 0x36c   : > { %7566 = vmatmul.mubr.bf16.gmra.mrb[60].mxu0 %v4078_v21  ;;  %7173 = vmatprep.mubr.msk.bf16.mxu1 %vm8843_vm0, %v8842_v2 }
 0x36d   : > { %7569 = vmatprep.mubr.msk.bf16.mxu0 %vm8843_vm0, %v8842_v2  ;;  %v10208_v9 = vmul.u32.u64.low 3272356035, %v10200_v55  ;;  %v10209_v21 = vmul.u32.u64.high 3272356035, %v10200_v55, %v10208_v9 }
 0x36e   : > { %v10143_v63 = vpop.f32.mrb[0].mxu1 }
 0x36f   : > { %v7007_v5 = vpop.f32.mrb[1].mxu1  ;;  %vm4464_vm8 = vc.u32 %v10208_v9, 3272356035 }
 0x370   : > { %v10145_v14 = vpop.f32.mrb[2].mxu1  ;;  %v10218_v5 = vadd.s32 24, %v10190_v1 }
 0x371   : > { %v7008_v18 = vpop.f32.mrb[3].mxu1 }
 0x372   : > { %v10225_v18 = vadd.s32 40, %v10190_v1  ;;  %v10229_v23 = vmul.u32.u64.low 3272356035, %v10218_v5  ;;  %v10230_v7 = vmul.u32.u64.high 3272356035, %v10218_v5, %v10229_v23 }
 0x373   : > { %7174 = vmatmul.mubr.bf16.gmra.mrb[68].mxu1 %v2253_v27  ;;  %v12080_v27 = vmov 0  }
 0x374   : > { %7570 = vmatmul.mubr.bf16.gmra.mrb[64].mxu0 %v4080_v4  ;;  %7177 = vmatprep.mubr.msk.bf16.mxu1 %vm8843_vm0, %v8842_v2  ;;  %v4451_v11 = vsel %vm4450_vm7, 1, %v12080_v27  ;;  %v4465_v24 = vsel %vm4464_vm8, 1, %v12080_v27  ;;  %v10240_v28 = vmul.u32.u64.low 3272356035, %v10225_v18  ;;  %v10241_v25 = vmul.u32.u64.high 3272356035, %v10225_v18, %v10240_v28 }
 0x375   : > { %7573 = vmatprep.mubr.msk.bf16.mxu0 %vm8843_vm0, %v8842_v2  ;;  %v4452_v4 = vadd.s32 %v10197_v8, %v4451_v11  ;;  %v4466_v26 = vadd.s32 %v10209_v21, %v4465_v24  ;;  %vm4492_vm10 = vc.u32 %v10229_v23, 3272356035  ;;  %v10278_v8 = vadd.s32 80, %v10190_v1 }
 0x376   : > { %v10156_v29 = vpop.f32.mrb[4].mxu1  ;;  %vm4520_vm12 = vc.u32 %v10240_v28, 3272356035  ;;  %v4493_v22 = vsel %vm4492_vm10, 1, %v12080_v27  ;;  %v10289_v11 = vadd.s32 88, %v10190_v1 }
 0x377   : > { %v7011_v16 = vpop.f32.mrb[5].mxu1  ;;  %v4453_v35 = vshrl.u32 %v4452_v4, 5 }
 0x378   : > { %v10158_v41 = vpop.f32.mrb[6].mxu1  ;;  %v10236_v10 = vmul.u32.u64.low 3272356035, %v10222_v12  ;;  %v10237_v16 = vmul.u32.u64.high 3272356035, %v10222_v12, %v10236_v10 }
 0x379   : > { %v7012_v56 = vpop.f32.mrb[7].mxu1 }
 0x37a   : > { %vm4506_vm11 = vc.u32 %v10236_v10, 3272356035  ;;  %v10298_v24 = vmul.u32.u64.low 3272356035, %v10278_v8  ;;  %v10299_v10 = vmul.u32.u64.high 3272356035, %v10278_v8, %v10298_v24 }
 0x37b   : > { %7178 = vmatmul.mubr.bf16.gmra.mrb[72].mxu1 %v2262_v61  ;;  %v4507_v37 = vsel %vm4506_vm11, 1, %v12080_v27 }
 0x37c   : > { %7574 = vmatmul.mubr.bf16.gmra.mrb[68].mxu0 %v4082_v34  ;;  %7181 = vmatprep.mubr.msk.bf16.mxu1 %vm8843_vm0, %v8842_v2  ;;  %vm4590_vm3 = vc.u32 %v10298_v24, 3272356035 }
 0x37d   : > { %7577 = vmatprep.mubr.msk.bf16.mxu0 %vm8843_vm0, %v8842_v2 }
 0x37e   : > { %v10168_v47 = vpop.f32.mrb[8].mxu1 }
 0x37f   : > { %v7015_v30 = vpop.f32.mrb[9].mxu1 }
 0x380   : > { %v10170_v31 = vpop.f32.mrb[10].mxu1  ;;  %v4454_v30 = vmul.u32 42, %v4453_v35 }
 0x381   : > { %v7016_v33 = vpop.f32.mrb[11].mxu1 }
 0x382   : > { %v4521_v33 = vsel %vm4520_vm12, 1, %v12080_v27 }
 0x383   : > { %7182 = vmatmul.mubr.bf16.gmra.mrb[76].mxu1 %v2271_v19  ;;  %v4467_v19 = vshrl.u32 %v4466_v26, 5  ;;  %v4522_v45 = vadd.s32 %v10241_v25, %v4521_v33  ;;  %v10308_v35 = vmul.u32.u64.low 3272356035, %v10289_v11  ;;  %v10309_v26 = vmul.u32.u64.high 3272356035, %v10289_v11, %v10308_v35 }
 0x384   : > { %7578 = vmatmul.mubr.bf16.gmra.mrb[72].mxu0 %v4084_v39  ;;  %7185 = vmatprep.mubr.msk.bf16.mxu1 %vm8843_vm0, %v8842_v2  ;;  %v10257_v39 = vadd.s32 56, %v10190_v1 }
 0x385   : > { %7581 = vmatprep.mubr.msk.bf16.mxu0 %vm8843_vm0, %v8842_v2  ;;  %v4523_v28 = vshrl.u32 %v4522_v45, 5  ;;  %vm4604_vm6 = vc.u32 %v10308_v35, 3272356035 }
 0x386   : > { %v10179_v50 = vpop.f32.mrb[12].mxu1 }
 0x387   : > { %v7019_v49 = vpop.f32.mrb[13].mxu1 }
 0x388   : > { %v10181_v52 = vpop.f32.mrb[14].mxu1  ;;  %v4494_v49 = vadd.s32 %v10230_v7, %v4493_v22  ;;  %v10292_v23 = vmul.u32.u64.low 3272356035, %v10271_v60  ;;  %v10293_v7 = vmul.u32.u64.high 3272356035, %v10271_v60, %v10292_v23 }
 0x389   : > { %v7020_v51 = vpop.f32.mrb[15].mxu1 }
 0x38a   : > { %v4508_v51 = vadd.s32 %v10237_v16, %v4507_v37  ;;  %vm4576_vm2 = vc.u32 %v10292_v23, 3272356035 }
 0x38b   : > { %7186 = vmatmul.mubr.bf16.gmra.mrb[80].mxu1 %v2280_v32 }
 0x38c   : > { %7582 = vmatmul.mubr.bf16.gmra.mrb[76].mxu0 %v4086_v40  ;;  %v10267_v40 = vmul.u32.u64.low 3272356035, %v10250_v13  ;;  %v10268_v48 = vmul.u32.u64.high 3272356035, %v10250_v13, %v10267_v40  ;;  %v4509_v4 = vshrl.u32 %v4508_v51, 5 }
 0x38d   : > { %7585 = vmatprep.mubr.msk.bf16.mxu0 %vm8843_vm0, %v8842_v2  ;;  %v10203_v2 = vadd.s32 16, %v10190_v1 }
 0x38e   : > { %v10188_v62 = vpop.f32.mrb[16].mxu1  ;;  %vm4534_vm13 = vc.u32 %v10267_v40, 3272356035  ;;  %v4577_v40 = vsel %vm4576_vm2, 1, %v12080_v27 }
 0x38f   : > { %v7023_v53 = vpop.f32.mrb[17].mxu1  ;;  %v10214_v36 = vmul.u32.u64.low 3272356035, %v10203_v2  ;;  %v10215_v59 = vmul.u32.u64.high 3272356035, %v10203_v2, %v10214_v36 }
 0x390   : > { %v10192_v54 = vpop.f32.mrb[18].mxu1 }
 0x391   : > { %v7024_v43 = vpop.f32.mrb[19].mxu1  ;;  %vm4478_vm9 = vc.u32 %v10214_v36, 3272356035 }
 0x392   : > { %v4479_v34 = vsel %vm4478_vm9, 1, %v12080_v27  ;;  %v10274_v43 = vsub.s32 %v10190_v1, %v4454_v30 }
 0x393   : > { %v4480_v3 = vadd.s32 %v10215_v59, %v4479_v34  ;;  %v4495_v59 = vshrl.u32 %v4494_v49, 5 }
 0x394   : > { %7586 = vmatmul.mubr.bf16.gmra.mrb[80].mxu0 %v4088_v6  ;;  %v4468_v6 = vmul.u32 42, %v4467_v19  ;;  %vm5032_vm14 = vcmp.ne.s32.totalorder %v10274_v43, 0  ;;  %vm5074_vm15 = vcmp.lt.s32.totalorder %v10274_v43, 0  ;;  %v10314_v22 = vadd.s32 42, %v10274_v43 }
 0x395   : > { %v4481_v38 = vshrl.u32 %v4480_v3, 5  ;;  %v4496_v34 = vmul.u32 42, %v4495_v59  ;;  %vm10365_vm11 = vmand %vm5074_vm15, %vm5032_vm14 }
 0x396   : > { %v10205_v58 = vpop.f32.mrb[20].mxu1 }
 0x397   : > { %v7027_v20 = vpop.f32.mrb[21].mxu1  ;;  %v4482_v36 = vmul.u32 42, %v4481_v38  ;;  %v4524_v38 = vmul.u32 42, %v4523_v28  ;;  %v10331_v51 = vsub.s32 %v10218_v5, %v4496_v34  ;;  %v10346_v5 = vadd.s32 104, %v10190_v1 }
 0x398   : > { %v10211_v0 = vpop.f32.mrb[22].mxu1  ;;  %v10281_v20 = vmul.u32.u64.low 3272356035, %v10257_v39  ;;  %v10282_v9 = vmul.u32.u64.high 3272356035, %v10257_v39, %v10281_v20 }
 0x399   : > { %v7028_v44 = vpop.f32.mrb[23].mxu1  ;;  %v10317_v30 = vsub.s32 %v10203_v2, %v4482_v36  ;;  %vm5035_vm9 = vcmp.ne.s32.totalorder %v10331_v51, 0  ;;  %vm5077_vm10 = vcmp.lt.s32.totalorder %v10331_v51, 0 }
 0x39a   : > { %v10285_v21 = vmul.u32.u64.low 3272356035, %v10260_v46  ;;  %v10286_v44 = vmul.u32.u64.high 3272356035, %v10260_v46, %v10285_v21  ;;  %vm4548_vm0 = vc.u32 %v10281_v20, 3272356035  ;;  %v4591_v20 = vsel %vm4590_vm3, 1, %v12080_v27  ;;  %vm10403_vm3 = vmand %vm5077_vm10, %vm5035_vm9 }
 0x39b   : > { %v4549_v37 = vsel %vm4548_vm0, 1, %v12080_v27  ;;  %vm5034_vm7 = vcmp.ne.s32.totalorder %v10317_v30, 0  ;;  %vm5076_vm8 = vcmp.lt.s32.totalorder %v10317_v30, 0  ;;  %v4592_v23 = vadd.s32 %v10299_v10, %v4591_v20 }
 0x39c   : > { %vm4562_vm1 = vc.u32 %v10285_v21, 3272356035  ;;  %vm10388_vm15 = vmand %vm5076_vm8, %vm5034_vm7 }
 0x39d   : > { %v4563_v33 = vsel %vm4562_vm1, 1, %v12080_v27 }
 0x39e   : > { %v10232_v15 = vpop.f32.mrb[24].mxu1  ;;  %v4564_v45 = vadd.s32 %v10286_v44, %v4563_v33  ;;  %v4605_v44 = vsel %vm4604_vm6, 1, %v12080_v27  ;;  %v5160_v33 = vadd.s32 42, %v10317_v30 }
 0x39f   : > { %v7031_v61 = vpop.f32.mrb[25].mxu1  ;;  %v4606_v34 = vadd.s32 %v10309_v26, %v4605_v44  ;;  %v5200_v26 = vsel %vm10365_vm11, %v10314_v22, %v10274_v43 }
 0x3a0   : > { %v10243_v56 = vpop.f32.mrb[26].mxu1  ;;  %v10304_v61 = vsub.s32 %v10200_v55, %v4468_v6  ;;  %v4510_v55 = vmul.u32 42, %v4509_v4  ;;  %v4550_v6 = vadd.s32 %v10282_v9, %v4549_v37  ;;  %v4578_v9 = vadd.s32 %v10293_v7, %v4577_v40 }
 0x3a1   : > { %v7032_v57 = vpop.f32.mrb[27].mxu1  ;;  %v4565_v28 = vshrl.u32 %v4564_v45, 5  ;;  %v4593_v40 = vshrl.u32 %v4592_v23, 5  ;;  %v4607_v44 = vshrl.u32 %v4606_v34, 5  ;;  %vm10447_vm7 = vcmp.lt.s32.totalorder %v5200_v26, 40 }
 0x3a2   : > { %v4535_v57 = vsel %vm4534_vm13, 1, %v12080_v27  ;;  %vm5033_vm4 = vcmp.ne.s32.totalorder %v10304_v61, 0  ;;  %vm5075_vm5 = vcmp.lt.s32.totalorder %v10304_v61, 0  ;;  %v10328_v2 = vadd.s32 42, %v10304_v61 }
 0x3a3   : > { %v4536_v49 = vadd.s32 %v10268_v48, %v4535_v57  ;;  %v4551_v7 = vshrl.u32 %v4550_v6, 5  ;;  %vm10375_vm0 = vmand %vm5075_vm5, %vm5033_vm4  ;;  %v10381_v57 = vmul.u32.u64.low 3272356035, %v10346_v5  ;;  %v10382_v35 = vmul.u32.u64.high 3272356035, %v10346_v5, %v10381_v57 }
 0x3a4   : > { %v4579_v37 = vshrl.u32 %v4578_v9, 5  ;;  %v4566_v9 = vmul.u32 42, %v4565_v28 }
 0x3a5   : > { %v4537_v59 = vshrl.u32 %v4536_v49, 5  ;;  %v10408_v49 = vadd.s32 42, %v10331_v51  ;;  %v4552_v45 = vmul.u32 42, %v4551_v7  ;;  %vm4632_vm6 = vc.u32 %v10381_v57, 3272356035 }
 0x3a6   : > { %v10253_v17 = vpop.f32.mrb[28].mxu1  ;;  %v4580_v7 = vmul.u32 42, %v4579_v37  ;;  %v12127_v37 = vmov 0  }
 0x3a7   : > { %v7035_v42 = vpop.f32.mrb[29].mxu1 }
 0x3a8   : > { %v10263_v32 = vpop.f32.mrb[30].mxu1  ;;  %v10322_v42 = vadd.s32 96, %v10190_v1 }
 0x3a9   : > { %12106 = vst [vmem:[#allocation20_spill] sm:$0xff] %v10263_v32  ;;  %v7036_v53 = vpop.f32.mrb[31].mxu1 }
 0x3aa   : > { %v10335_v53 = vsub.s32 %v10222_v12, %v4510_v55  ;;  %v10342_v48 = vmul.u32.u64.low 3272356035, %v10322_v42  ;;  %v10343_v21 = vmul.u32.u64.high 3272356035, %v10322_v42, %v10342_v48  ;;  %v10351_v12 = vsub.s32 %v10225_v18, %v4524_v38 }
 0x3ab   : > { %v10470_v55 = vsub.s32 %v10257_v39, %v4552_v45  ;;  %v4608_v38 = vmul.u32 42, %v4607_v44  ;;  %v10487_v39 = vsub.s32 %v10271_v60, %v4580_v7  ;;  %v10504_v60 = vadd.s32 128, %v10190_v1 }
 0x3ac   : > { %vm5036_vm12 = vcmp.ne.s32.totalorder %v10335_v53, 0  ;;  %vm5078_vm13 = vcmp.lt.s32.totalorder %v10335_v53, 0  ;;  %vm4618_vm14 = vc.u32 %v10342_v48, 3272356035  ;;  %vm5037_vm1 = vcmp.ne.s32.totalorder %v10351_v12, 0 }
 0x3ad   : > { %vm5079_vm2 = vcmp.lt.s32.totalorder %v10351_v12, 0  ;;  %vm10414_vm4 = vmand %vm5078_vm13, %vm5036_vm12  ;;  %v10419_v22 = vadd.s32 42, %v10335_v53  ;;  %v10422_v6 = vadd.s32 42, %v10351_v12  ;;  %v4619_v20 = vsel %vm4618_vm14, 1, %v12080_v27 }
 0x3ae   : > { %v10301_v16 = vpop.f32.mrb[32].mxu1  ;;  %vm10428_vm5 = vmand %vm5079_vm2, %vm5037_vm1  ;;  %v5201_v48 = vsel %vm10375_vm0, %v10328_v2, %v10304_v61  ;;  %v5202_v27 = vsel %vm10388_vm15, %v5160_v33, %v10317_v30  ;;  %v5203_v61 = vsel %vm10403_vm3, %v10408_v49, %v10331_v51  ;;  %v4620_v2 = vadd.s32 %v10343_v21, %v4619_v20 }
 0x3af   : > { %12107 = vst [vmem:[#allocation21_spill] sm:$0xff] %v10301_v16  ;;  %v7039_v25 = vpop.f32.mrb[33].mxu1  ;;  %v4633_v51 = vsel %vm4632_vm6, 1, %v12127_v37  ;;  %vm10474_vm8 = vcmp.lt.s32.totalorder %v5201_v48, 40  ;;  %v10479_v33 = vsub.s32 %v10260_v46, %v4566_v9  ;;  %vm5039_vm11 = vcmp.ne.s32.totalorder %v10470_v55, 0 }
 0x3b0   : > { %v10311_v3 = vpop.f32.mrb[34].mxu1  ;;  %v4621_v46 = vshrl.u32 %v4620_v2, 5  ;;  %v4634_v9 = vadd.s32 %v10382_v35, %v4633_v51  ;;  %vm5081_vm12 = vcmp.lt.s32.totalorder %v10470_v55, 0  ;;  %v10507_v48 = vadd.s32 42, %v10470_v55 }
 0x3b1   : > { %12108 = vst [vmem:[#allocation22_spill] sm:$0xff] %v10311_v3  ;;  %v7040_v19 = vpop.f32.mrb[35].mxu1  ;;  %vm5040_vm13 = vcmp.ne.s32.totalorder %v10479_v33, 0  ;;  %vm10516_vm3 = vcmp.lt.s32.totalorder %v5202_v27, 40  ;;  %vm10536_vm1 = vmand %vm5081_vm12, %vm5039_vm11  ;;  %v10607_v16 = vadd.s32 136, %v10190_v1 }
 0x3b2   : > { %v4538_v19 = vmul.u32 42, %v4537_v59 }
 0x3b4   : > { %v10442_v18 = vsub.s32 %v10250_v13, %v4538_v19  ;;  %v4594_v13 = vmul.u32 42, %v4593_v40 }
 0x3b6   : > { %v10348_v36 = vpop.f32.mrb[36].mxu1  ;;  %vm5038_vm9 = vcmp.ne.s32.totalorder %v10442_v18, 0  ;;  %vm5080_vm10 = vcmp.lt.s32.totalorder %v10442_v18, 0  ;;  %v10495_v20 = vsub.s32 %v10278_v8, %v4594_v13  ;;  %v10499_v44 = vadd.s32 42, %v10442_v18 }
 0x3b7   : > { %12109 = vst [vmem:[#allocation23_spill] sm:$0xff] %v10348_v36  ;;  %v7043_v4 = vpop.f32.mrb[37].mxu1  ;;  %v10511_v8 = vsub.s32 %v10289_v11, %v4608_v38  ;;  %vm10524_vm6 = vmand %vm5080_vm10, %vm5038_vm9  ;;  %v4635_v13 = vshrl.u32 %v4634_v9, 5  ;;  %v10543_v38 = vmul.u32.u64.low 3272356035, %v10504_v60  ;;  %v10544_v30 = vmul.u32.u64.high 3272356035, %v10504_v60, %v10543_v38 }
 0x3b8   : > { %v10359_v24 = vpop.f32.mrb[38].mxu1  ;;  %v10433_v4 = vadd.s32 112, %v10190_v1  ;;  %vm5042_vm14 = vcmp.ne.s32.totalorder %v10495_v20, 0  ;;  %vm10546_vm9 = vcmp.lt.s32.totalorder %v5203_v61, 40  ;;  %vm12138_vm10 = vcmp.lt.s32.totalorder %v10479_v33, 0 }
 0x3b9   : > { %12110 = vst [vmem:[#allocation24_spill] sm:$0xff] %v10359_v24  ;;  %v7044_v25 = vpop.f32.mrb[39].mxu1  ;;  %vm10554_vm11 = vmand %vm12138_vm10, %vm5040_vm13  ;;  %vm5043_vm12 = vcmp.ne.s32.totalorder %v10511_v8, 0  ;;  %vm12141_vm13 = vcmp.ne.s32.totalorder %v10487_v39, 0  ;;  %vm12142_vm10 = vcmp.lt.s32.totalorder %v10487_v39, 0  ;;  %v10591_v34 = vadd.s32 42, %v10511_v8 }
 0x3ba   : > { %v10445_v25 = vadd.s32 120, %v10190_v1  ;;  %v10482_v49 = vmul.u32.u64.low 3272356035, %v10433_v4  ;;  %v10483_v40 = vmul.u32.u64.high 3272356035, %v10433_v4, %v10482_v49  ;;  %vm10572_vm15 = vmand %vm12142_vm10, %vm12141_vm13  ;;  %v5206_v21 = vsel %vm10524_vm6, %v10499_v44, %v10442_v18 }
 0x3bc   : > { %v10490_v57 = vmul.u32.u64.low 3272356035, %v10445_v25  ;;  %v10491_v45 = vmul.u32.u64.high 3272356035, %v10445_v25, %v10490_v57  ;;  %vm4646_vm0 = vc.u32 %v10482_v49, 3272356035  ;;  %v10559_v49 = vadd.s32 42, %v10479_v33 }
 0x3be   : > { %v10435_v23 = vpop.f32.mrb[40].mxu1  ;;  %vm4660_vm2 = vc.u32 %v10490_v57, 3272356035  ;;  %v10580_v57 = vadd.s32 42, %v10495_v20 }
 0x3bf   : > { %12123 = vst [vmem:[#allocation25_spill] sm:$0xff] %v10435_v23  ;;  %v7047_v28 = vpop.f32.mrb[41].mxu1  ;;  %v4661_v61 = vsel %vm4660_vm2, 1, %v12127_v37  ;;  %v10577_v23 = vadd.s32 42, %v10487_v39 }
 0x3c0   : > { %v10459_v10 = vpop.f32.mrb[42].mxu1  ;;  %v4622_v28 = vmul.u32 42, %v4621_v46  ;;  %v4662_v3 = vadd.s32 %v10491_v45, %v4661_v61  ;;  %v5208_v45 = vsel %vm10554_vm11, %v10559_v49, %v10479_v33  ;;  %v10768_v49 = vadd.s32 176, %v10190_v1 }
 0x3c1   : > { %12126 = vst [vmem:[#allocation26_spill] sm:$0xff] %v10459_v10  ;;  %v7048_v26 = vpop.f32.mrb[43].mxu1  ;;  %v10654_v51 = vmul.u32.u64.low 3272356035, %v10607_v16  ;;  %v10655_v61 = vmul.u32.u64.high 3272356035, %v10607_v16, %v10654_v51 }
 0x3c2   : > { %v4647_v26 = vsel %vm4646_vm0, 1, %v12127_v37  ;;  %vm5085_vm0 = vcmp.lt.s32.totalorder %v10511_v8, 0 }
 0x3c3   : > { %vm10601_vm13 = vmand %vm5085_vm0, %vm5043_vm12 }
 0x3c7   : > { %v4192_v35 = vpop.f32.mrb[0].mxu0 }
 0x3c8   : > { %v7605_v2 = vadd.f32 %v4192_v35, %v10143_v63  ;;  %v7507_v27 = vpop.f32.mrb[1].mxu0 }
 0x3c9   : > { %v4195_v46 = vpop.f32.mrb[2].mxu0 }
 0x3ca   : > { %v5284_v35 = vsel %vm10447_vm7, %v7605_v2, 0.0  ;;  %v7606_v27 = vadd.f32 %v4195_v46, %v10145_v14  ;;  %v7508_v19 = vpop.f32.mrb[3].mxu0  ;;  %vm12145_vm7 = vcmp.lt.s32.totalorder %v10495_v20, 0  ;;  %v4636_v2 = vmul.u32 42, %v4635_v13 }
 0x3cb   : > { %vm10586_vm2 = vmand %vm12145_vm7, %vm5042_vm14  ;;  %v10594_v19 = vsub.s32 %v10322_v42, %v4622_v28  ;;  %v4648_v46 = vadd.s32 %v10483_v40, %v4647_v26  ;;  %vm4674_vm14 = vc.u32 %v10543_v38, 3272356035  ;;  %v5422_v42 = vmul.f32 %v5284_v35, %v5284_v35 }
 0x3cc   : > { %v5285_v24 = vsel %vm10474_vm8, %v7606_v27, 0.0  ;;  %v5207_v40 = vsel %vm10536_vm1, %v10507_v48, %v10470_v55  ;;  %v10622_v26 = vadd.s32 144, %v10190_v1  ;;  %v12150_v55 = vsel %vm10414_vm4, %v10419_v22, %v10335_v53 }
 0x3cd   : > { %v5326_v28 = vpack.c.bf16 %v5285_v24, %v5284_v35  ;;  %v5372_v13 = vadd.f32 %v5285_v24, %v5284_v35  ;;  %v5423_v32 = vmul.f32 %v5285_v24, %v5285_v24  ;;  %vm10634_vm8 = vcmp.lt.s32.totalorder %v12150_v55, 40 }
 0x3ce   : > { %v5209_v48 = vsel %vm10572_vm15, %v10577_v23, %v10487_v39  ;;  %v4675_v11 = vsel %vm4674_vm14, 1, %v12127_v37  ;;  %v12153_v27 = vsel %vm10428_vm5, %v10422_v6, %v10351_v12  ;;  %vm5044_vm1 = vcmp.ne.s32.totalorder %v10594_v19, 0 }
 0x3cf   : > { %5350 = vst [vmem:[%s10626_s30] sm:$0xff] %v5326_v28  ;;  %v5464_v24 = vadd.f32 %v5423_v32, %v5422_v42  ;;  %v4200_v18 = vpop.f32.mrb[4].mxu0  ;;  %vm10662_vm4 = vcmp.lt.s32.totalorder %v12153_v27, 40  ;;  %v4649_v38 = vshrl.u32 %v4648_v46, 5  ;;  %v4663_v28 = vshrl.u32 %v4662_v3, 5 }
 0x3d0   : > { %v7607_v53 = vadd.f32 %v4200_v18, %v10156_v29  ;;  %v7511_v22 = vpop.f32.mrb[5].mxu0  ;;  %v10668_v29 = vsub.s32 %v10346_v5, %v4636_v2  ;;  %v4676_v43 = vadd.s32 %v10544_v30, %v4675_v11  ;;  %v10679_v5 = vadd.s32 152, %v10190_v1 }
 0x3d1   : > { %v4203_v35 = vpop.f32.mrb[6].mxu0  ;;  %v10674_v22 = vmul.u32.u64.low 3272356035, %v10622_v26  ;;  %v10675_v12 = vmul.u32.u64.high 3272356035, %v10622_v26, %v10674_v22  ;;  %vm5086_vm5 = vcmp.lt.s32.totalorder %v10594_v19, 0  ;;  %v4650_v30 = vmul.u32 42, %v4649_v38 }
 0x3d2   : > { %v5286_v18 = vsel %vm10516_vm3, %v7607_v53, 0.0  ;;  %v7608_v55 = vadd.f32 %v4203_v35, %v10158_v41  ;;  %v7512_v59 = vpop.f32.mrb[7].mxu0  ;;  %vm4688_vm3 = vc.u32 %v10654_v51, 3272356035  ;;  %v10685_v41 = vadd.s32 160, %v10190_v1  ;;  %vm10730_vm7 = vmand %vm5086_vm5, %vm5044_vm1 }
 0x3d3   : > { %v5373_v6 = vadd.f32 %v5372_v13, %v5286_v18  ;;  %v5424_v27 = vmul.f32 %v5286_v18, %v5286_v18  ;;  %v10688_v53 = vadd.s32 42, %v10594_v19  ;;  %v4664_v11 = vmul.u32 42, %v4663_v28 }
 0x3d4   : > { %v5287_v3 = vsel %vm10546_vm9, %v7608_v55, 0.0  ;;  %vm4702_vm6 = vc.u32 %v10674_v22, 3272356035  ;;  %vm10691_vm9 = vcmp.lt.s32.totalorder %v5206_v21, 40  ;;  %v4677_v59 = vshrl.u32 %v4676_v43, 5 }
 0x3d5   : > { %v5465_v7 = vadd.f32 %v5464_v24, %v5424_v27  ;;  %v5327_v2 = vpack.c.bf16 %v5287_v3, %v5286_v18  ;;  %v5374_v46 = vadd.f32 %v5373_v6, %v5287_v3  ;;  %v5425_v13 = vmul.f32 %v5287_v3, %v5287_v3 }
 0x3d6   : > { %v10696_v32 = vmul.u32.u64.low 3272356035, %v10679_v5  ;;  %v10697_v24 = vmul.u32.u64.high 3272356035, %v10679_v5, %v10696_v32  ;;  %v4689_v38 = vsel %vm4688_vm3, 1, %v12127_v37  ;;  %vm10706_vm12 = vcmp.lt.s32.totalorder %v5207_v40, 40 }
 0x3d7   : > { %5351 = vst [vmem:[%s10626_s30 + $0x8] sm:$0xff] %v5327_v2  ;;  %v5466_v35 = vadd.f32 %v5465_v7, %v5425_v13  ;;  %v4208_v63 = vpop.f32.mrb[8].mxu0  ;;  %v10703_v28 = vmul.u32.u64.low 3272356035, %v10685_v41  ;;  %v10704_v27 = vmul.u32.u64.high 3272356035, %v10685_v41, %v10703_v28  ;;  %vm5045_vm0 = vcmp.ne.s32.totalorder %v10668_v29, 0 }
 0x3d8   : > { %v7609_v18 = vadd.f32 %v4208_v63, %v10168_v47  ;;  %v7515_v6 = vpop.f32.mrb[9].mxu0  ;;  %vm5087_vm10 = vcmp.lt.s32.totalorder %v10668_v29, 0  ;;  %v10713_v43 = vadd.s32 42, %v10668_v29  ;;  %v4703_v47 = vsel %vm4702_vm6, 1, %v12127_v37 }
 0x3d9   : > { %v4211_v3 = vpop.f32.mrb[10].mxu0  ;;  %v10721_v40 = vsub.s32 %v10433_v4, %v4650_v30  ;;  %v10724_v13 = vsub.s32 %v10445_v25, %v4664_v11  ;;  %v4678_v44 = vmul.u32 42, %v4677_v59  ;;  %v4704_v25 = vadd.s32 %v10675_v12, %v4703_v47  ;;  %vm10796_vm15 = vmand %vm5087_vm10, %vm5045_vm0 }
 0x3da   : > { %v5288_v51 = vsel %vm10634_vm8, %v7609_v18, 0.0  ;;  %v7610_v7 = vadd.f32 %v4211_v3, %v10170_v31  ;;  %v7516_v2 = vpop.f32.mrb[11].mxu0  ;;  %v4690_v31 = vadd.s32 %v10655_v61, %v4689_v38  ;;  %vm4716_vm14 = vc.u32 %v10696_v32, 3272356035 }
 0x3db   : > { %v5375_v63 = vadd.f32 %v5374_v46, %v5288_v51  ;;  %v5426_v6 = vmul.f32 %v5288_v51, %v5288_v51  ;;  %vm4730_vm8 = vc.u32 %v10703_v28, 3272356035  ;;  %v5212_v3 = vsel %vm10730_vm7, %v10688_v53, %v10594_v19 }
 0x3dc   : > { %v5289_v4 = vsel %vm10662_vm4, %v7610_v7, 0.0  ;;  %vm5046_vm1 = vcmp.ne.s32.totalorder %v10721_v40, 0  ;;  %vm5088_vm5 = vcmp.lt.s32.totalorder %v10721_v40, 0  ;;  %v10745_v61 = vadd.s32 168, %v10190_v1 }
 0x3dd   : > { %v5467_v46 = vadd.f32 %v5466_v35, %v5426_v6  ;;  %v5328_v30 = vpack.c.bf16 %v5289_v4, %v5288_v51  ;;  %v5376_v11 = vadd.f32 %v5375_v63, %v5289_v4  ;;  %v5427_v18 = vmul.f32 %v5289_v4, %v5289_v4 }
 0x3de   : > { %vm10753_vm4 = vcmp.lt.s32.totalorder %v5208_v45, 40  ;;  %v10758_v59 = vadd.s32 42, %v10721_v40  ;;  %vm5047_vm3 = vcmp.ne.s32.totalorder %v10724_v13, 0  ;;  %vm5089_vm6 = vcmp.lt.s32.totalorder %v10724_v13, 0 }
 0x3df   : > { %5352 = vst [vmem:[%s10626_s30 + $0x10] sm:$0xff] %v5328_v30  ;;  %v5468_v42 = vadd.f32 %v5467_v46, %v5427_v18  ;;  %v4216_v12 = vpop.f32.mrb[12].mxu0  ;;  %v4717_v9 = vsel %vm4716_vm14, 1, %v12127_v37  ;;  %v4731_v33 = vsel %vm4730_vm8, 1, %v12127_v37  ;;  %vm10775_vm11 = vcmp.lt.s32.totalorder %v5209_v48, 40 }
 0x3e0   : > { %v7611_v38 = vadd.f32 %v4216_v12, %v10179_v50  ;;  %v7519_v47 = vpop.f32.mrb[13].mxu0  ;;  %v10780_v50 = vadd.s32 42, %v10724_v13  ;;  %v10783_v32 = vsub.s32 %v10504_v60, %v4678_v44  ;;  %v4691_v28 = vshrl.u32 %v4690_v31, 5 }
 0x3e1   : > { %v4219_v45 = vpop.f32.mrb[14].mxu0  ;;  %v4705_v7 = vshrl.u32 %v4704_v25, 5  ;;  %v10789_v23 = vmul.u32.u64.low 3272356035, %v10745_v61  ;;  %v10790_v39 = vmul.u32.u64.high 3272356035, %v10745_v61, %v10789_v23  ;;  %v4718_v55 = vadd.s32 %v10697_v24, %v4717_v9 }
 0x3e2   : > { %v5290_v2 = vsel %vm10691_vm9, %v7611_v38, 0.0  ;;  %v7612_v10 = vadd.f32 %v4219_v45, %v10181_v52  ;;  %v7520_v63 = vpop.f32.mrb[15].mxu0  ;;  %v4732_v52 = vadd.s32 %v10704_v27, %v4731_v33  ;;  %vm10808_vm9 = vmand %vm5088_vm5, %vm5046_vm1  ;;  %v10817_v46 = vadd.s32 184, %v10190_v1 }
 0x3e3   : > { %v5377_v48 = vadd.f32 %v5376_v11, %v5290_v2  ;;  %v5428_v6 = vmul.f32 %v5290_v2, %v5290_v2  ;;  %v10813_v4 = vmul.u32.u64.low 3272356035, %v10768_v49  ;;  %v10814_v25 = vmul.u32.u64.high 3272356035, %v10768_v49, %v10813_v4 }
 0x3e4   : > { %v5291_v44 = vsel %vm10706_vm12, %v7612_v10, 0.0  ;;  %v5213_v11 = vsel %vm10796_vm15, %v10713_v43, %v10668_v29  ;;  %vm10827_vm12 = vmand %vm5089_vm6, %vm5047_vm3  ;;  %v4692_v12 = vmul.u32 42, %v4691_v28  ;;  %v4706_v38 = vmul.u32 42, %v4705_v7 }
 0x3e5   : > { %v5469_v24 = vadd.f32 %v5468_v42, %v5428_v6  ;;  %v5329_v27 = vpack.c.bf16 %v5291_v44, %v5290_v2  ;;  %v5378_v30 = vadd.f32 %v5377_v48, %v5291_v44  ;;  %v5429_v21 = vmul.f32 %v5291_v44, %v5291_v44 }
 0x3e6   : > { %vm4744_vm0 = vc.u32 %v10789_v23, 3272356035  ;;  %v12172_v9 = vsel %vm10586_vm2, %v10580_v57, %v10495_v20  ;;  %v5214_v43 = vsel %vm10808_vm9, %v10758_v59, %v10721_v40  ;;  %v4719_v33 = vshrl.u32 %v4718_v55, 5 }
 0x3e7   : > { %5353 = vst [vmem:[%s10626_s30 + $0x18] sm:$0xff] %v5329_v27  ;;  %v5470_v42 = vadd.f32 %v5469_v24, %v5429_v21  ;;  %v4224_v47 = vpop.f32.mrb[16].mxu0  ;;  %vm10837_vm10 = vcmp.lt.s32.totalorder %v12172_v9, 40  ;;  %v4733_v45 = vshrl.u32 %v4732_v52, 5  ;;  %vm4758_vm14 = vc.u32 %v10813_v4, 3272356035 }
 0x3e8   : > { %v7613_v28 = vadd.f32 %v4224_v47, %v10188_v62  ;;  %v7523_v7 = vpop.f32.mrb[17].mxu0  ;;  %v10847_v14 = vmul.u32.u64.low 3272356035, %v10817_v46  ;;  %v10848_v2 = vmul.u32.u64.high 3272356035, %v10817_v46, %v10847_v14  ;;  %v12175_v57 = vsel %vm10601_vm13, %v10591_v34, %v10511_v8 }
 0x3e9   : > { %v4227_v20 = vpop.f32.mrb[18].mxu0  ;;  %vm10855_vm2 = vcmp.lt.s32.totalorder %v12175_v57, 40  ;;  %v5215_v62 = vsel %vm10827_vm12, %v10780_v50, %v10724_v13  ;;  %vm5048_vm8 = vcmp.ne.s32.totalorder %v10783_v32, 0  ;;  %vm5090_vm1 = vcmp.lt.s32.totalorder %v10783_v32, 0 }
 0x3ea   : > { %v4745_v63 = vsel %vm4744_vm0, 1, %v12127_v37  ;;  %v5292_v36 = vsel %vm10753_vm4, %v7613_v28, 0.0  ;;  %v7614_v8 = vadd.f32 %v4227_v20, %v10192_v54  ;;  %v7524_v34 = vpop.f32.mrb[19].mxu0  ;;  %v10871_v48 = vsub.s32 %v10607_v16, %v4692_v12  ;;  %vm10918_vm15 = vmand %vm5090_vm1, %vm5048_vm8 }
 0x3eb   : > { %v10874_v6 = vsub.s32 %v10622_v26, %v4706_v38  ;;  %v5379_v60 = vadd.f32 %v5378_v30, %v5292_v36  ;;  %v5430_v55 = vmul.f32 %v5292_v36, %v5292_v36  ;;  %v4720_v52 = vmul.u32 42, %v4719_v33 }
 0x3ec   : > { %v4759_v23 = vsel %vm4758_vm14, 1, %v12127_v37  ;;  %v5293_v35 = vsel %vm10775_vm11, %v7614_v8, 0.0  ;;  %v4734_v44 = vmul.u32 42, %v4733_v45  ;;  %v4746_v54 = vadd.s32 %v10790_v39, %v4745_v63 }
 0x3ed   : > { %vm4772_vm13 = vc.u32 %v10847_v14, 3272356035  ;;  %v5471_v24 = vadd.f32 %v5470_v42, %v5430_v55  ;;  %v5330_v16 = vpack.c.bf16 %v5293_v35, %v5292_v36  ;;  %v5380_v27 = vadd.f32 %v5379_v60, %v5293_v35 }
 0x3ee   : > { %v5431_v21 = vmul.f32 %v5293_v35, %v5293_v35  ;;  %v10882_v26 = vadd.s32 42, %v10783_v32  ;;  %vm5049_vm5 = vcmp.ne.s32.totalorder %v10871_v48, 0  ;;  %vm5091_vm4 = vcmp.lt.s32.totalorder %v10871_v48, 0 }
 0x3ef   : > { %v4760_v4 = vadd.s32 %v10814_v25, %v4759_v23  ;;  %5354 = vst [vmem:[%s10626_s30 + $0x20] sm:$0xff] %v5330_v16  ;;  %v4232_v30 = vpop.f32.mrb[20].mxu0  ;;  %vm10893_vm3 = vcmp.lt.s32.totalorder %v5212_v3, 40  ;;  %v10898_v12 = vadd.s32 42, %v10871_v48  ;;  %v4773_v38 = vsel %vm4772_vm13, 1, %v12127_v37  ;;  %vm10938_vm0 = vmand %vm5091_vm4, %vm5049_vm5 }
 0x3f0   : > { %v5472_v51 = vadd.f32 %v5471_v24, %v5431_v21  ;;  %v10902_v42 = vadd.s32 192, %v10190_v1  ;;  %v7615_v25 = vadd.f32 %v4232_v30, %v10205_v58  ;;  %v7527_v47 = vpop.f32.mrb[21].mxu0  ;;  %vm5050_vm6 = vcmp.ne.s32.totalorder %v10874_v6, 0 }
 0x3f1   : > { %vm5092_vm11 = vcmp.lt.s32.totalorder %v10874_v6, 0  ;;  %v10908_v19 = vadd.s32 200, %v10190_v1  ;;  %v4235_v53 = vpop.f32.mrb[22].mxu0  ;;  %vm10910_vm7 = vcmp.lt.s32.totalorder %v5213_v11, 40  ;;  %v10923_v58 = vadd.s32 42, %v10874_v6 }
 0x3f2   : > { %v10926_v9 = vsub.s32 %v10679_v5, %v4720_v52  ;;  %v10929_v33 = vsub.s32 %v10685_v41, %v4734_v44  ;;  %v4747_v11 = vshrl.u32 %v4746_v54, 5  ;;  %v5294_v45 = vsel %vm10837_vm10, %v7615_v25, 0.0  ;;  %v7528_v7 = vpop.f32.mrb[23].mxu0  ;;  %vm10947_vm10 = vmand %vm5092_vm11, %vm5050_vm6 }
 0x3f3   : > { %v7616_v28 = vadd.f32 %v4235_v53, %v10211_v0  ;;  %v4761_v5 = vshrl.u32 %v4760_v4, 5  ;;  %v4774_v20 = vadd.s32 %v10848_v2, %v4773_v38  ;;  %v5381_v41 = vadd.f32 %v5380_v27, %v5294_v45 }
 0x3f4   : > { %v5432_v57 = vmul.f32 %v5294_v45, %v5294_v45  ;;  %v10952_v29 = vmul.u32.u64.low 3272356035, %v10902_v42  ;;  %v10953_v63 = vmul.u32.u64.high 3272356035, %v10902_v42, %v10952_v29  ;;  %v10962_v34 = vadd.s32 208, %v10190_v1 }
 0x3f5   : > { %v5295_v36 = vsel %vm10855_vm2, %v7616_v28, 0.0  ;;  %v10958_v2 = vmul.u32.u64.low 3272356035, %v10908_v19  ;;  %v10959_v8 = vmul.u32.u64.high 3272356035, %v10908_v19, %v10958_v2  ;;  %v5216_v35 = vsel %vm10918_vm15, %v10882_v26, %v10783_v32 }
 0x3f6   : > { %v5473_v60 = vadd.f32 %v5472_v51, %v5432_v57  ;;  %v5331_v55 = vpack.c.bf16 %v5295_v36, %v5294_v45  ;;  %v5382_v52 = vadd.f32 %v5381_v41, %v5295_v36  ;;  %v5433_v23 = vmul.f32 %v5295_v36, %v5295_v36 }
 0x3f7   : > { %v5217_v10 = vsel %vm10938_vm0, %v10898_v12, %v10871_v48  ;;  %v5218_v44 = vsel %vm10947_vm10, %v10923_v58, %v10874_v6  ;;  %v4748_v54 = vmul.u32 42, %v4747_v11  ;;  %v4240_v16 = vpop.f32.mrb[24].mxu0  ;;  %vm10982_vm14 = vcmp.lt.s32.totalorder %v5214_v43, 40 }
 0x3f8   : > { %5355 = vst [vmem:[%s10626_s30 + $0x28] sm:$0xff] %v5331_v55  ;;  %v5474_v24 = vadd.f32 %v5473_v60, %v5433_v23  ;;  %v4762_v27 = vmul.u32 42, %v4761_v5  ;;  %v4775_v21 = vshrl.u32 %v4774_v20, 5  ;;  %vm4786_vm2 = vc.u32 %v10952_v29, 3272356035  ;;  %v7531_v4 = vpop.f32.mrb[25].mxu0 }
 0x3f9   : > { %v7617_v26 = vadd.f32 %v4240_v16, %v10232_v15  ;;  %vm5051_vm8 = vcmp.ne.s32.totalorder %v10926_v9, 0  ;;  %vm4800_vm1 = vc.u32 %v10958_v2, 3272356035  ;;  %v4243_v31 = vpop.f32.mrb[26].mxu0  ;;  %vm10997_vm9 = vcmp.lt.s32.totalorder %v5215_v62, 40  ;;  %v12194_v23 = vld [vmem:[#allocation20_spill] sm:$0xff] }
 0x3fa   : > { %v10989_v51 = vmul.u32.u64.low 3272356035, %v10962_v34  ;;  %v10990_v30 = vmul.u32.u64.high 3272356035, %v10962_v34, %v10989_v51  ;;  %vm5093_vm13 = vcmp.lt.s32.totalorder %v10926_v9, 0  ;;  %v11003_v15 = vadd.s32 42, %v10926_v9  ;;  %v7532_v43 = vpop.f32.mrb[27].mxu0 }
 0x3fb   : > { %vm5052_vm5 = vcmp.ne.s32.totalorder %v10929_v33, 0  ;;  %vm5094_vm4 = vcmp.lt.s32.totalorder %v10929_v33, 0  ;;  %v5296_v59 = vsel %vm10893_vm3, %v7617_v26, 0.0  ;;  %v7618_v18 = vadd.f32 %v4243_v31, %v10243_v56 }
 0x3fc   : > { %v11011_v13 = vsub.s32 %v10745_v61, %v4748_v54  ;;  %v4787_v50 = vsel %vm4786_vm2, 1, %v12127_v37  ;;  %v5383_v62 = vadd.f32 %v5382_v52, %v5296_v59  ;;  %v5434_v38 = vmul.f32 %v5296_v59, %v5296_v59  ;;  %vm11065_vm2 = vmand %vm5093_vm13, %vm5051_vm8 }
 0x3fd   : > { %v4801_v25 = vsel %vm4800_vm1, 1, %v12127_v37  ;;  %v11018_v47 = vadd.s32 216, %v10190_v1  ;;  %v5297_v39 = vsel %vm10910_vm7, %v7618_v18, 0.0  ;;  %v11023_v56 = vsub.s32 %v10768_v49, %v4762_v27 }
 0x3fe   : > { %v4776_v61 = vmul.u32 42, %v4775_v21  ;;  %vm4814_vm12 = vc.u32 %v10989_v51, 3272356035  ;;  %v5475_v53 = vadd.f32 %v5474_v24, %v5434_v38  ;;  %v5332_v3 = vpack.c.bf16 %v5297_v39, %v5296_v59 }
 0x3ff   : > { %v5384_v11 = vadd.f32 %v5383_v62, %v5297_v39  ;;  %v5435_v45 = vmul.f32 %v5297_v39, %v5297_v39  ;;  %v11026_v28 = vadd.s32 42, %v10929_v33  ;;  %vm5053_vm3 = vcmp.ne.s32.totalorder %v11011_v13, 0  ;;  %v4248_v20 = vpop.f32.mrb[28].mxu0 }
 0x400   : > { %v4788_v7 = vadd.s32 %v10953_v63, %v4787_v50  ;;  %v4802_v5 = vadd.s32 %v10959_v8, %v4801_v25  ;;  %5356 = vst [vmem:[%s10626_s30 + $0x30] sm:$0xff] %v5332_v3  ;;  %vm11032_vm6 = vcmp.lt.s32.totalorder %v5216_v35, 40  ;;  %vm5095_vm11 = vcmp.lt.s32.totalorder %v11011_v13, 0  ;;  %v7535_v36 = vpop.f32.mrb[29].mxu0 }
 0x401   : > { %v5476_v22 = vadd.f32 %v5475_v53, %v5435_v45  ;;  %v11038_v41 = vmul.u32.u64.low 3272356035, %v11018_v47  ;;  %v11039_v57 = vmul.u32.u64.high 3272356035, %v11018_v47, %v11038_v41  ;;  %v7619_v29 = vadd.f32 %v4248_v20, %v10253_v17  ;;  %v4251_v60 = vpop.f32.mrb[30].mxu0  ;;  %vm11091_vm8 = vmand %vm5095_vm11, %vm5053_vm3  ;;  %v12207_v53 = vld [vmem:[#allocation21_spill] sm:$0xff] }
 0x402   : > { %v11043_v63 = vadd.s32 42, %v11011_v13  ;;  %v4815_v2 = vsel %vm4814_vm12, 1, %v12127_v37  ;;  %v11048_v8 = vadd.s32 224, %v10190_v1  ;;  %vm5054_vm7 = vcmp.ne.s32.totalorder %v11023_v56, 0  ;;  %v7536_v54 = vpop.f32.mrb[31].mxu0 }
 0x403   : > { %vm5096_vm15 = vcmp.lt.s32.totalorder %v11023_v56, 0  ;;  %v11053_v55 = vadd.s32 42, %v11023_v56  ;;  %v11056_v17 = vsub.s32 %v10817_v46, %v4776_v61  ;;  %v5298_v52 = vsel %vm10982_vm14, %v7619_v29, 0.0  ;;  %vm11076_vm14 = vmand %vm5094_vm4, %vm5052_vm5 }
 0x404   : > { %v7620_v35 = vadd.f32 %v4251_v60, %v12194_v23  ;;  %v4789_v24 = vshrl.u32 %v4788_v7, 5  ;;  %v4803_v16 = vshrl.u32 %v4802_v5, 5  ;;  %v5385_v27 = vadd.f32 %v5384_v11, %v5298_v52  ;;  %vm11112_vm13 = vmand %vm5096_vm15, %vm5054_vm7  ;;  %v12210_v7 = vld [vmem:[#allocation22_spill] sm:$0xff] }
 0x405   : > { %v5436_v21 = vmul.f32 %v5298_v52, %v5298_v52  ;;  %v4816_v46 = vadd.s32 %v10990_v30, %v4815_v2  ;;  %vm4828_vm1 = vc.u32 %v11038_v41, 3272356035  ;;  %v11085_v59 = vadd.s32 232, %v10190_v1 }
 0x406   : > { %v5299_v32 = vsel %vm10997_vm9, %v7620_v35, 0.0  ;;  %v11081_v51 = vmul.u32.u64.low 3272356035, %v11048_v8  ;;  %v11082_v31 = vmul.u32.u64.high 3272356035, %v11048_v8, %v11081_v51  ;;  %vm11100_vm9 = vcmp.lt.s32.totalorder %v5217_v10, 40 }
 0x407   : > { %v5477_v30 = vadd.f32 %v5476_v22, %v5436_v21  ;;  %v5333_v18 = vpack.c.bf16 %v5299_v32, %v5298_v52  ;;  %v5386_v43 = vadd.f32 %v5385_v27, %v5299_v32  ;;  %v5437_v40 = vmul.f32 %v5299_v32, %v5299_v32  ;;  %v4256_v12 = vpop.f32.mrb[32].mxu0 }
 0x408   : > { %v5219_v38 = vsel %vm11065_vm2, %v11003_v15, %v10926_v9  ;;  %v4790_v14 = vmul.u32 42, %v4789_v24  ;;  %v4804_v39 = vmul.u32 42, %v4803_v16  ;;  %vm11122_vm0 = vcmp.lt.s32.totalorder %v5218_v44, 40  ;;  %v7539_v11 = vpop.f32.mrb[33].mxu0 }
 0x409   : > { %5357 = vst [vmem:[%s10626_s30 + $0x38] sm:$0xff] %v5333_v18  ;;  %v5478_v48 = vadd.f32 %v5477_v30, %v5437_v40  ;;  %v5220_v10 = vsel %vm11076_vm14, %v11026_v28, %v10929_v33  ;;  %v4817_v15 = vshrl.u32 %v4816_v46, 5  ;;  %v4829_v61 = vsel %vm4828_vm1, 1, %v12127_v37  ;;  %v4259_v58 = vpop.f32.mrb[34].mxu0  ;;  %v12213_v46 = vld [vmem:[#allocation23_spill] sm:$0xff] }
 0x40a   : > { %v7621_v3 = vadd.f32 %v4256_v12, %v12207_v53  ;;  %vm4842_vm5 = vc.u32 %v11081_v51, 3272356035  ;;  %v11134_v0 = vmul.u32.u64.low 3272356035, %v11085_v59  ;;  %v11135_v6 = vmul.u32.u64.high 3272356035, %v11085_v59, %v11134_v0  ;;  %v7540_v22 = vpop.f32.mrb[35].mxu0 }
 0x40b   : > { %vm11137_vm10 = vcmp.lt.s32.totalorder %v5219_v38, 40  ;;  %v5221_v33 = vsel %vm11091_vm8, %v11043_v63, %v11011_v13  ;;  %v5222_v45 = vsel %vm11112_vm13, %v11053_v55, %v11023_v56  ;;  %vm5055_vm4 = vcmp.ne.s32.totalorder %v11056_v17, 0  ;;  %v12216_v38 = vld [vmem:[#allocation24_spill] sm:$0xff] }
 0x40c   : > { %vm5097_vm12 = vcmp.lt.s32.totalorder %v11056_v17, 0  ;;  %v5300_v28 = vsel %vm11032_vm6, %v7621_v3, 0.0  ;;  %v7622_v5 = vadd.f32 %v4259_v58, %v12210_v7  ;;  %v11155_v20 = vsub.s32 %v10902_v42, %v4790_v14 }
 0x40d   : > { %v11158_v13 = vsub.s32 %v10908_v19, %v4804_v39  ;;  %v5387_v41 = vadd.f32 %v5386_v43, %v5300_v28  ;;  %v5438_v29 = vmul.f32 %v5300_v28, %v5300_v28  ;;  %v4830_v36 = vadd.s32 %v11039_v57, %v4829_v61  ;;  %vm11210_vm14 = vmand %vm5097_vm12, %vm5055_vm4 }
 0x40e   : > { %v4843_v63 = vsel %vm4842_vm5, 1, %v12127_v37  ;;  %v5301_v49 = vsel %vm11100_vm9, %v7622_v5, 0.0  ;;  %v4818_v2 = vmul.u32 42, %v4817_v15  ;;  %vm4856_vm3 = vc.u32 %v11134_v0, 3272356035 }
 0x40f   : > { %v11166_v60 = vadd.s32 240, %v10190_v1  ;;  %v5479_v42 = vadd.f32 %v5478_v48, %v5438_v29  ;;  %v5334_v52 = vpack.c.bf16 %v5301_v49, %v5300_v28  ;;  %v5388_v19 = vadd.f32 %v5387_v41, %v5301_v49  ;;  %v4264_v24 = vpop.f32.mrb[36].mxu0 }
 0x410   : > { %v5439_v23 = vmul.f32 %v5301_v49, %v5301_v49  ;;  %v5181_v35 = vadd.s32 42, %v11056_v17  ;;  %vm5056_vm6 = vcmp.ne.s32.totalorder %v11155_v20, 0  ;;  %vm5098_vm11 = vcmp.lt.s32.totalorder %v11155_v20, 0  ;;  %v7543_v4 = vpop.f32.mrb[37].mxu0 }
 0x411   : > { %v4844_v57 = vadd.s32 %v11082_v31, %v4843_v63  ;;  %5358 = vst [vmem:[%s10626_s30 + $0x40] sm:$0xff] %v5334_v52  ;;  %vm11173_vm7 = vcmp.lt.s32.totalorder %v5220_v10, 40  ;;  %v11178_v27 = vadd.s32 42, %v11155_v20  ;;  %v4857_v21 = vsel %vm4856_vm3, 1, %v12127_v37  ;;  %v4267_v18 = vpop.f32.mrb[38].mxu0  ;;  %vm11227_vm9 = vmand %vm5098_vm11, %vm5056_vm6 }
 0x412   : > { %v5480_v54 = vadd.f32 %v5479_v42, %v5439_v23  ;;  %v11183_v26 = vadd.s32 248, %v10190_v1  ;;  %v7623_v32 = vadd.f32 %v4264_v24, %v12213_v46  ;;  %v4831_v51 = vshrl.u32 %v4830_v36, 5  ;;  %v7544_v39 = vpop.f32.mrb[39].mxu0 }
 0x413   : > { %v11187_v31 = vmul.u32.u64.low 3272356035, %v11166_v60  ;;  %v11188_v30 = vmul.u32.u64.high 3272356035, %v11166_v60, %v11187_v31  ;;  %vm11190_vm15 = vcmp.lt.s32.totalorder %v5221_v33, 40  ;;  %vm5057_vm2 = vcmp.ne.s32.totalorder %v11158_v13, 0 }
 0x414   : > { %vm5099_vm1 = vcmp.lt.s32.totalorder %v11158_v13, 0  ;;  %v11197_v40 = vadd.s32 42, %v11158_v13  ;;  %v11200_v50 = vsub.s32 %v10962_v34, %v4818_v2  ;;  %v5302_v62 = vsel %vm11122_vm0, %v7623_v32, 0.0  ;;  %v12225_v2 = vld [vmem:[#allocation25_spill] sm:$0xff]  ;;  %v12228_v32 = vld [vmem:[#allocation26_spill] sm:$0xff] }
 0x415   : > { %v7624_v14 = vadd.f32 %v4267_v18, %v12216_v38  ;;  %v4845_v48 = vshrl.u32 %v4844_v57, 5  ;;  %v4858_v12 = vadd.s32 %v11135_v6, %v4857_v21  ;;  %v5389_v10 = vadd.f32 %v5388_v19, %v5302_v62  ;;  %vm11238_vm0 = vmand %vm5099_vm1, %vm5057_vm2 }
 0x416   : > { %v5440_v15 = vmul.f32 %v5302_v62, %v5302_v62  ;;  %v11215_v34 = vmul.u32.u64.low 3272356035, %v11183_v26  ;;  %v11216_v9 = vmul.u32.u64.high 3272356035, %v11183_v26, %v11215_v34  ;;  %v4832_v3 = vmul.u32 42, %v4831_v51  ;;  %v2472_v44 = vpop.f32.mrb[44].mxu1 }
 0x417   : > { %v5303_v53 = vsel %vm11137_vm10, %v7624_v14, 0.0  ;;  %vm4870_vm8 = vc.u32 %v11187_v31, 3272356035  ;;  %v11221_v11 = vadd.s32 256, %v10190_v1  ;;  %v5223_v7 = vsel %vm11210_vm14, %v5181_v35, %v11056_v17  ;;  %v4272_v29 = vpop.f32.mrb[40].mxu0  ;;  %v7151_v36 = vpop.f32.mrb[45].mxu1 }
 0x418   : > { %v5481_v0 = vadd.f32 %v5480_v54, %v5440_v15  ;;  %v5335_v6 = vpack.c.bf16 %v5303_v53, %v5302_v62  ;;  %v5390_v58 = vadd.f32 %v5389_v10, %v5303_v53  ;;  %v5441_v33 = vmul.f32 %v5303_v53, %v5303_v53  ;;  %v7547_v52 = vpop.f32.mrb[41].mxu0  ;;  %v2475_v19 = vpop.f32.mrb[46].mxu1 }
 0x419   : > { %vm5058_vm5 = vcmp.ne.s32.totalorder %v11200_v50, 0  ;;  %vm5100_vm10 = vcmp.lt.s32.totalorder %v11200_v50, 0  ;;  %v4846_v22 = vmul.u32 42, %v4845_v48  ;;  %vm11250_vm4 = vcmp.lt.s32.totalorder %v5222_v45, 40  ;;  %v4275_v56 = vpop.f32.mrb[42].mxu0  ;;  %v7152_v55 = vpop.f32.mrb[47].mxu1 }
 0x41a   : > { %5359 = vst [vmem:[%s10626_s30 + $0x48] sm:$0xff] %v5335_v6  ;;  %v5482_v41 = vadd.f32 %v5481_v0, %v5441_v33  ;;  %v4859_v63 = vshrl.u32 %v4858_v12, 5  ;;  %v4871_v49 = vsel %vm4870_vm8, 1, %v12127_v37  ;;  %vm4884_vm12 = vc.u32 %v11215_v34, 3272356035  ;;  %v7548_v51 = vpop.f32.mrb[43].mxu0  ;;  %vm11293_vm3 = vmand %vm5100_vm10, %vm5058_vm5 }
 0x41b   : > { %v7625_v42 = vadd.f32 %v4272_v29, %v12225_v2  ;;  %v11258_v23 = vmul.u32.u64.low 3272356035, %v11221_v11  ;;  %v11259_v35 = vmul.u32.u64.high 3272356035, %v11221_v11, %v11258_v23  ;;  %v11262_v25 = vadd.s32 264, %v10190_v1 }
 0x41c   : > { %vm11264_vm13 = vcmp.lt.s32.totalorder %v5223_v7, 40  ;;  %v5224_v57 = vsel %vm11227_vm9, %v11178_v27, %v11155_v20  ;;  %v5225_v54 = vsel %vm11238_vm0, %v11197_v40, %v11158_v13  ;;  %v11277_v24 = vadd.s32 42, %v11200_v50 }
 0x41d   : > { %v11280_v21 = vsub.s32 %v11018_v47, %v4832_v3  ;;  %v5304_v46 = vsel %vm11173_vm7, %v7625_v42, 0.0  ;;  %v7626_v4 = vadd.f32 %v4275_v56, %v12228_v32  ;;  %v11286_v31 = vsub.s32 %v11048_v8, %v4846_v22 }
 0x41e   : > { %v4872_v20 = vadd.s32 %v11188_v30, %v4871_v49  ;;  %v5391_v27 = vadd.f32 %v5390_v58, %v5304_v46  ;;  %v5442_v18 = vmul.f32 %v5304_v46, %v5304_v46  ;;  %v4860_v16 = vmul.u32 42, %v4859_v63  ;;  %v2480_v10 = vpop.f32.mrb[48].mxu1 }
 0x41f   : > { %v4885_v62 = vsel %vm4884_vm12, 1, %v12127_v37  ;;  %v5305_v8 = vsel %vm11190_vm15, %v7626_v4, 0.0  ;;  %vm4898_vm6 = vc.u32 %v11258_v23, 3272356035  ;;  %v5226_v15 = vsel %vm11293_vm3, %v11277_v24, %v11200_v50  ;;  %v4280_v34 = vpop.f32.mrb[44].mxu0  ;;  %v7155_v53 = vpop.f32.mrb[49].mxu1 }
 0x420   : > { %v11302_v30 = vmul.u32.u64.low 3272356035, %v11262_v25  ;;  %v11303_v38 = vmul.u32.u64.high 3272356035, %v11262_v25, %v11302_v30  ;;  %v5483_v14 = vadd.f32 %v5482_v41, %v5442_v18  ;;  %v5336_v39 = vpack.c.bf16 %v5305_v8, %v5304_v46  ;;  %v7551_v58 = vpop.f32.mrb[45].mxu0  ;;  %v2483_v33 = vpop.f32.mrb[50].mxu1 }
 0x421   : > { %v5392_v48 = vadd.f32 %v5391_v27, %v5305_v8  ;;  %v5443_v12 = vmul.f32 %v5305_v8, %v5305_v8  ;;  %vm5059_vm11 = vcmp.ne.s32.totalorder %v11280_v21, 0  ;;  %vm5101_vm7 = vcmp.lt.s32.totalorder %v11280_v21, 0  ;;  %v4283_v22 = vpop.f32.mrb[46].mxu0  ;;  %v7156_v41 = vpop.f32.mrb[51].mxu1 }
 0x422   : > { %v11312_v43 = vadd.s32 272, %v10190_v1  ;;  %5360 = vst [vmem:[%s10626_s30 + $0x50] sm:$0xff] %v5336_v39  ;;  %vm11315_vm15 = vcmp.lt.s32.totalorder %v5224_v57, 40  ;;  %v5185_v0 = vadd.s32 42, %v11280_v21  ;;  %vm5060_vm2 = vcmp.ne.s32.totalorder %v11286_v31, 0  ;;  %v7552_v49 = vpop.f32.mrb[47].mxu0  ;;  %vm11344_vm8 = vmand %vm5101_vm7, %vm5059_vm11 }
 0x423   : > { %v5484_v61 = vadd.f32 %v5483_v14, %v5443_v12  ;;  %v4886_v50 = vadd.s32 %v11216_v9, %v4885_v62  ;;  %v7627_v6 = vadd.f32 %v4280_v34, %v2472_v44  ;;  %vm5102_vm1 = vcmp.lt.s32.totalorder %v11286_v31, 0 }
 0x424   : > { %v4899_v28 = vsel %vm4898_vm6, 1, %v12127_v37  ;;  %v11326_v7 = vadd.s32 280, %v10190_v1  ;;  %v11329_v29 = vadd.s32 42, %v11286_v31  ;;  %v11332_v36 = vsub.s32 %v11085_v59, %v4860_v16  ;;  %vm11372_vm5 = vmand %vm5102_vm1, %vm5060_vm2 }
 0x425   : > { %v4873_v9 = vshrl.u32 %v4872_v20, 5  ;;  %vm4912_vm14 = vc.u32 %v11302_v30, 3272356035  ;;  %v5306_v44 = vsel %vm11250_vm4, %v7627_v6, 0.0  ;;  %v7628_v63 = vadd.f32 %v4283_v22, %v2475_v19 }
 0x426   : > { %v11337_v2 = vmul.u32.u64.low 3272356035, %v11312_v43  ;;  %v11338_v42 = vmul.u32.u64.high 3272356035, %v11312_v43, %v11337_v2  ;;  %v5393_v52 = vadd.f32 %v5392_v48, %v5306_v44  ;;  %v5444_v23 = vmul.f32 %v5306_v44, %v5306_v44  ;;  %v2488_v20 = vpop.f32.mrb[52].mxu1 }
 0x427   : > { %v4887_v56 = vshrl.u32 %v4886_v50, 5  ;;  %v4900_v17 = vadd.s32 %v11259_v35, %v4899_v28  ;;  %v5307_v19 = vsel %vm11264_vm13, %v7628_v63, 0.0  ;;  %v4913_v55 = vsel %vm4912_vm14, 1, %v12127_v37  ;;  %v4288_v40 = vpop.f32.mrb[48].mxu0 }
 0x428   : > { %v11353_v57 = vmul.u32.u64.low 3272356035, %v11326_v7  ;;  %v11354_v24 = vmul.u32.u64.high 3272356035, %v11326_v7, %v11353_v57  ;;  %v5485_v46 = vadd.f32 %v5484_v61, %v5444_v23  ;;  %v5337_v32 = vpack.c.bf16 %v5307_v19, %v5306_v44  ;;  %v7555_v62 = vpop.f32.mrb[49].mxu0 }
 0x429   : > { %v5394_v4 = vadd.f32 %v5393_v52, %v5307_v19  ;;  %v5445_v51 = vmul.f32 %v5307_v19, %v5307_v19  ;;  %vm11361_vm9 = vcmp.lt.s32.totalorder %v5225_v54, 40  ;;  %v5227_v45 = vsel %vm11344_vm8, %v5185_v0, %v11280_v21  ;;  %v7159_v54 = vpop.f32.mrb[53].mxu1  ;;  %v4291_v14 = vpop.f32.mrb[50].mxu0 }
 0x42a   : > { %v4874_v5 = vmul.u32 42, %v4873_v9  ;;  %vm4926_vm10 = vc.u32 %v11337_v2, 3272356035  ;;  %5361 = vst [vmem:[%s10626_s30 + $0x58] sm:$0xff] %v5337_v32  ;;  %vm11377_vm0 = vcmp.lt.s32.totalorder %v5226_v15, 40  ;;  %v4888_v47 = vmul.u32 42, %v4887_v56 }
 0x42b   : > { %v5486_v13 = vadd.f32 %v5485_v46, %v5445_v51  ;;  %v4901_v21 = vshrl.u32 %v4900_v17, 5  ;;  %v7629_v16 = vadd.f32 %v4288_v40, %v2480_v10  ;;  %v2491_v8 = vpop.f32.mrb[54].mxu1  ;;  %vm5061_vm4 = vcmp.ne.s32.totalorder %v11332_v36, 0 }
 0x42c   : > { %vm5103_vm12 = vcmp.lt.s32.totalorder %v11332_v36, 0  ;;  %v4914_v30 = vadd.s32 %v11303_v38, %v4913_v55  ;;  %v7160_v39 = vpop.f32.mrb[55].mxu1  ;;  %vm11384_vm13 = vcmp.lt.s32.totalorder %v5227_v45, 40  ;;  %v5228_v12 = vsel %vm11372_vm5, %v11329_v29, %v11286_v31  ;;  %v7556_v38 = vpop.f32.mrb[51].mxu0 }
 0x42d   : > { %v4927_v10 = vsel %vm4926_vm10, 1, %v12127_v37  ;;  %vm4940_vm3 = vc.u32 %v11353_v57, 3272356035  ;;  %v5308_v15 = vsel %vm11315_vm15, %v7629_v16, 0.0  ;;  %v7630_v61 = vadd.f32 %v4291_v14, %v2483_v33  ;;  %vm11404_vm6 = vmand %vm5103_vm12, %vm5061_vm4 }
 0x42e   : > { %v5187_v34 = vadd.s32 42, %v11332_v36  ;;  %v11398_v53 = vsub.s32 %v11166_v60, %v4874_v5  ;;  %v5395_v0 = vadd.f32 %v5394_v4, %v5308_v15  ;;  %v5446_v50 = vmul.f32 %v5308_v15, %v5308_v15  ;;  %v2496_v44 = vpop.f32.mrb[56].mxu1 }
 0x42f   : > { %v11409_v3 = vsub.s32 %v11183_v26, %v4888_v47  ;;  %v4902_v6 = vmul.u32 42, %v4901_v21  ;;  %v5309_v58 = vsel %vm11361_vm9, %v7630_v61, 0.0  ;;  %v4915_v60 = vshrl.u32 %v4914_v30, 5  ;;  %v4296_v2 = vpop.f32.mrb[52].mxu0 }
 0x430   : > { %v4928_v33 = vadd.s32 %v11338_v42, %v4927_v10  ;;  %v4941_v28 = vsel %vm4940_vm3, 1, %v12127_v37  ;;  %v5487_v22 = vadd.f32 %v5486_v13, %v5446_v50  ;;  %v5338_v41 = vpack.c.bf16 %v5309_v58, %v5308_v15  ;;  %v7163_v42 = vpop.f32.mrb[57].mxu1  ;;  %v7559_v56 = vpop.f32.mrb[53].mxu0 }
 0x431   : > { %v5396_v29 = vadd.f32 %v5395_v0, %v5309_v58  ;;  %v5447_v9 = vmul.f32 %v5309_v58, %v5309_v58  ;;  %v5229_v63 = vsel %vm11404_vm6, %v5187_v34, %v11332_v36  ;;  %vm5062_vm11 = vcmp.ne.s32.totalorder %v11398_v53, 0  ;;  %v2499_v17 = vpop.f32.mrb[58].mxu1  ;;  %v4299_v57 = vpop.f32.mrb[54].mxu0 }
 0x432   : > { %vm5104_vm7 = vcmp.lt.s32.totalorder %v11398_v53, 0  ;;  %v11421_v26 = vadd.s32 288, %v10190_v1  ;;  %5362 = vst [vmem:[%s10626_s30 + $0x60] sm:$0xff] %v5338_v41  ;;  %vm11424_vm15 = vcmp.lt.s32.totalorder %v5228_v12, 40  ;;  %v11429_v23 = vadd.s32 42, %v11398_v53  ;;  %v7164_v46 = vpop.f32.mrb[59].mxu1 }
 0x433   : > { %v5488_v49 = vadd.f32 %v5487_v22, %v5447_v9  ;;  %vm5063_vm2 = vcmp.ne.s32.totalorder %v11409_v3, 0  ;;  %v11433_v36 = vadd.s32 296, %v10190_v1  ;;  %v7631_v59 = vadd.f32 %v4296_v2, %v2488_v20  ;;  %vm11445_vm8 = vmand %vm5104_vm7, %vm5062_vm11  ;;  %v7560_v27 = vpop.f32.mrb[55].mxu0 }
 0x434   : > { %vm5105_vm1 = vcmp.lt.s32.totalorder %v11409_v3, 0  ;;  %v4916_v19 = vmul.u32 42, %v4915_v60  ;;  %v4942_v55 = vadd.s32 %v11354_v24, %v4941_v28  ;;  %vm11437_vm14 = vcmp.lt.s32.totalorder %v5229_v63, 40 }
 0x435   : > { %v11450_v51 = vadd.s32 42, %v11409_v3  ;;  %v11453_v20 = vsub.s32 %v11221_v11, %v4902_v6  ;;  %v4929_v24 = vshrl.u32 %v4928_v33, 5  ;;  %v5310_v35 = vsel %vm11377_vm0, %v7631_v59, 0.0  ;;  %vm11465_vm9 = vmand %vm5105_vm1, %vm5063_vm2 }
 0x436   : > { %v7632_v45 = vadd.f32 %v4299_v57, %v2491_v8  ;;  %v11458_v5 = vmul.u32.u64.low 3272356035, %v11421_v26  ;;  %v11459_v13 = vmul.u32.u64.high 3272356035, %v11421_v26, %v11458_v5  ;;  %v5397_v40 = vadd.f32 %v5396_v29, %v5310_v35  ;;  %v2504_v10 = vpop.f32.mrb[60].mxu1 }
 0x437   : > { %v5448_v54 = vmul.f32 %v5310_v35, %v5310_v35  ;;  %v11470_v18 = vmul.u32.u64.low 3272356035, %v11433_v36  ;;  %v11471_v47 = vmul.u32.u64.high 3272356035, %v11433_v36, %v11470_v18  ;;  %v5230_v16 = vsel %vm11445_vm8, %v11429_v23, %v11398_v53  ;;  %v4304_v38 = vpop.f32.mrb[56].mxu0 }
 0x438   : > { %v5311_v21 = vsel %vm11384_vm13, %v7632_v45, 0.0  ;;  %v11480_v62 = vsub.s32 %v11262_v25, %v4916_v19  ;;  %v4943_v8 = vshrl.u32 %v4942_v55, 5  ;;  %v5231_v48 = vsel %vm11465_vm9, %v11450_v51, %v11409_v3  ;;  %v7167_v25 = vpop.f32.mrb[61].mxu1  ;;  %v7563_v0 = vpop.f32.mrb[57].mxu0 }
 0x439   : > { %v5489_v30 = vadd.f32 %v5488_v49, %v5448_v54  ;;  %v5339_v14 = vpack.c.bf16 %v5311_v21, %v5310_v35  ;;  %v5398_v39 = vadd.f32 %v5397_v40, %v5311_v21  ;;  %v5449_v12 = vmul.f32 %v5311_v21, %v5311_v21  ;;  %v2507_v50 = vpop.f32.mrb[62].mxu1  ;;  %v4307_v6 = vpop.f32.mrb[58].mxu0 }
 0x43a   : > { %vm5064_vm5 = vcmp.ne.s32.totalorder %v11453_v20, 0  ;;  %v4930_v15 = vmul.u32 42, %v4929_v24  ;;  %vm4954_vm10 = vc.u32 %v11458_v5, 3272356035  ;;  %vm5106_vm0 = vcmp.lt.s32.totalorder %v11453_v20, 0  ;;  %v7168_v58 = vpop.f32.mrb[63].mxu1 }
 0x43b   : > { %5363 = vst [vmem:[%s10626_s30 + $0x68] sm:$0xff] %v5339_v14  ;;  %v5490_v61 = vadd.f32 %v5489_v30, %v5449_v12  ;;  %vm4968_vm4 = vc.u32 %v11470_v18, 3272356035  ;;  %v11490_v34 = vadd.s32 304, %v10190_v1  ;;  %v7633_v53 = vadd.f32 %v4304_v38, %v2496_v44  ;;  %v7564_v29 = vpop.f32.mrb[59].mxu0  ;;  %vm11516_vm3 = vmand %vm5106_vm0, %vm5064_vm5 }
 0x43c   : > { %v11493_v31 = vadd.s32 42, %v11453_v20  ;;  %vm5065_vm12 = vcmp.ne.s32.totalorder %v11480_v62, 0  ;;  %v11497_v3 = vadd.s32 312, %v10190_v1  ;;  %vm5107_vm13 = vcmp.lt.s32.totalorder %v11480_v62, 0 }
 0x43d   : > { %v11501_v60 = vadd.s32 42, %v11480_v62  ;;  %v4944_v33 = vmul.u32 42, %v4943_v8  ;;  %v4955_v28 = vsel %vm4954_vm10, 1, %v12127_v37  ;;  %v5312_v22 = vsel %vm11424_vm15, %v7633_v53, 0.0  ;;  %vm11530_vm6 = vmand %vm5107_vm13, %vm5065_vm12 }
 0x43e   : > { %v7634_v41 = vadd.f32 %v4307_v6, %v2499_v17  ;;  %v11508_v9 = vsub.s32 %v11312_v43, %v4930_v15  ;;  %v4969_v44 = vsel %vm4968_vm4, 1, %v12127_v37  ;;  %v5399_v63 = vadd.f32 %v5398_v39, %v5312_v22  ;;  %v2512_v32 = vpop.f32.mrb[64].mxu1 }
 0x43f   : > { %v5450_v49 = vmul.f32 %v5312_v22, %v5312_v22  ;;  %v11521_v42 = vmul.u32.u64.low 3272356035, %v11490_v34  ;;  %v11522_v52 = vmul.u32.u64.high 3272356035, %v11490_v34, %v11521_v42  ;;  %v4956_v59 = vadd.s32 %v11459_v13, %v4955_v28  ;;  %v4312_v27 = vpop.f32.mrb[60].mxu0  ;;  %v7171_v5 = vpop.f32.mrb[65].mxu1 }
 0x440   : > { %v5313_v43 = vsel %vm11437_vm14, %v7634_v41, 0.0  ;;  %v11536_v56 = vmul.u32.u64.low 3272356035, %v11497_v3  ;;  %v11537_v17 = vmul.u32.u64.high 3272356035, %v11497_v3, %v11536_v56  ;;  %vm11539_vm11 = vcmp.lt.s32.totalorder %v5230_v16, 40  ;;  %v7567_v11 = vpop.f32.mrb[61].mxu0  ;;  %v2515_v18 = vpop.f32.mrb[66].mxu1 }
 0x441   : > { %v5491_v19 = vadd.f32 %v5490_v61, %v5450_v49  ;;  %v5340_v55 = vpack.c.bf16 %v5313_v43, %v5312_v22  ;;  %v5400_v57 = vadd.f32 %v5399_v63, %v5313_v43  ;;  %v5451_v46 = vmul.f32 %v5313_v43, %v5313_v43  ;;  %v7172_v21 = vpop.f32.mrb[67].mxu1 }
 0x442   : > { %vm11543_vm7 = vcmp.lt.s32.totalorder %v5231_v48, 40  ;;  %v5232_v24 = vsel %vm11516_vm3, %v11493_v31, %v11453_v20  ;;  %v4970_v35 = vadd.s32 %v11471_v47, %v4969_v44  ;;  %v5233_v13 = vsel %vm11530_vm6, %v11501_v60, %v11480_v62  ;;  %v4315_v47 = vpop.f32.mrb[62].mxu0 }
 0x443   : > { %5364 = vst [vmem:[%s10626_s30 + $0x70] sm:$0xff] %v5340_v55  ;;  %v5492_v45 = vadd.f32 %v5491_v19, %v5451_v46  ;;  %vm4982_vm15 = vc.u32 %v11521_v42, 3272356035  ;;  %v11558_v40 = vadd.s32 320, %v10190_v1  ;;  %v7635_v54 = vadd.f32 %v4312_v27, %v2504_v10  ;;  %v7568_v39 = vpop.f32.mrb[63].mxu0 }
 0x444   : > { %vm5066_vm2 = vcmp.ne.s32.totalorder %v11508_v9, 0  ;;  %vm5108_vm1 = vcmp.lt.s32.totalorder %v11508_v9, 0  ;;  %v11563_v20 = vadd.s32 328, %v10190_v1  ;;  %v11566_v16 = vadd.s32 42, %v11508_v9 }
 0x445   : > { %v11569_v62 = vsub.s32 %v11326_v7, %v4944_v33  ;;  %v4957_v8 = vshrl.u32 %v4956_v59, 5  ;;  %vm4996_vm14 = vc.u32 %v11536_v56, 3272356035  ;;  %v5314_v30 = vsel %vm11539_vm11, %v7635_v54, 0.0  ;;  %vm11590_vm8 = vmand %vm5108_vm1, %vm5066_vm2 }
 0x446   : > { %v7636_v14 = vadd.f32 %v4315_v47, %v2507_v50  ;;  %v4971_v12 = vshrl.u32 %v4970_v35, 5  ;;  %v4983_v1 = vsel %vm4982_vm15, 1, %v12127_v37  ;;  %v5401_v10 = vadd.f32 %v5400_v57, %v5314_v30  ;;  %v2520_v58 = vpop.f32.mrb[68].mxu1 }
 0x447   : > { %v5452_v48 = vmul.f32 %v5314_v30, %v5314_v30  ;;  %v11576_v15 = vmul.u32.u64.low 3272356035, %v11558_v40  ;;  %v11577_v61 = vmul.u32.u64.high 3272356035, %v11558_v40, %v11576_v15  ;;  %v4997_v38 = vsel %vm4996_vm14, 1, %v12127_v37  ;;  %v4320_v41 = vpop.f32.mrb[64].mxu0  ;;  %v7175_v29 = vpop.f32.mrb[69].mxu1 }
 0x448   : > { %v5315_v7 = vsel %vm11543_vm7, %v7636_v14, 0.0  ;;  %v11583_v25 = vmul.u32.u64.low 3272356035, %v11563_v20  ;;  %v11584_v53 = vmul.u32.u64.high 3272356035, %v11563_v20, %v11583_v25  ;;  %vm5067_vm9 = vcmp.ne.s32.totalorder %v11569_v62, 0  ;;  %v7571_v49 = vpop.f32.mrb[65].mxu0  ;;  %v2523_v2 = vpop.f32.mrb[70].mxu1 }
 0x449   : > { %v5493_v0 = vadd.f32 %v5492_v45, %v5452_v48  ;;  %v5341_v50 = vpack.c.bf16 %v5315_v7, %v5314_v30  ;;  %v5402_v31 = vadd.f32 %v5401_v10, %v5315_v7  ;;  %v5453_v6 = vmul.f32 %v5315_v7, %v5315_v7  ;;  %v4323_v23 = vpop.f32.mrb[66].mxu0  ;;  %v7176_v59 = vpop.f32.mrb[71].mxu1 }
 0x44a   : > { %vm5109_vm5 = vcmp.lt.s32.totalorder %v11569_v62, 0  ;;  %v4958_v33 = vmul.u32 42, %v4957_v8  ;;  %v4984_v28 = vadd.s32 %v11522_v52, %v4983_v1  ;;  %vm5274_vm10 = vcmp.lt.s32.totalorder %v5232_v24, 40  ;;  %v7572_v55 = vpop.f32.mrb[67].mxu0 }
 0x44b   : > { %5365 = vst [vmem:[%s10626_s30 + $0x78] sm:$0xff] %v5341_v50  ;;  %v5494_v22 = vadd.f32 %v5493_v0, %v5453_v6  ;;  %v4972_v44 = vmul.u32 42, %v4971_v12  ;;  %v7637_v63 = vadd.f32 %v4320_v41, %v2512_v32  ;;  %v5193_v42 = vadd.s32 42, %v11569_v62  ;;  %vm11608_vm12 = vmand %vm5109_vm5, %vm5067_vm9 }
 0x44c   : > { %v4998_v43 = vadd.s32 %v11537_v17, %v4997_v38  ;;  %vm5010_vm0 = vc.u32 %v11576_v15, 3272356035  ;;  %vm5275_vm4 = vcmp.lt.s32.totalorder %v5233_v13, 40  ;;  %v5234_v52 = vsel %vm11590_vm8, %v11566_v16, %v11508_v9 }
 0x44d   : > { %vm5024_vm13 = vc.u32 %v11583_v25, 3272356035  ;;  %v5316_v19 = vsel %vm5274_vm10, %v7637_v63, 0.0  ;;  %v7638_v17 = vadd.f32 %v4323_v23, %v2515_v18  ;;  %v11613_v57 = vsub.s32 %v11421_v26, %v4958_v33 }
 0x44e   : > { %v4985_v46 = vshrl.u32 %v4984_v28, 5  ;;  %v5403_v32 = vadd.f32 %v5402_v31, %v5316_v19  ;;  %v5454_v4 = vmul.f32 %v5316_v19, %v5316_v19  ;;  %v11616_v9 = vsub.s32 %v11433_v36, %v4972_v44  ;;  %v2528_v11 = vpop.f32.mrb[72].mxu1 }
 0x44f   : > { %v5011_v51 = vsel %vm5010_vm0, 1, %v12127_v37  ;;  %v5317_v24 = vsel %vm5275_vm4, %v7638_v17, 0.0  ;;  %v5235_v35 = vsel %vm11608_vm12, %v5193_v42, %v11569_v62  ;;  %v4999_v45 = vshrl.u32 %v4998_v43, 5  ;;  %v4328_v21 = vpop.f32.mrb[68].mxu0  ;;  %v7179_v16 = vpop.f32.mrb[73].mxu1 }
 0x450   : > { %v5025_v27 = vsel %vm5024_vm13, 1, %v12127_v37  ;;  %v5495_v26 = vadd.f32 %v5494_v22, %v5454_v4  ;;  %v5342_v5 = vpack.c.bf16 %v5317_v24, %v5316_v19  ;;  %v5404_v13 = vadd.f32 %v5403_v32, %v5317_v24  ;;  %v7575_v8 = vpop.f32.mrb[69].mxu0  ;;  %v2531_v30 = vpop.f32.mrb[74].mxu1 }
 0x451   : > { %v5455_v54 = vmul.f32 %v5317_v24, %v5317_v24  ;;  %vm5068_vm3 = vcmp.ne.s32.totalorder %v11613_v57, 0  ;;  %vm5110_vm6 = vcmp.lt.s32.totalorder %v11613_v57, 0  ;;  %v4986_v36 = vmul.u32 42, %v4985_v46  ;;  %v4331_v12 = vpop.f32.mrb[70].mxu0  ;;  %v7180_v1 = vpop.f32.mrb[75].mxu1 }
 0x452   : > { %v5012_v18 = vadd.s32 %v11577_v61, %v5011_v51  ;;  %5366 = vst [vmem:[%s10626_s30 + $0x80] sm:$0xff] %v5342_v5  ;;  %vm5276_vm11 = vcmp.lt.s32.totalorder %v5234_v52, 40  ;;  %v5194_v62 = vadd.s32 42, %v11613_v57  ;;  %vm5069_vm7 = vcmp.ne.s32.totalorder %v11616_v9, 0  ;;  %vm11636_vm1 = vmand %vm5110_vm6, %vm5068_vm3  ;;  %v7576_v7 = vpop.f32.mrb[71].mxu0 }
 0x453   : > { %v5496_v47 = vadd.f32 %v5495_v26, %v5455_v54  ;;  %v7639_v37 = vadd.f32 %v4328_v21, %v2520_v58  ;;  %vm5111_vm15 = vcmp.lt.s32.totalorder %v11616_v9, 0  ;;  %v5000_v14 = vmul.u32 42, %v4999_v45 }
 0x454   : > { %v5026_v39 = vadd.s32 %v11584_v53, %v5025_v27  ;;  %vm5277_vm2 = vcmp.lt.s32.totalorder %v5235_v35, 40  ;;  %v5195_v48 = vadd.s32 42, %v11616_v9  ;;  %v7640_v61 = vadd.f32 %v4331_v12, %v2523_v2  ;;  %vm11646_vm14 = vmand %vm5111_vm15, %vm5069_vm7 }
 0x455   : > { %v5318_v15 = vsel %vm5276_vm11, %v7639_v37, 0.0  ;;  %v4987_v38 = vsub.s32 %v11490_v34, %v4986_v36  ;;  %v5013_v25 = vshrl.u32 %v5012_v18, 5  ;;  %v5236_v6 = vsel %vm11636_vm1, %v5194_v62, %v11613_v57 }
 0x456   : > { %v5405_v53 = vadd.f32 %v5404_v13, %v5318_v15  ;;  %v5456_v0 = vmul.f32 %v5318_v15, %v5318_v15  ;;  %v5319_v31 = vsel %vm5277_vm2, %v7640_v61, 0.0  ;;  %v5001_v58 = vsub.s32 %v11497_v3, %v5000_v14  ;;  %v2536_v41 = vpop.f32.mrb[76].mxu1 }
 0x457   : > { %v5027_v34 = vshrl.u32 %v5026_v39, 5  ;;  %v5343_v33 = vpack.c.bf16 %v5319_v31, %v5318_v15  ;;  %v5457_v22 = vmul.f32 %v5319_v31, %v5319_v31  ;;  %v5237_v29 = vsel %vm11646_vm14, %v5195_v48, %v11616_v9  ;;  %v4336_v49 = vpop.f32.mrb[72].mxu0  ;;  %v7183_v2 = vpop.f32.mrb[77].mxu1 }
 0x458   : > { %v5497_v60 = vadd.f32 %v5496_v47, %v5456_v0  ;;  %v5406_v28 = vadd.f32 %v5405_v53, %v5319_v31  ;;  %vm5070_vm8 = vcmp.ne.s32.totalorder %v4987_v38, 0  ;;  %vm5112_vm9 = vcmp.lt.s32.totalorder %v4987_v38, 0  ;;  %v7579_v43 = vpop.f32.mrb[73].mxu0  ;;  %v2539_v23 = vpop.f32.mrb[78].mxu1 }
 0x459   : > { %v5014_v44 = vmul.u32 42, %v5013_v25  ;;  %5367 = vst [vmem:[%s10626_s30 + $0x88] sm:$0xff] %v5343_v33  ;;  %vm5278_vm5 = vcmp.lt.s32.totalorder %v5236_v6, 40  ;;  %v5196_v42 = vadd.s32 42, %v4987_v38  ;;  %v7641_v3 = vadd.f32 %v4336_v49, %v2528_v11  ;;  %v4339_v52 = vpop.f32.mrb[74].mxu0  ;;  %v7184_v56 = vpop.f32.mrb[79].mxu1  ;;  %vm11660_vm12 = vmand %vm5112_vm9, %vm5070_vm8 }
 0x45a   : > { %v5498_v63 = vadd.f32 %v5497_v60, %v5457_v22  ;;  %vm5071_vm10 = vcmp.ne.s32.totalorder %v5001_v58, 0  ;;  %vm5113_vm0 = vcmp.lt.s32.totalorder %v5001_v58, 0  ;;  %v5028_v59 = vmul.u32 42, %v5027_v34  ;;  %v7580_v57 = vpop.f32.mrb[75].mxu0 }
 0x45b   : > { %vm5279_vm4 = vcmp.lt.s32.totalorder %v5237_v29, 40  ;;  %v5320_v17 = vsel %vm5278_vm5, %v7641_v3, 0.0  ;;  %v7642_v55 = vadd.f32 %v4339_v52, %v2531_v30  ;;  %v5197_v46 = vadd.s32 42, %v5001_v58  ;;  %vm11665_vm13 = vmand %vm5113_vm0, %vm5071_vm10 }
 0x45c   : > { %v5015_v32 = vsub.s32 %v11558_v40, %v5014_v44  ;;  %v5407_v4 = vadd.f32 %v5406_v28, %v5320_v17  ;;  %v5458_v9 = vmul.f32 %v5320_v17, %v5320_v17  ;;  %v5238_v35 = vsel %vm11660_vm12, %v5196_v42, %v4987_v38 }
 0x45d   : > { %v5321_v24 = vsel %vm5279_vm4, %v7642_v55, 0.0  ;;  %v5029_v45 = vsub.s32 %v11563_v20, %v5028_v59  ;;  %v5239_v40 = vsel %vm11665_vm13, %v5197_v46, %v5001_v58  ;;  %vm5280_vm11 = vcmp.lt.s32.totalorder %v5238_v35, 40  ;;  %v5371_v55 = vld [vmem:[#allocation3] sm:$0x1] }
 0x45e   : > { %v5499_v27 = vadd.f32 %v5498_v63, %v5458_v9  ;;  %v5344_v26 = vpack.c.bf16 %v5321_v24, %v5320_v17  ;;  %v5408_v5 = vadd.f32 %v5407_v4, %v5321_v24  ;;  %v5459_v13 = vmul.f32 %v5321_v24, %v5321_v24  ;;  %v2544_v54 = vpop.f32.mrb[80].mxu1 }
 0x45f   : > { %vm5072_vm3 = vcmp.ne.s32.totalorder %v5015_v32, 0  ;;  %vm5114_vm6 = vcmp.lt.s32.totalorder %v5015_v32, 0  ;;  %v4344_v36 = vpop.f32.mrb[76].mxu0  ;;  %v7187_v18 = vpop.f32.mrb[81].mxu1  ;;  %v5198_v62 = vadd.s32 42, %v5015_v32  ;;  %vm5073_vm7 = vcmp.ne.s32.totalorder %v5029_v45, 0 }
 0x460   : > { %5368 = vst [vmem:[%s10626_s30 + $0x90] sm:$0xff] %v5344_v26  ;;  %v5500_v11 = vadd.f32 %v5499_v27, %v5459_v13  ;;  %v7643_v47 = vadd.f32 %v4344_v36, %v2536_v41  ;;  %v7583_v21 = vpop.f32.mrb[77].mxu0  ;;  %v2547_v16 = vpop.f32.mrb[82].mxu1  ;;  %vm5115_vm15 = vcmp.lt.s32.totalorder %v5029_v45, 0  ;;  %vm5281_vm2 = vcmp.lt.s32.totalorder %v5239_v40, 40  ;;  %vm11677_vm1 = vmand %vm5114_vm6, %vm5072_vm3 }
 0x461   : > { %v4347_v20 = vpop.f32.mrb[78].mxu0  ;;  %v7188_v37 = vpop.f32.mrb[83].mxu1  ;;  %v5199_v12 = vadd.s32 42, %v5029_v45  ;;  %vm5157_vm14 = vmand %vm5115_vm15, %vm5073_vm7  ;;  %v5240_v15 = vsel %vm11677_vm1, %v5198_v62, %v5015_v32  ;;  %v5421_v32 = vld [vmem:[#allocation4] sm:$0x1] }
 0x462   : > { %v5322_v30 = vsel %vm5280_vm11, %v7643_v47, 0.0  ;;  %v7644_v14 = vadd.f32 %v4347_v20, %v2539_v23  ;;  %v7584_v39 = vpop.f32.mrb[79].mxu0  ;;  %vm5282_vm8 = vcmp.lt.s32.totalorder %v5240_v15, 40 }
 0x463   : > { %v5409_v1 = vadd.f32 %v5408_v5, %v5322_v30  ;;  %v5460_v10 = vmul.f32 %v5322_v30, %v5322_v30  ;;  %v5241_v53 = vsel %vm5157_vm14, %v5199_v12, %v5029_v45 }
 0x464   : > { %v5323_v48 = vsel %vm5281_vm2, %v7644_v14, 0.0  ;;  %vm5283_vm9 = vcmp.lt.s32.totalorder %v5241_v53, 40 }
 0x465   : > { %v5501_v61 = vadd.f32 %v5500_v11, %v5460_v10  ;;  %v5345_v7 = vpack.c.bf16 %v5323_v48, %v5322_v30  ;;  %v5410_v38 = vadd.f32 %v5409_v1, %v5323_v48  ;;  %v5461_v25 = vmul.f32 %v5323_v48, %v5323_v48 }
 0x467   : > { %5369 = vst [vmem:[%s10626_s30 + $0x98] sm:$0xff] %v5345_v7  ;;  %v5502_v0 = vadd.f32 %v5501_v61, %v5461_v25  ;;  %v4352_v50 = vpop.f32.mrb[80].mxu0 }
 0x468   : > { %v7645_v31 = vadd.f32 %v4352_v50, %v2544_v54  ;;  %v7587_v6 = vpop.f32.mrb[81].mxu0 }
 0x469   : > { %v4355_v58 = vpop.f32.mrb[82].mxu0 }
 0x46a   : > { %v5324_v34 = vsel %vm5282_vm8, %v7645_v31, 0.0  ;;  %v7646_v60 = vadd.f32 %v4355_v58, %v2547_v16  ;;  %v7588_v33 = vpop.f32.mrb[83].mxu0 }
 0x46b   : > { %v5411_v28 = vadd.f32 %v5410_v38, %v5324_v34  ;;  %v5462_v22 = vmul.f32 %v5324_v34, %v5324_v34 }
 0x46c   : > { %v5325_v41 = vsel %vm5283_vm9, %v7646_v60, 0.0 }
 0x46d   : > { %v5503_v29 = vadd.f32 %v5502_v0, %v5462_v22  ;;  %v5346_v44 = vpack.c.bf16 %v5325_v41, %v5324_v34  ;;  %v5412_v63 = vadd.f32 %v5411_v28, %v5325_v41  ;;  %v5463_v49 = vmul.f32 %v5325_v41, %v5325_v41 }
 0x46f   : > { %5370 = vst [vmem:[%s10626_s30 + $0xa0] sm:$0xff] %v5346_v44  ;;  %v5413_v2 = vrot.slane %v5412_v63, 4  ;;  %v5504_v42 = vadd.f32 %v5503_v29, %v5463_v49 }
 0x471   : > { %v5414_v3 = vadd.f32 %v5413_v2, %v5412_v63  ;;  %v5505_v43 = vrot.slane %v5504_v42, 4 }
 0x473   : > { %v5415_v23 = vrot.slane %v5414_v3, 2  ;;  %v5506_v59 = vadd.f32 %v5505_v43, %v5504_v42 }
 0x475   : > { %v5416_v52 = vadd.f32 %v5415_v23, %v5414_v3  ;;  %v5507_v56 = vrot.slane %v5506_v59, 2 }
 0x477   : > { %v5417_v19 = vrot.slane %v5416_v52, 1  ;;  %v5508_v17 = vadd.f32 %v5507_v56, %v5506_v59 }
 0x479   : > { %v5418_v57 = vadd.f32 %v5417_v19, %v5416_v52  ;;  %v5509_v46 = vrot.slane %v5508_v17, 1 }
 0x47b   : > { %v5419_v4 = vadd.f32 %v5418_v57, %v5371_v55  ;;  %v5510_v9 = vadd.f32 %v5509_v46, %v5508_v17 }
 0x47d   : > { %5420 = vst [vmem:[#allocation3] sm:$0x1] %v5419_v4  ;;  %v5511_v51 = vadd.f32 %v5510_v9, %v5421_v32 }
 0x47f   : > { %5512 = vst [vmem:[#allocation4] sm:$0x1] %v5511_v51 }
 0x480 PF: > { %p6212_p9 = scmp.ne.s32.totalorder %s8823_s22, 1 }
 0x481   : > { %s6260_s24 = smul.u32 (!%p6212_p9), 168, %s8819_s21  ;;  %v5598_v13 = vlaneseq (!%p6212_p9)  ;;  %v5524_v29 = vld [vmem:[%s12062_s2] sm:$0x1] (!%p6212_p9)  ;;  %s12275_s14 = sld [smem:[#allocation28_spill]] (!%p6212_p9) }
 0x482   : > { %5516 = sbr.rel (%p6212_p9) target bundleno = 1227 (0x4cb), region = 56 }
 0x483   : > { %v11691_v11 = vshrl.u32 (!%p6212_p9), %v5598_v13, 7  ;;  %s11693_s1 = scalar_lea.vmem (!%p6212_p9), [#allocation2], %s6260_s24 }
 0x484   : > { %v5517_v24 = vld [vmem:[#allocation3] sm:$0x1] (!%p6212_p9)  ;;  %v11696_v36 = vld [vmem:[%s11693_s1] sm:$0xff] (!%p6212_p9)  ;;  %v11702_v47 = vld [vmem:[%s11693_s1 + $0x10] sm:$0xff] (!%p6212_p9) }
 0x485   : > { %v11686_v45 = vmul.f32 (!%p6212_p9), 0.000625, %v5517_v24  ;;  %v11699_v18 = vld [vmem:[%s11693_s1 + $0x8] sm:$0xff] (!%p6212_p9)  ;;  %v11705_v21 = vld [vmem:[%s11693_s1 + $0x18] sm:$0xff] (!%p6212_p9)  ;;  %v11708_v16 = vld [vmem:[%s11693_s1 + $0x20] sm:$0xff] (!%p6212_p9)  ;;  %v5555_v62 = vunpack.c.l.bf16 (!%p6212_p9), %v11696_v36  ;;  %v5600_v20 = vsub.s32 (!%p6212_p9), 0, %v11691_v11  ;;  %v5556_v30 = vunpack.c.h.bf16 (!%p6212_p9), %v11696_v36 }
 0x486   : > { %v5519_v35 = vld [vmem:[#allocation4] sm:$0x1] (!%p6212_p9)  ;;  %v11716_v8 = vld [vmem:[%s11693_s1 + $0x30] sm:$0xff] (!%p6212_p9)  ;;  %v5557_v14 = vunpack.c.l.bf16 (!%p6212_p9), %v11699_v18  ;;  %v5558_v39 = vunpack.c.h.bf16 (!%p6212_p9), %v11699_v18  ;;  %v5559_v12 = vunpack.c.l.bf16 (!%p6212_p9), %v11702_v47  ;;  %v11723_v1 = vld [vmem:[%s11693_s1 + $0x38] sm:$0xff] (!%p6212_p9)  ;;  %v5560_v48 = vunpack.c.h.bf16 (!%p6212_p9), %v11702_v47 }
 0x487   : > { %v5520_v27 = vmul.f32 (!%p6212_p9), 0.000625, %v5519_v35  ;;  %v5521_v26 = vmul.f32 (!%p6212_p9), %v11686_v45, %v11686_v45  ;;  %v11713_v37 = vld [vmem:[%s11693_s1 + $0x28] sm:$0xff] (!%p6212_p9)  ;;  %v11726_v10 = vld [vmem:[%s11693_s1 + $0x40] sm:$0xff] (!%p6212_p9)  ;;  %v5561_v15 = vunpack.c.l.bf16 (!%p6212_p9), %v11705_v21  ;;  %v5562_v61 = vunpack.c.h.bf16 (!%p6212_p9), %v11705_v21  ;;  %v11736_v25 = vld [vmem:[%s11693_s1 + $0x50] sm:$0xff] (!%p6212_p9) }
 0x488   : > { %v5563_v7 = vunpack.c.l.bf16 (!%p6212_p9), %v11708_v16  ;;  %v11733_v38 = vld [vmem:[%s11693_s1 + $0x48] sm:$0xff] (!%p6212_p9)  ;;  %v5564_v53 = vunpack.c.h.bf16 (!%p6212_p9), %v11708_v16  ;;  %v5565_v0 = vunpack.c.l.bf16 (!%p6212_p9), %v11713_v37  ;;  %v5566_v50 = vunpack.c.h.bf16 (!%p6212_p9), %v11713_v37  ;;  %v11743_v6 = vld [vmem:[%s11693_s1 + $0x58] sm:$0xff] (!%p6212_p9)  ;;  %v11746_v58 = vld [vmem:[%s11693_s1 + $0x60] sm:$0xff] (!%p6212_p9) }
 0x489   : > { %v5522_v5 = vsub.f32 %v5520_v27, %v5521_v26  ;;  %v5567_v31 = vunpack.c.l.bf16 %v11716_v8  ;;  %v5568_v34 = vunpack.c.h.bf16 %v11716_v8  ;;  %v5569_v60 = vunpack.c.l.bf16 %v11723_v1  ;;  %v11753_v22 = vld [vmem:[%s11693_s1 + $0x68] sm:$0xff]  ;;  %v11756_v41 = vld [vmem:[%s11693_s1 + $0x70] sm:$0xff]  ;;  %v11766_v42 = vld [vmem:[%s11693_s1 + $0x78] sm:$0xff] }
 0x48a   : > { %v5570_v33 = vunpack.c.h.bf16 %v11723_v1  ;;  %v5571_v28 = vunpack.c.l.bf16 %v11726_v10  ;;  %v5572_v44 = vunpack.c.h.bf16 %v11726_v10  ;;  %v5573_v63 = vunpack.c.l.bf16 %v11733_v38  ;;  %v11773_v52 = vld [vmem:[%s11693_s1 + $0x80] sm:$0xff]  ;;  %v11776_v56 = vld [vmem:[%s11693_s1 + $0x88] sm:$0xff]  ;;  %v11783_v32 = vld [vmem:[%s11693_s1 + $0x90] sm:$0xff] }
 0x48b   : > { %v5523_v54 = vmax.f32 %v5522_v5, 0.0  ;;  %v5574_v49 = vunpack.c.h.bf16 %v11733_v38  ;;  %v5575_v2 = vunpack.c.l.bf16 %v11736_v25  ;;  %v5576_v3 = vunpack.c.h.bf16 %v11736_v25  ;;  %v11789_v35 = vld [vmem:[%s11693_s1 + $0x98] sm:$0xff]  ;;  %v11792_v27 = vld [vmem:[%s11693_s1 + $0xa0] sm:$0xff] }
 0x48c   : > { %v5577_v43 = vunpack.c.l.bf16 %v11743_v6  ;;  %v5578_v23 = vunpack.c.h.bf16 %v11743_v6  ;;  %v5579_v59 = vunpack.c.l.bf16 %v11746_v58  ;;  %v5580_v17 = vunpack.c.h.bf16 %v11746_v58  ;;  %v5528_v26 = vld [vmem:[%s12275_s14] sm:$0x1] }
 0x48d   : > { %v5525_v40 = vadd.f32 1e-05, %v5523_v54  ;;  %v5581_v55 = vunpack.c.l.bf16 %v11753_v22  ;;  %v5582_v57 = vunpack.c.h.bf16 %v11753_v22  ;;  %v5583_v46 = vunpack.c.l.bf16 %v11756_v41 }
 0x48e   : > { %v5584_v9 = vunpack.c.h.bf16 %v11756_v41  ;;  %v5585_v51 = vunpack.c.l.bf16 %v11766_v42  ;;  %v5586_v24 = vunpack.c.h.bf16 %v11766_v42  ;;  %v5591_v37 = vunpack.c.l.bf16 %v11783_v32 }
 0x48f   : > { %8649 = vrsqrt.f32 %v5525_v40  ;;  %v5590_v40 = vunpack.c.h.bf16 %v11776_v56 }
 0x499   : > { %v8650_v19 = vpop.eup %8649 }
 0x49a   : > { %v5527_v4 = vmul.f32 %v8650_v19, %v5524_v29 }
 0x49c   : > { %v5529_v21 = vmul.f32 %v5527_v4, %v11686_v45  ;;  %v11804_v16 = vrot.slane %v5527_v4, %v5600_v20 }
 0x49e   : > { %v5530_v5 = vsub.f32 %v5528_v26, %v5529_v21  ;;  %v5603_v45 = vmul.f32 %v11804_v16, %v5555_v62  ;;  %v5604_v4 = vmul.f32 %v11804_v16, %v5556_v30  ;;  %v5605_v8 = vmul.f32 %v11804_v16, %v5557_v14 }
 0x49f   : > { %v5606_v19 = vmul.f32 %v11804_v16, %v5558_v39  ;;  %v5607_v26 = vmul.f32 %v11804_v16, %v5559_v12  ;;  %v5608_v21 = vmul.f32 %v11804_v16, %v5560_v48  ;;  %v5609_v62 = vmul.f32 %v11804_v16, %v5561_v15 }
 0x4a0   : > { %v11831_v36 = vrot.slane %v5530_v5, %v5600_v20  ;;  %v5610_v30 = vmul.f32 %v11804_v16, %v5562_v61  ;;  %v5611_v14 = vmul.f32 %v11804_v16, %v5563_v7  ;;  %v5612_v18 = vmul.f32 %v11804_v16, %v5564_v53 }
 0x4a1   : > { %v5613_v39 = vmul.f32 %v11804_v16, %v5565_v0  ;;  %v5614_v47 = vmul.f32 %v11804_v16, %v5566_v50  ;;  %v5615_v12 = vmul.f32 %v11804_v16, %v5567_v31  ;;  %v5616_v48 = vmul.f32 %v11804_v16, %v5568_v34 }
 0x4a2   : > { %v5651_v15 = vadd.f32 %v11831_v36, %v5603_v45  ;;  %v5652_v11 = vadd.f32 %v11831_v36, %v5604_v4  ;;  %v5653_v20 = vadd.f32 %v11831_v36, %v5605_v8  ;;  %v5654_v61 = vadd.f32 %v11831_v36, %v5606_v19 }
 0x4a3   : > { %v5655_v7 = vadd.f32 %v11831_v36, %v5607_v26  ;;  %v5656_v53 = vadd.f32 %v11831_v36, %v5608_v21  ;;  %v5657_v0 = vadd.f32 %v11831_v36, %v5609_v62  ;;  %v5658_v50 = vadd.f32 %v11831_v36, %v5610_v30 }
 0x4a4   : > { %v5693_v5 = vmax.f32 %v5651_v15, 0.0  ;;  %v5694_v31 = vmax.f32 %v5652_v11, 0.0  ;;  %v5695_v34 = vmax.f32 %v5653_v20, 0.0  ;;  %v5696_v45 = vmax.f32 %v5654_v61, 0.0 }
 0x4a5   : > { %v5697_v54 = vmax.f32 %v5655_v7, 0.0  ;;  %v5698_v4 = vmax.f32 %v5656_v53, 0.0  ;;  %v5699_v13 = vmax.f32 %v5657_v0, 0.0  ;;  %v5700_v8 = vmax.f32 %v5658_v50, 0.0 }
 0x4a6   : > { %v6306_v19 = vpack.c.bf16 %v5694_v31, %v5693_v5  ;;  %v6311_v26 = vpack.c.bf16 %v5696_v45, %v5695_v34  ;;  %v5659_v21 = vadd.f32 %v11831_v36, %v5611_v14  ;;  %v5660_v62 = vadd.f32 %v11831_v36, %v5612_v18 }
 0x4a7   : > { %v6316_v29 = vpack.c.bf16 %v5698_v4, %v5697_v54  ;;  %v6321_v30 = vpack.c.bf16 %v5700_v8, %v5699_v13  ;;  %v5661_v15 = vadd.f32 %v11831_v36, %v5613_v39  ;;  %v5662_v11 = vadd.f32 %v11831_v36, %v5614_v47 }
 0x4a8   : > { %6307 = vst [vmem:[%s9080_s26] sm:$0xff] %v6306_v19   ;;  %6408 = vst [vmem:[%s9080_s26 + $0x8] sm:$0xff] %v6311_v26   ;;  %v5701_v20 = vmax.f32 %v5659_v21, 0.0  ;;  %v5702_v61 = vmax.f32 %v5660_v62, 0.0  ;;  %v5663_v7 = vadd.f32 %v11831_v36, %v5615_v12  ;;  %v5664_v53 = vadd.f32 %v11831_v36, %v5616_v48 }
 0x4a9   : > { %6409 = vst [vmem:[%s9080_s26 + $0x10] sm:$0xff] %v6316_v29   ;;  %6410 = vst [vmem:[%s9080_s26 + $0x18] sm:$0xff] %v6321_v30   ;;  %v5703_v14 = vmax.f32 %v5661_v15, 0.0  ;;  %v5704_v0 = vmax.f32 %v5662_v11, 0.0  ;;  %v5617_v13 = vmul.f32 %v11804_v16, %v5569_v60  ;;  %v5618_v54 = vmul.f32 %v11804_v16, %v5570_v33 }
 0x4aa   : > { %v6326_v18 = vpack.c.bf16 %v5702_v61, %v5701_v20  ;;  %v5705_v39 = vmax.f32 %v5663_v7, 0.0  ;;  %v5706_v47 = vmax.f32 %v5664_v53, 0.0  ;;  %v5619_v29 = vmul.f32 %v11804_v16, %v5571_v28 }
 0x4ab   : > { %v6331_v12 = vpack.c.bf16 %v5704_v0, %v5703_v14  ;;  %v5665_v48 = vadd.f32 %v11831_v36, %v5617_v13  ;;  %v5666_v50 = vadd.f32 %v11831_v36, %v5618_v54  ;;  %v5620_v60 = vmul.f32 %v11804_v16, %v5572_v44 }
 0x4ac   : > { %6411 = vst [vmem:[%s9080_s26 + $0x20] sm:$0xff] %v6326_v18   ;;  %v6336_v1 = vpack.c.bf16 %v5706_v47, %v5705_v39  ;;  %v5667_v33 = vadd.f32 %v11831_v36, %v5619_v29  ;;  %v5621_v5 = vmul.f32 %v11804_v16, %v5573_v63  ;;  %v5622_v28 = vmul.f32 %v11804_v16, %v5574_v49 }
 0x4ad   : > { %6412 = vst [vmem:[%s9080_s26 + $0x28] sm:$0xff] %v6331_v12   ;;  %v5707_v31 = vmax.f32 %v5665_v48, 0.0  ;;  %v5708_v34 = vmax.f32 %v5666_v50, 0.0  ;;  %v5668_v10 = vadd.f32 %v11831_v36, %v5620_v60  ;;  %v5623_v44 = vmul.f32 %v11804_v16, %v5575_v2 }
 0x4ae   : > { %6413 = vst [vmem:[%s9080_s26 + $0x30] sm:$0xff] %v6336_v1   ;;  %v5709_v45 = vmax.f32 %v5667_v33, 0.0  ;;  %v5669_v4 = vadd.f32 %v11831_v36, %v5621_v5  ;;  %v5670_v63 = vadd.f32 %v11831_v36, %v5622_v28  ;;  %v5624_v38 = vmul.f32 %v11804_v16, %v5576_v3 }
 0x4af   : > { %v6341_v49 = vpack.c.bf16 %v5708_v34, %v5707_v31  ;;  %v5710_v8 = vmax.f32 %v5668_v10, 0.0  ;;  %v5671_v19 = vadd.f32 %v11831_v36, %v5623_v44  ;;  %v5625_v26 = vmul.f32 %v11804_v16, %v5577_v43 }
 0x4b0   : > { %v5711_v2 = vmax.f32 %v5669_v4, 0.0  ;;  %v5712_v21 = vmax.f32 %v5670_v63, 0.0  ;;  %v5672_v62 = vadd.f32 %v11831_v36, %v5624_v38  ;;  %v5626_v25 = vmul.f32 %v11804_v16, %v5578_v23 }
 0x4b1   : > { %6414 = vst [vmem:[%s9080_s26 + $0x38] sm:$0xff] %v6341_v49   ;;  %v6346_v3 = vpack.c.bf16 %v5710_v8, %v5709_v45  ;;  %v5713_v30 = vmax.f32 %v5671_v19, 0.0  ;;  %v5673_v15 = vadd.f32 %v11831_v36, %v5625_v26  ;;  %v5627_v11 = vmul.f32 %v11804_v16, %v5579_v59 }
 0x4b2   : > { %v6351_v20 = vpack.c.bf16 %v5712_v21, %v5711_v2  ;;  %v5714_v43 = vmax.f32 %v5672_v62, 0.0  ;;  %v5674_v61 = vadd.f32 %v11831_v36, %v5626_v25  ;;  %v5628_v6 = vmul.f32 %v11804_v16, %v5580_v17 }
 0x4b3   : > { %6415 = vst [vmem:[%s9080_s26 + $0x40] sm:$0xff] %v6346_v3   ;;  %v5715_v23 = vmax.f32 %v5673_v15, 0.0  ;;  %v5675_v7 = vadd.f32 %v11831_v36, %v5627_v11  ;;  %v5629_v53 = vmul.f32 %v11804_v16, %v5581_v55  ;;  %v5630_v59 = vmul.f32 %v11804_v16, %v5582_v57 }
 0x4b4   : > { %6416 = vst [vmem:[%s9080_s26 + $0x48] sm:$0xff] %v6351_v20   ;;  %v6356_v14 = vpack.c.bf16 %v5714_v43, %v5713_v30  ;;  %v5716_v0 = vmax.f32 %v5674_v61, 0.0  ;;  %v5676_v58 = vadd.f32 %v11831_v36, %v5628_v6  ;;  %v5631_v17 = vmul.f32 %v11804_v16, %v5583_v46 }
 0x4b5   : > { %v5717_v13 = vmax.f32 %v5675_v7, 0.0  ;;  %v5677_v54 = vadd.f32 %v11831_v36, %v5629_v53  ;;  %v5678_v18 = vadd.f32 %v11831_v36, %v5630_v59  ;;  %v5632_v22 = vmul.f32 %v11804_v16, %v5584_v9 }
 0x4b6   : > { %6417 = vst [vmem:[%s9080_s26 + $0x50] sm:$0xff] %v6356_v14   ;;  %v6361_v55 = vpack.c.bf16 %v5716_v0, %v5715_v23  ;;  %v5718_v57 = vmax.f32 %v5676_v58, 0.0  ;;  %v5679_v39 = vadd.f32 %v11831_v36, %v5631_v17  ;;  %v5633_v47 = vmul.f32 %v11804_v16, %v5585_v51 }
 0x4b7   : > { %v5719_v46 = vmax.f32 %v5677_v54, 0.0  ;;  %v5720_v29 = vmax.f32 %v5678_v18, 0.0  ;;  %v5680_v12 = vadd.f32 %v11831_v36, %v5632_v22  ;;  %v5634_v41 = vmul.f32 %v11804_v16, %v5586_v24 }
 0x4b8   : > { %6418 = vst [vmem:[%s9080_s26 + $0x58] sm:$0xff] %v6361_v55   ;;  %v6366_v9 = vpack.c.bf16 %v5718_v57, %v5717_v13  ;;  %v5721_v48 = vmax.f32 %v5679_v39, 0.0  ;;  %v5681_v50 = vadd.f32 %v11831_v36, %v5633_v47  ;;  %v12276_v60 = vunpack.c.l.bf16 %v11773_v52 }
 0x4b9   : > { %v6371_v33 = vpack.c.bf16 %v5720_v29, %v5719_v46  ;;  %v5722_v51 = vmax.f32 %v5680_v12, 0.0  ;;  %v5682_v5 = vadd.f32 %v11831_v36, %v5634_v41  ;;  %v12277_v28 = vunpack.c.h.bf16 %v11773_v52 }
 0x4ba   : > { %v5635_v1 = vmul.f32 %v11804_v16, %v12276_v60  ;;  %6419 = vst [vmem:[%s9080_s26 + $0x60] sm:$0xff] %v6366_v9   ;;  %v5723_v24 = vmax.f32 %v5681_v50, 0.0  ;;  %v12278_v34 = vunpack.c.l.bf16 %v11776_v56  ;;  %v5638_v44 = vmul.f32 %v11804_v16, %v5590_v40 }
 0x4bb   : > { %v5636_v42 = vmul.f32 %v11804_v16, %v12277_v28  ;;  %6420 = vst [vmem:[%s9080_s26 + $0x68] sm:$0xff] %v6371_v33   ;;  %v6376_v45 = vpack.c.bf16 %v5722_v51, %v5721_v48  ;;  %v5724_v4 = vmax.f32 %v5682_v5, 0.0  ;;  %v5639_v63 = vmul.f32 %v11804_v16, %v5591_v37 }
 0x4bc   : > { %v5683_v31 = vadd.f32 %v11831_v36, %v5635_v1  ;;  %v5637_v10 = vmul.f32 %v11804_v16, %v12278_v34  ;;  %v5686_v8 = vadd.f32 %v11831_v36, %v5638_v44  ;;  %v12279_v19 = vunpack.c.h.bf16 %v11783_v32 }
 0x4bd   : > { %v5684_v52 = vadd.f32 %v11831_v36, %v5636_v42  ;;  %6421 = vst [vmem:[%s9080_s26 + $0x70] sm:$0xff] %v6376_v45   ;;  %v6381_v40 = vpack.c.bf16 %v5724_v4, %v5723_v24  ;;  %v5687_v2 = vadd.f32 %v11831_v36, %v5639_v63  ;;  %v12280_v21 = vunpack.c.l.bf16 %v11789_v35 }
 0x4be   : > { %v5725_v38 = vmax.f32 %v5683_v31, 0.0  ;;  %v5685_v49 = vadd.f32 %v11831_v36, %v5637_v10  ;;  %v5640_v56 = vmul.f32 %v11804_v16, %v12279_v19  ;;  %v5728_v25 = vmax.f32 %v5686_v8, 0.0 }
 0x4bf   : > { %v5726_v26 = vmax.f32 %v5684_v52, 0.0  ;;  %v5641_v62 = vmul.f32 %v11804_v16, %v12280_v21  ;;  %v12281_v30 = vunpack.c.h.bf16 %v11789_v35  ;;  %6422 = vst [vmem:[%s9080_s26 + $0x78] sm:$0xff] %v6381_v40   ;;  %v5729_v11 = vmax.f32 %v5687_v2, 0.0 }
 0x4c0   : > { %v5727_v37 = vmax.f32 %v5685_v49, 0.0  ;;  %v5688_v3 = vadd.f32 %v11831_v36, %v5640_v56  ;;  %v12282_v43 = vunpack.c.l.bf16 %v11792_v27  ;;  %v12283_v35 = vunpack.c.h.bf16 %v11792_v27 }
 0x4c1   : > { %v5642_v32 = vmul.f32 %v11804_v16, %v12281_v30  ;;  %v6386_v15 = vpack.c.bf16 %v5726_v26, %v5725_v38  ;;  %v5689_v20 = vadd.f32 %v11831_v36, %v5641_v62 }
 0x4c2   : > { %v5643_v61 = vmul.f32 %v11804_v16, %v12282_v43  ;;  %v6391_v6 = vpack.c.bf16 %v5728_v25, %v5727_v37  ;;  %v5730_v23 = vmax.f32 %v5688_v3, 0.0  ;;  %v5644_v53 = vmul.f32 %v11804_v16, %v12283_v35 }
 0x4c3   : > { %v5690_v7 = vadd.f32 %v11831_v36, %v5642_v32  ;;  %6423 = vst [vmem:[%s9080_s26 + $0x80] sm:$0xff] %v6386_v15   ;;  %v5731_v59 = vmax.f32 %v5689_v20, 0.0 }
 0x4c4   : > { %v5691_v14 = vadd.f32 %v11831_v36, %v5643_v61  ;;  %6424 = vst [vmem:[%s9080_s26 + $0x88] sm:$0xff] %v6391_v6   ;;  %v6396_v0 = vpack.c.bf16 %v5730_v23, %v5729_v11  ;;  %v5692_v17 = vadd.f32 %v11831_v36, %v5644_v53 }
 0x4c5   : > { %v5732_v58 = vmax.f32 %v5690_v7, 0.0 }
 0x4c6   : > { %v5733_v13 = vmax.f32 %v5691_v14, 0.0  ;;  %6425 = vst [vmem:[%s9080_s26 + $0x90] sm:$0xff] %v6396_v0   ;;  %v5734_v18 = vmax.f32 %v5692_v17, 0.0 }
 0x4c7   : > { %v6401_v54 = vpack.c.bf16 %v5732_v58, %v5731_v59 }
 0x4c8   : > { %v6406_v22 = vpack.c.bf16 %v5734_v18, %v5733_v13 }
 0x4c9   : > { %6426 = vst [vmem:[%s9080_s26 + $0x98] sm:$0xff] %v6401_v54  }
 0x4ca   : > { %6427 = vst [vmem:[%s9080_s26 + $0xa0] sm:$0xff] %v6406_v22  }
 0x4cb PF: > { %s12284_s27 = sld [smem:[#allocation17_spill]]  ;;  %s5953_s10 = smul.u32 %s8819_s21, %s8823_s22 }
 0x4cc   : > { %s5960_s11 = sshll.u32 %s9080_s26, 4  ;;  %s12285_s12 = sld [smem:[#allocation29_spill]]  ;;  %s11990_s11 = int_to_ptr.vmem [resolvable:$true] %s5960_s11 }
 0x4cd   : > { %s8323_s29 = smul.u32 2688, %s5953_s10  ;;  %s11999_s28 = scalar_lea.sflag [#allocation7], %s248_s3 }
 0x4ce   : > { %s8709_s30 = scalar_lea.vmem %s11990_s11, 2688  ;;  %s8845_s21 = smov [#allocation10]  }
 0x4cf   : > { %p8710_p11 = scmp.ne.s32.totalorder %s11990_s11, %s8709_s30  ;;  %s8713_s22 = sshll.u32 %s8845_s21, 4  ;;  %s8714_s22 = int_to_ptr.vmem [resolvable:$false] %s8713_s22 }
 0x4d0   : > { %s8715_s26 = scalar_lea.vmem %s8714_s22, 5376  ;;  %p8716_p5 = scmp.lt.s32.totalorder %s11990_s11, %s8714_s22 }
 0x4d1   : > { %p12286_p13 = scmp.ne.s32.totalorder %s12284_s27, 0  ;;  %p8717_p8 = scmp.lt.s32.totalorder %s8715_s26, %s8709_s30 }
 0x4d2   : > { %s11995_s7 = scalar_lea.hbm %s12285_s12, %s8323_s29 }
 0x4d3   : > { %p8711_p0 = pnand %p8710_p11, %p12286_p13  ;;  %p8718_p12 = por %p8717_p8, %p8716_p5 }
 0x4d5   : > { %p8712_p2 = pneg %p8711_p0 }
 0x4d7   : > { %p8719_p1 = pnand %p8718_p12, %p8712_p2 }
 0x4d9   : > { %8722 = shalt.err (!%p8719_p1)
}
 0x4da   : > { %s8723_s3 = scalar_lea.hbm %s11995_s7, 2688  ;;  %s8727_s4 = scalar_lea.hbm %s12285_s12, 13440 }
 0x4db   : > { %p8724_p6 = scmp.ne.s32.totalorder %s11995_s7, %s8723_s3  ;;  %p8728_p4 = scmp.lt.u32.totalorder %s11995_s7, %s12285_s12 }
 0x4dc   : > { %p8729_p7 = scmp.lt.u32.totalorder %s8727_s4, %s8723_s3  ;;  %p8731_p11 = scmp.lt.u32.totalorder %s8723_s3, %s11995_s7 }
 0x4dd   : > { %p8725_p10 = pnand %p8724_p6, %p12286_p13 }
 0x4de   : > { %p8730_p9 = por %p8729_p7, %p8728_p4 }
 0x4df   : > { %p8726_p3 = pneg %p8725_p10 }
 0x4e0   : > { %p8732_p0 = por %p8731_p11, %p8730_p9 }
 0x4e2   : > { %p8733_p2 = pnand %p8732_p0, %p8726_p3 }
 0x4e4   : > { %8736 = shalt.err (!%p8733_p2)
}
 0x4e5   : > { %s8846_s13 = smov 64   ;;  %s8847_s14 = smov 4  }
 0x4e6   : > { %8330 = dma.vmem_to_hbm [thread:$0]  (%p12286_p13), %s11990_s11, 2688, %s11995_s7, %s11999_s28, %s8846_s13, %s8846_s13, %s8847_s14  }
 0x4e7 PF: > { %s12287_s10 = sld [smem:[#allocation14_spill]]  ;;  %s12288_s29 = sld [smem:[#allocation18_spill]] }
 0x4e8   : > { %p8347_p5 = scmp.ge.s32.totalorder %s8835_s25, 2 }
 0x4ed   : > { %s5975_s5 = sand.u32 1, %s12287_s10   ;;  %p12289_p8 = scmp.ne.s32.totalorder %s12288_s29, 0 }
 0x4ee   : > { %s5976_s6 = scalar_lea.sflag [#allocation7], %s5975_s5 }
 0x4ef   : > { %p8341_p12 = pnand %p8347_p5, %p12289_p8 }
 0x4f1   : > { %8790 = dma.done.wait (!%p8341_p12), %s5976_s6, 2688  }
 0x4f2   : > { %8792 = vsyncadd (!%p8341_p12), %s5976_s6, 4294964608  ;;  %s21_s25 = sadd.s32 1, %s8835_s25   ;;  %s12290_s27 = smov %s9016_s15 }
 0x4f3   : > { %p18_p1 = scmp.ge.s32.totalorder %s21_s25, 12   ;;  %s12291_s21 = sld [smem:[#allocation15_spill]] }
 0x4f4   : > { %s12292_s22 = sld [smem:[#allocation16_spill]]  ;;  %s12293_s11 = smov %s12303_s18 }
 0x4f5   : > { %s12294_s24 = sld [smem:[#allocation19_spill]]  ;;  %s12295_s15 = smov %s8799_s16 }
 0x4f6   : > { %s12296_s16 = smov %s8803_s17  ;;  %s12297_s17 = smov %s9013_s23 }
 0x4f7   : > { %s12298_s18 = smov %s8811_s19  ;;  %s12299_s19 = smov %s8815_s20 }
 0x4f8   : > { %s12300_s20 = smov %s12290_s27  ;;  %s12301_s23 = smov %s12293_s11 }
 0x4f9   :  { %20 = sbr.rel (!%p18_p1) target bundleno = 14 (0xe), region = 107 }
 0x500   :  { %5981 = vsyncpa [#allocation6], 1 }
 0x501   :  { %5983 = vsyncpa [#allocation6 + $0x1], 1 }
 0x502   :  { %5984 = vsyncpa [#allocation9], 1 }
 0x503   :  { %5985 = vsyncpa [#allocation7], 1 }
 0x504   :  { %5987 = vsyncpa [#allocation7 + $0x1], 1 }

</bundles_post_ra>
